<compile_context>
chip_gen: v6e
topology: v6e:2x2x1
jax: 0.10.0
libtpu: 0.0.40
codegen_flags: <defaults>
</compile_context>

<pallas_src>
import functools
import math

import jax
import jax.numpy as jnp
from jax.experimental import pallas as pl
from jax.experimental.pallas import tpu as pltpu

LANE = 128
MiB = 1024 * 1024


def _round_up(v, m):
    return (v + m - 1) // m * m


def _pad2(a, rows, cols):
    r, c = a.shape
    return jnp.pad(a, ((0, rows - r), (0, cols - c)))


def _padded_n(n, tm, tk):
    # Row count must divide by both tm (row tiles) and tk (contraction tiles); keep
    # the number of row tiles even so the "parallel" axis splits evenly across the
    # two TensorCores on v7x.
    return _round_up(n, math.lcm(2 * tm, tk))


def _vmem_limit_bytes():
    # v5e/v6e have 128 MiB physical VMEM, v7x only 64 MiB per TensorCore.  Use ~3/4
    # of capacity (pipelining headroom), capped at 100 MiB; fall back to 48 MiB
    # which is safe on every current chip.
    try:
        cap = pltpu.get_tpu_info().vmem_capacity_bytes
        return int(min(100 * MiB, cap * 3 // 4))
    except Exception:
        return 48 * MiB


def _log_softmax_masked(z, nclass):
    # Mask padded class columns with -inf so log_softmax over the lane-dense padded
    # slab equals log_softmax over the true nclass columns (exp(-inf) = 0).
    col = jax.lax.broadcasted_iota(jnp.int32, z.shape, 1)
    z = jnp.where(col < nclass, z, -jnp.inf)
    m = jnp.max(z, axis=1, keepdims=True)
    lse = jnp.log(jnp.sum(jnp.exp(z - m), axis=1, keepdims=True)) + m
    return z - lse


# --------------------------------------------------------------------------------
# Fused path: adj resident in VMEM (small / mid graphs) -- one kernel, one grid step.
# --------------------------------------------------------------------------------
def _fused_kernel(x_ref, adj_ref, w1_ref, w2_ref, out_ref, *, nclass):
    adj = adj_ref[...]                                                    # bf16, resident
    s1 = jnp.dot(x_ref[...], w1_ref[...], preferred_element_type=jnp.float32)
    h = jnp.dot(adj, s1.astype(jnp.bfloat16), preferred_element_type=jnp.float32)
    h = jnp.maximum(h, 0.0).astype(jnp.bfloat16)                          # ReLU in f32, bf16 for MXU
    s2 = jnp.dot(h, w2_ref[...], preferred_element_type=jnp.float32)
    z = jnp.dot(adj, s2.astype(jnp.bfloat16), preferred_element_type=jnp.float32)
    out_ref[...] = _log_softmax_masked(z, nclass).astype(out_ref.dtype)


# --------------------------------------------------------------------------------
# Tiled path: row x contraction grid (graphs too big for resident adj).
# --------------------------------------------------------------------------------
def _support1_kernel(x_ref, w1_ref, s1_ref):
    # support1 = x @ w1, computed exactly once (row-tiled), never per adj tile.
    s1_ref[...] = jnp.dot(x_ref[...], w1_ref[...],
                          preferred_element_type=jnp.float32).astype(s1_ref.dtype)


def _layer1_kernel(adj_ref, s1_ref, w2_ref, s2_ref, acc_ref):
    # s2 = relu(adj @ s1) @ w2 : k-tiled spmm with fused ReLU + w2 epilogue.
    k = pl.program_id(1)

    @pl.when(k == 0)
    def _():
        acc_ref[...] = jnp.zeros_like(acc_ref)

    acc_ref[...] += jnp.dot(adj_ref[...], s1_ref[...],
                            preferred_element_type=jnp.float32)

    @pl.when(k == pl.num_programs(1) - 1)
    def _():
        h = jnp.maximum(acc_ref[...], 0.0).astype(jnp.bfloat16)
        s2_ref[...] = jnp.dot(h, w2_ref[...],
                              preferred_element_type=jnp.float32).astype(s2_ref.dtype)


def _layer2_kernel(adj_ref, s2_ref, out_ref, acc_ref, *, nclass):
    # z = adj @ s2 ; log_softmax : second k-tiled spmm (no redundant h @ w2 here).
    k = pl.program_id(1)

    @pl.when(k == 0)
    def _():
        acc_ref[...] = jnp.zeros_like(acc_ref)

    acc_ref[...] += jnp.dot(adj_ref[...], s2_ref[...],
                            preferred_element_type=jnp.float32)

    @pl.when(k == pl.num_programs(1) - 1)
    def _():
        out_ref[...] = _log_softmax_masked(acc_ref[...], nclass).astype(out_ref.dtype)


# --------------------------------------------------------------------------------
# Wrapper
# --------------------------------------------------------------------------------
def prepare_adj(adj, *, tm=256, tk=512):
    """Pad + bf16-cast adj once; reuse across forward calls (adj is static in a GCN)."""
    n = adj.shape[0]
    np_ = _padded_n(n, tm, tk)
    return _pad2(adj, np_, np_).astype(jnp.bfloat16)


def gcn_forward(x, adj, w1, w2, *, tm=256, tk=512, force_tiled=False):
    assert tm % 8 == 0 and tk % LANE == 0, "tm must be a multiple of 8, tk of 128"

    N, F = x.shape
    H = w1.shape[1]
    C = w2.shape[1]

    Np = _padded_n(N, tm, tk)
    Hp = _round_up(H, LANE)
    Cp = _round_up(C, LANE)

    vmem_limit = _vmem_limit_bytes()

    def cparams(sem):
        return pltpu.CompilerParams(dimension_semantics=sem,
                                    vmem_limit_bytes=vmem_limit)

    # adj may already be the padded bf16 slab from prepare_adj (caching the pad +
    # cast of the largest array across calls); zero padding is semantics-preserving.
    if adj.dtype == jnp.bfloat16 and adj.shape == (Np, Np):
        adjb = adj
    else:
        adjb = prepare_adj(adj, tm=tm, tk=tk)

    xb = _pad2(x, Np, F).astype(jnp.bfloat16)
    w1b = _pad2(w1, F, Hp).astype(jnp.bfloat16)
    w2b = _pad2(w2, Hp, Cp).astype(jnp.bfloat16)

    # Rough VMEM footprint of the fused (adj-resident) kernel, lane-padding included.
    fused_bytes = (
        2 * Np * Np                           # adj bf16 (resident)
        + 2 * Np * _round_up(F, LANE)         # x bf16
        + 4 * Np * Hp + 2 * Np * Hp           # s1 f32 + h bf16
        + 3 * 4 * Np * Cp                     # s2 / z / out f32
        + 2 * _round_up(F, 8) * Hp + 2 * Hp * Cp
    )
    use_fused = (not force_tiled) and (fused_bytes <= vmem_limit // 2)

    if use_fused:
        out_pad = pl.pallas_call(
            functools.partial(_fused_kernel, nclass=C),
            out_shape=jax.ShapeDtypeStruct((Np, Cp), jnp.float32),
            grid=(1,),
            in_specs=[
                pl.BlockSpec((Np, F), lambda i: (0, 0)),
                pl.BlockSpec((Np, Np), lambda i: (0, 0)),
                pl.BlockSpec((F, Hp), lambda i: (0, 0)),
                pl.BlockSpec((Hp, Cp), lambda i: (0, 0)),
            ],
            out_specs=pl.BlockSpec((Np, Cp), lambda i: (0, 0)),
            compiler_params=cparams(("arbitrary",)),
            cost_estimate=pl.CostEstimate(
                flops=2 * Np * (F * Hp + Np * Hp + Hp * Cp + Np * Cp),
                transcendentals=Np * Cp,
                bytes_accessed=2 * (xb.size + adjb.size + w1b.size + w2b.size)
                               + 4 * Np * Cp),
        )(xb, adjb, w1b, w2b)
        return out_pad[:N, :C]

    # ---------------------------- tiled path ------------------------------------
    # 1) support1 = x @ w1, once.
    s1 = pl.pallas_call(
        _support1_kernel,
        out_shape=jax.ShapeDtypeStruct((Np, Hp), jnp.bfloat16),
        grid=(Np // tm,),
        in_specs=[
            pl.BlockSpec((tm, F), lambda i: (i, 0)),
            pl.BlockSpec((F, Hp), lambda i: (0, 0)),
        ],
        out_specs=pl.BlockSpec((tm, Hp), lambda i: (i, 0)),
        compiler_params=cparams(("parallel",)),
        cost_estimate=pl.CostEstimate(
            flops=2 * Np * F * Hp, transcendentals=0,
            bytes_accessed=2 * (Np * F + F * Hp + Np * Hp)),
    )(xb, w1b)

    grid = (Np // tm, Np // tk)
    # adj is the dominant HBM stream: triple-buffer it to hide DMA jitter.
    adj_spec = pl.BlockSpec((tm, tk), lambda i, k: (i, k),
                            pipeline_mode=pl.Buffered(3))

    # 2) s2 = relu(adj @ s1) @ w2  (h never hits HBM).
    s2 = pl.pallas_call(
        _layer1_kernel,
        out_shape=jax.ShapeDtypeStruct((Np, Cp), jnp.bfloat16),
        grid=grid,
        in_specs=[
            adj_spec,
            pl.BlockSpec((tk, Hp), lambda i, k: (k, 0)),
            pl.BlockSpec((Hp, Cp), lambda i, k: (0, 0)),
        ],
        out_specs=pl.BlockSpec((tm, Cp), lambda i, k: (i, 0)),
        scratch_shapes=[pltpu.VMEM((tm, Hp), jnp.float32)],
        compiler_params=cparams(("parallel", "arbitrary")),
        cost_estimate=pl.CostEstimate(
            flops=2 * Np * Np * Hp + 2 * Np * Hp * Cp,
            transcendentals=0,
            bytes_accessed=2 * (Np * Np + (Np // tm) * Np * Hp + Hp * Cp + Np * Cp)),
    )(adjb, s1, w2b)

    # 3) z = adj @ s2 ; log_softmax.
    out_pad = pl.pallas_call(
        functools.partial(_layer2_kernel, nclass=C),
        out_shape=jax.ShapeDtypeStruct((Np, Cp), jnp.float32),
        grid=grid,
        in_specs=[
            adj_spec,
            pl.BlockSpec((tk, Cp), lambda i, k: (k, 0)),
        ],
        out_specs=pl.BlockSpec((tm, Cp), lambda i, k: (i, 0)),
        scratch_shapes=[pltpu.VMEM((tm, Cp), jnp.float32)],
        compiler_params=cparams(("parallel", "arbitrary")),
        cost_estimate=pl.CostEstimate(
            flops=2 * Np * Np * Cp,
            transcendentals=Np * Cp,
            bytes_accessed=2 * (Np * Np + (Np // tm) * Np * Cp) + 4 * Np * Cp),
    )(adjb, s2)

    return out_pad[:N, :C]


# --------------------------------------------------------------------------------
# References
# --------------------------------------------------------------------------------
def gcn_reference_f32(x, adj, w1, w2):
    h = jnp.maximum(adj @ (x @ w1), 0.0)
    z = adj @ (h @ w2)
    return jax.nn.log_softmax(z, axis=1)


def gcn_reference_mixed(x, adj, w1, w2):
    # Mirrors the kernel's dtype path: bf16 MXU operands, f32 accumulation,
    # f32 elementwise.
    bf = jnp.bfloat16
    s1 = jnp.dot(x.astype(bf), w1.astype(bf), preferred_element_type=jnp.float32)
    h = jnp.dot(adj.astype(bf), s1.astype(bf), preferred_element_type=jnp.float32)
    h = jnp.maximum(h, 0.0).astype(bf)
    s2 = jnp.dot(h, w2.astype(bf), preferred_element_type=jnp.float32)
    z = jnp.dot(adj.astype(bf), s2.astype(bf), preferred_element_type=jnp.float32)
    return jax.nn.log_softmax(z, axis=1)


if __name__ == "__main__":
    key = jax.random.PRNGKey(0)
    k_x, k_adj, k_w1, k_w2 = jax.random.split(key, 4)

    # Small synthetic problem; N not a multiple of 128 to exercise the padding path.
    N, nfeat, nhid, nclass = 200, 16, 32, 10

    x = jax.random.normal(k_x, (N, nfeat), dtype=jnp.float32)
    # Symmetric-ish row-normalized dense adjacency (stands in for torch.spmm's sparse arg).
    a = (jax.random.uniform(k_adj, (N, N)) < 0.1).astype(jnp.float32)
    adj = a + a.T + jnp.eye(N, dtype=jnp.float32)
    adj = adj / jnp.sum(adj, axis=1, keepdims=True)

    # Deterministic parameter init (the torch module leaves weights uninitialized).
    w1 = jax.random.normal(k_w1, (nfeat, nhid), dtype=jnp.float32) / jnp.sqrt(nfeat)
    w2 = jax.random.normal(k_w2, (nhid, nclass), dtype=jnp.float32) / jnp.sqrt(nhid)

    ref_mixed = gcn_reference_mixed(x, adj, w1, w2)
    ref_f32 = gcn_reference_f32(x, adj, w1, w2)

    gcn_fn = jax.jit(gcn_forward, static_argnames=("tm", "tk", "force_tiled"))

    # adj is static across forward calls for a GCN: pad + bf16-cast it once and reuse.
    adjb = prepare_adj(adj)   # default tm=256, tk=512

    # (a) Small-graph fused path (adj resident in VMEM, single kernel call).
    out = jax.block_until_ready(gcn_fn(x, adjb, w1, w2))
    assert out.shape == (N, nclass)
    assert bool(jnp.all(jnp.isfinite(out))), "non-finite output"
    assert jnp.allclose(out, ref_mixed, atol=1e-2, rtol=1e-2), \
        "fused path: mismatch vs mixed-precision reference"
    assert jnp.allclose(out, ref_f32, atol=2.5e-1, rtol=5e-2), \
        "fused path: mismatch vs f32 reference"

    # (b) Large-graph tiled path (row x contraction grid), forced at small size with
    #     small tiles so multi-step k accumulation is actually exercised.
    out_t = jax.block_until_ready(
        gcn_fn(x, adj, w1, w2, tm=128, tk=128, force_tiled=True))
    assert out_t.shape == (N, nclass)
    assert jnp.allclose(out_t, ref_mixed, atol=1e-2, rtol=1e-2), \
        "tiled path: mismatch vs mixed-precision reference"
    assert jnp.allclose(out_t, out, atol=2e-2, rtol=2e-2), \
        "tiled path: mismatch vs fused path"

    print("KERNEL_OK")
</pallas_src>

<mosaic_0001>
module attributes {stable_mosaic.version = 11 : i64} {
  func.func @_fused_kernel(%arg0: i32, %arg1: memref<512x16xbf16, #tpu.memory_space<vmem>>, %arg2: memref<512x512xbf16, #tpu.memory_space<vmem>>, %arg3: memref<16x128xbf16, #tpu.memory_space<vmem>>, %arg4: memref<128x128xbf16, #tpu.memory_space<vmem>>, %arg5: memref<512x128xf32, #tpu.memory_space<vmem>>) attributes {dimension_semantics = [#tpu.dimension_semantics<arbitrary>], iteration_bounds = array<i64: 1>, scalar_prefetch = 0 : i64, scratch_operands = 0 : i64, tpu.core_type = #tpu.core_type<tc>, window_params = [{pipeline_mode = #tpu.pipeline_mode<synchronous>, transform_indices = @transform_0, window_bounds = array<i64: 512, 16>}, {pipeline_mode = #tpu.pipeline_mode<synchronous>, transform_indices = @transform_1, window_bounds = array<i64: 512, 512>}, {pipeline_mode = #tpu.pipeline_mode<synchronous>, transform_indices = @transform_2, window_bounds = array<i64: 16, 128>}, {pipeline_mode = #tpu.pipeline_mode<synchronous>, transform_indices = @transform_3, window_bounds = array<i64: 128, 128>}, {pipeline_mode = #tpu.pipeline_mode<synchronous>, transform_indices = @transform_4, window_bounds = array<i64: 512, 128>}]} {
    %c0 = arith.constant 0 : index
    %c0_0 = arith.constant 0 : index
    %0 = vector.load %arg2[%c0, %c0_0] : memref<512x512xbf16, #tpu.memory_space<vmem>>, vector<512x512xbf16>
    %c0_1 = arith.constant 0 : index
    %c0_2 = arith.constant 0 : index
    %1 = vector.load %arg1[%c0_1, %c0_2] : memref<512x16xbf16, #tpu.memory_space<vmem>>, vector<512x16xbf16>
    %c0_3 = arith.constant 0 : index
    %c0_4 = arith.constant 0 : index
    %2 = vector.load %arg3[%c0_3, %c0_4] : memref<16x128xbf16, #tpu.memory_space<vmem>>, vector<16x128xbf16>
    %cst = arith.constant dense<0.000000e+00> : vector<512x128xf32>
    %3 = tpu.matmul %1, %2, %cst {dimension_numbers = #tpu.dot_dimension_numbers<[1], [0], [0], [1], [0, 0, 1, 1], [], []>} : vector<512x16xbf16>, vector<16x128xbf16>, vector<512x128xf32> -> vector<512x128xf32>
    %4 = arith.truncf %3 : vector<512x128xf32> to vector<512x128xbf16>
    %cst_5 = arith.constant dense<0.000000e+00> : vector<512x128xf32>
    %5 = tpu.matmul %0, %4, %cst_5 {dimension_numbers = #tpu.dot_dimension_numbers<[1], [0], [0], [1], [0, 0, 1, 1], [], []>} : vector<512x512xbf16>, vector<512x128xbf16>, vector<512x128xf32> -> vector<512x128xf32>
    %cst_6 = arith.constant 0.000000e+00 : f32
    %6 = vector.broadcast %cst_6 : f32 to vector<512x128xf32>
    %7 = arith.maximumf %5, %6 : vector<512x128xf32>
    %8 = arith.truncf %7 : vector<512x128xf32> to vector<512x128xbf16>
    %c0_7 = arith.constant 0 : index
    %c0_8 = arith.constant 0 : index
    %9 = vector.load %arg4[%c0_7, %c0_8] : memref<128x128xbf16, #tpu.memory_space<vmem>>, vector<128x128xbf16>
    %cst_9 = arith.constant dense<0.000000e+00> : vector<512x128xf32>
    %10 = tpu.matmul %8, %9, %cst_9 {dimension_numbers = #tpu.dot_dimension_numbers<[1], [0], [0], [1], [0, 0, 1, 1], [], []>} : vector<512x128xbf16>, vector<128x128xbf16>, vector<512x128xf32> -> vector<512x128xf32>
    %11 = arith.truncf %10 : vector<512x128xf32> to vector<512x128xbf16>
    %cst_10 = arith.constant dense<0.000000e+00> : vector<512x128xf32>
    %12 = tpu.matmul %0, %11, %cst_10 {dimension_numbers = #tpu.dot_dimension_numbers<[1], [0], [0], [1], [0, 0, 1, 1], [], []>} : vector<512x512xbf16>, vector<512x128xbf16>, vector<512x128xf32> -> vector<512x128xf32>
    %13 = tpu.iota {dimensions = array<i32: 1>} : vector<512x128xi32>
    %c10_i32 = arith.constant 10 : i32
    %14 = vector.broadcast %c10_i32 : i32 to vector<512x128xi32>
    %15 = arith.cmpi slt, %13, %14 : vector<512x128xi32>
    %cst_11 = arith.constant 0xFF800000 : f32
    %16 = vector.broadcast %cst_11 : f32 to vector<512x128xf32>
    %17 = arith.select %15, %12, %16 : vector<512x128xi1>, vector<512x128xf32>
    %cst_12 = arith.constant dense<0xFF800000> : vector<512xf32>
    %18 = vector.multi_reduction <maximumf>, %17, %cst_12 [1] : vector<512x128xf32> to vector<512xf32>
    %19 = vector.shape_cast %18 : vector<512xf32> to vector<512x1xf32>
    %20 = vector.broadcast %19 : vector<512x1xf32> to vector<512x128xf32>
    %21 = arith.subf %17, %20 : vector<512x128xf32>
    %22 = math.exp %21 : vector<512x128xf32>
    %cst_13 = arith.constant dense<0.000000e+00> : vector<512xf32>
    %23 = vector.multi_reduction <add>, %22, %cst_13 [1] : vector<512x128xf32> to vector<512xf32>
    %24 = vector.shape_cast %23 : vector<512xf32> to vector<512x1xf32>
    %25 = math.log %24 : vector<512x1xf32>
    %26 = arith.addf %25, %19 : vector<512x1xf32>
    %27 = vector.broadcast %26 : vector<512x1xf32> to vector<512x128xf32>
    %28 = arith.subf %17, %27 : vector<512x128xf32>
    %c0_14 = arith.constant 0 : index
    %c0_15 = arith.constant 0 : index
    %29 = vector.load %arg5[%c0_14, %c0_15] : memref<512x128xf32, #tpu.memory_space<vmem>>, vector<512x128xf32>
    tpu.vector_store %arg5[%c0_14, %c0_15], %28 {strides = array<i32>} : memref<512x128xf32, #tpu.memory_space<vmem>>, vector<512x128xf32>,
    return
  }
  func.func @transform_0(%arg0: i32) -> (i32, i32) {
    %c0_i32 = arith.constant 0 : i32
    %c0_i32_0 = arith.constant 0 : i32
    %c0_i32_1 = arith.constant 0 : i32
    return %c0_i32, %c0_i32_0 : i32, i32
  }
  func.func @transform_1(%arg0: i32) -> (i32, i32) {
    %c0_i32 = arith.constant 0 : i32
    %c0_i32_0 = arith.constant 0 : i32
    %c0_i32_1 = arith.constant 0 : i32
    return %c0_i32, %c0_i32_0 : i32, i32
  }
  func.func @transform_2(%arg0: i32) -> (i32, i32) {
    %c0_i32 = arith.constant 0 : i32
    %c0_i32_0 = arith.constant 0 : i32
    %c0_i32_1 = arith.constant 0 : i32
    return %c0_i32, %c0_i32_0 : i32, i32
  }
  func.func @transform_3(%arg0: i32) -> (i32, i32) {
    %c0_i32 = arith.constant 0 : i32
    %c0_i32_0 = arith.constant 0 : i32
    %c0_i32_1 = arith.constant 0 : i32
    return %c0_i32, %c0_i32_0 : i32, i32
  }
  func.func @transform_4(%arg0: i32) -> (i32, i32) {
    %c0_i32 = arith.constant 0 : i32
    %c0_i32_0 = arith.constant 0 : i32
    %c0_i32_1 = arith.constant 0 : i32
    return %c0_i32, %c0_i32_0 : i32, i32
  }
}

</mosaic_0001>

<bundles_post_ra>
// kernel: gcn_forward.1
= control target key start
LH: loop header
LB: loop body
LE: loop exit
PB: predicated region body
PF: predicated region fallthrough
CT: control target
= control target key end

     0   :  { %9 = vsyncpa [#allocation3], 0  ;;  %s5022_s15 = smov [#allocation2]   ;;  %s6647_s0 = inlined_call_operand.vmem [shape: bf16[512,16], index: 0, kind: input, shape index: {}]   ;;  %s6648_s1 = inlined_call_operand.hbm [shape: bf16[512,512], index: 1, kind: input, shape index: {}]   ;;  %s6649_s2 = inlined_call_operand.vmem [shape: bf16[16,128], index: 2, kind: input, shape index: {}]   ;;  %s6650_s3 = inlined_call_operand.vmem [shape: bf16[128,128], index: 3, kind: input, shape index: {}]   ;;  %s6651_s4 = inlined_call_operand.vmem [shape: f32[512,128], index: 4, kind: output, shape index: {}]  }
   0x1   :  { %s17_s16 = sshll.u32 %s5022_s15, 4  ;;  %s18_s16 = int_to_ptr.vmem [resolvable:$true] %s17_s16 }
   0x2   :  { %s5008_s17 = scalar_lea.vmem %s18_s16, 16384  ;;  %p5013_p1 = scmp.lt.s32.totalorder %s18_s16, %s18_s16 }
   0x3   :  { %p5009_p0 = scmp.ne.s32.totalorder %s18_s16, %s5008_s17  ;;  %p5014_p2 = scmp.lt.s32.totalorder %s5008_s17, %s5008_s17 }
   0x5   :  { %p5015_p3 = por %p5014_p2, %p5013_p1 }
   0x7   :  { %p5016_p4 = pnand %p5015_p3, %p5009_p0 }
   0x9   :  { %5019 = shalt.err (!%p5016_p4)
}
   0xa   :  { %s5023_s18 = smov 256   ;;  %s5024_s19 = smov 16  }
   0xb   :  { %23 = dma.hbm_to_vmem [thread:$0]  %s6648_s1, 16384, %s18_s16, [#allocation3], %s5023_s18, %s5023_s18, %s5024_s19  }
   0xc   :  { %5020 = dma.done.wait [#allocation3], 16384  }
   0xd   :  { %5021 = vsyncadd [#allocation3], 4294950912  ;;  %v4383_v0 = vld [vmem:[%s6649_s2] sm:$0xff]   ;;  %vm392_vm0 = vcmask 130048   ;;  %v4385_v2 = vld [vmem:[%s6647_s0 + $0x8] sm:$0xff]   ;;  %v5025_v28 = vmov 0  }
   0xe   :  { %v4384_v1 = vld [vmem:[%s6647_s0] sm:$0xff]   ;;  %4201 = vmatprep.subr.bf16.mxu0 %v4383_v0  ;;  %v4386_v3 = vld [vmem:[%s6647_s0 + $0x10] sm:$0xff]   ;;  %v4387_v4 = vld [vmem:[%s6647_s0 + $0x18] sm:$0xff]   ;;  %1450 = vmatprep.subr.bf16.mxu1 %v5025_v28 }
   0xf   :  { %4202 = vmatpush3.bf16.msra.mxu0 %v4383_v0  ;;  %4203 = vmatprep.mubr.msk.bf16.mxu0 %vm392_vm0, %v4384_v1  ;;  %v4388_v5 = vld [vmem:[%s6647_s0 + $0x20] sm:$0xff]   ;;  %v4389_v6 = vld [vmem:[%s6647_s0 + $0x28] sm:$0xff]   ;;  %v4390_v7 = vld [vmem:[%s6647_s0 + $0x30] sm:$0xff]  }
  0x10   :  { %v4391_v8 = vld [vmem:[%s6647_s0 + $0x38] sm:$0xff]   ;;  %v4392_v9 = vld [vmem:[%s6647_s0 + $0x40] sm:$0xff]   ;;  %v4393_v10 = vld [vmem:[%s6647_s0 + $0x48] sm:$0xff]   ;;  %1739 = vmatprep.subr.bf16.mxu0 %v5025_v28 }
  0x11   :  { %v4394_v11 = vld [vmem:[%s6647_s0 + $0x50] sm:$0xff]   ;;  %v4395_v12 = vld [vmem:[%s6647_s0 + $0x58] sm:$0xff]   ;;  %v4396_v13 = vld [vmem:[%s6647_s0 + $0x60] sm:$0xff]  }
  0x12   :  { %4204 = vmatmul.mubr.msk.bf16.vlgmr.msra.gmra.mxu0 %vm392_vm0, %v4385_v2  ;;  %v4397_v14 = vld [vmem:[%s6647_s0 + $0x68] sm:$0xff]   ;;  %v4398_v15 = vld [vmem:[%s6647_s0 + $0x70] sm:$0xff]   ;;  %v4399_v16 = vld [vmem:[%s6647_s0 + $0x78] sm:$0xff]  }
  0x13   :  { %4207 = vmatprep.mubr.msk.bf16.mxu0 %vm392_vm0, %v4386_v3  ;;  %v4400_v17 = vld [vmem:[%s6647_s0 + $0x80] sm:$0xff]   ;;  %v4401_v18 = vld [vmem:[%s6647_s0 + $0x88] sm:$0xff]   ;;  %v4402_v19 = vld [vmem:[%s6647_s0 + $0x90] sm:$0xff]  }
  0x14   :  { %v4403_v20 = vld [vmem:[%s6647_s0 + $0x98] sm:$0xff]   ;;  %v4404_v21 = vld [vmem:[%s6647_s0 + $0xa0] sm:$0xff]   ;;  %v4405_v22 = vld [vmem:[%s6647_s0 + $0xa8] sm:$0xff]  }
  0x15   :  { %v4406_v23 = vld [vmem:[%s6647_s0 + $0xb0] sm:$0xff]   ;;  %v4407_v24 = vld [vmem:[%s6647_s0 + $0xb8] sm:$0xff]   ;;  %v4408_v25 = vld [vmem:[%s6647_s0 + $0xc0] sm:$0xff]  }
  0x16   :  { %v4409_v26 = vld [vmem:[%s6647_s0 + $0xc8] sm:$0xff]   ;;  %v4410_v27 = vld [vmem:[%s6647_s0 + $0xd0] sm:$0xff]   ;;  %v4411_v29 = vld [vmem:[%s6647_s0 + $0xd8] sm:$0xff]  }
  0x17   :  { %v4412_v30 = vld [vmem:[%s6647_s0 + $0xe0] sm:$0xff]   ;;  %v4413_v31 = vld [vmem:[%s6647_s0 + $0xe8] sm:$0xff]   ;;  %v4414_v32 = vld [vmem:[%s6647_s0 + $0xf0] sm:$0xff]  }
  0x18   :  { %v4415_v33 = vld [vmem:[%s6647_s0 + $0xf8] sm:$0xff]   ;;  %v4418_v34 = vld [vmem:[#allocation2 + $0x4] ss:$16 sps:$4 sm:$0xff]  }
  0x19   :  { %1482 = vmatprep.mubr.bf16.mxu1 %v4418_v34  ;;  %v4436_v49 = vld [vmem:[#allocation2 + $0xc] ss:$16 sps:$4 sm:$0xff]  }
  0x1a   :  { %4208 = vmatmul.mubr.msk.bf16.gmra.mxu0 %vm392_vm0, %v4387_v4 }
  0x1b   :  { %4211 = vmatprep.mubr.msk.bf16.mxu0 %vm392_vm0, %v4388_v5 }
  0x22   :  { %4212 = vmatmul.mubr.msk.bf16.gmra.mxu0 %vm392_vm0, %v4389_v6 }
  0x23   :  { %4215 = vmatprep.mubr.msk.bf16.mxu0 %vm392_vm0, %v4390_v7 }
  0x2a   :  { %4216 = vmatmul.mubr.msk.bf16.gmra.mxu0 %vm392_vm0, %v4391_v8 }
  0x2b   :  { %4219 = vmatprep.mubr.msk.bf16.mxu0 %vm392_vm0, %v4392_v9 }
  0x32   :  { %4220 = vmatmul.mubr.msk.bf16.gmra.mxu0 %vm392_vm0, %v4393_v10 }
  0x33   :  { %4223 = vmatprep.mubr.msk.bf16.mxu0 %vm392_vm0, %v4394_v11 }
  0x3a   :  { %4224 = vmatmul.mubr.msk.bf16.gmra.mxu0 %vm392_vm0, %v4395_v12 }
  0x3b   :  { %4227 = vmatprep.mubr.msk.bf16.mxu0 %vm392_vm0, %v4396_v13 }
  0x42   :  { %4228 = vmatmul.mubr.msk.bf16.gmra.mxu0 %vm392_vm0, %v4397_v14 }
  0x43   :  { %4231 = vmatprep.mubr.msk.bf16.mxu0 %vm392_vm0, %v4398_v15 }
  0x4a   :  { %4232 = vmatmul.mubr.msk.bf16.gmra.mxu0 %vm392_vm0, %v4399_v16 }
  0x4b   :  { %4235 = vmatprep.mubr.msk.bf16.mxu0 %vm392_vm0, %v4400_v17 }
  0x52   :  { %4236 = vmatmul.mubr.msk.bf16.gmra.mxu0 %vm392_vm0, %v4401_v18 }
  0x53   :  { %4239 = vmatprep.mubr.msk.bf16.mxu0 %vm392_vm0, %v4402_v19 }
  0x5a   :  { %4240 = vmatmul.mubr.msk.bf16.gmra.mxu0 %vm392_vm0, %v4403_v20 }
  0x5b   :  { %4243 = vmatprep.mubr.msk.bf16.mxu0 %vm392_vm0, %v4404_v21 }
  0x62   :  { %4244 = vmatmul.mubr.msk.bf16.gmra.mxu0 %vm392_vm0, %v4405_v22 }
  0x63   :  { %4247 = vmatprep.mubr.msk.bf16.mxu0 %vm392_vm0, %v4406_v23 }
  0x6a   :  { %4248 = vmatmul.mubr.msk.bf16.gmra.mxu0 %vm392_vm0, %v4407_v24 }
  0x6b   :  { %4251 = vmatprep.mubr.msk.bf16.mxu0 %vm392_vm0, %v4408_v25 }
  0x72   :  { %4252 = vmatmul.mubr.msk.bf16.gmra.mxu0 %vm392_vm0, %v4409_v26 }
  0x73   :  { %4255 = vmatprep.mubr.msk.bf16.mxu0 %vm392_vm0, %v4410_v27 }
  0x7a   :  { %4256 = vmatmul.mubr.msk.bf16.gmra.mxu0 %vm392_vm0, %v4411_v29 }
  0x7b   :  { %4259 = vmatprep.mubr.msk.bf16.mxu0 %vm392_vm0, %v4412_v30 }
  0x82   :  { %4260 = vmatmul.mubr.msk.bf16.gmra.mxu0 %vm392_vm0, %v4413_v31 }
  0x83   :  { %4263 = vmatprep.mubr.msk.bf16.mxu0 %vm392_vm0, %v4414_v32 }
  0x8a   :  { %4264 = vmatmul.mubr.msk.bf16.gmra.mxu0 %vm392_vm0, %v4415_v33 }
  0x8b   :  { %1771 = vmatprep.mubr.bf16.mxu0 %v4436_v49 }
  0xd2   :  { %v4205_v35 = vpop.f32.mrf.mxu0 }
  0xd4   :  { %v523_v36 = vpop.f32.mrf.mxu0 }
  0xd6   :  { %v4206_v37 = vpop.f32.mrf.mxu0 }
  0xd7   :  { %v779_v5 = vpack.c.bf16 %v4206_v37, %v4205_v35  ;;  %v4416_v35 = vld [vmem:[#allocation2] ss:$16 sps:$4 sm:$0xff]  }
  0xd8   :  { %v526_v38 = vpop.f32.mrf.mxu0 }
  0xd9   :  { %v778_v8 = vpack.c.bf16 %v526_v38, %v523_v36  ;;  %v4419_v36 = vld [vmem:[#allocation2 + $0x24] ss:$16 sps:$4 sm:$0xff]  }
  0xda   :  { %v4209_v39 = vpop.f32.mrf.mxu0 }
  0xdc   :  { %v539_v40 = vpop.f32.mrf.mxu0 }
  0xde   :  { %v4210_v41 = vpop.f32.mrf.mxu0 }
  0xdf   :  { %v781_v63 = vpack.c.bf16 %v4210_v41, %v4209_v39 }
  0xe0   :  { %v542_v42 = vpop.f32.mrf.mxu0 }
  0xe1   :  { %v780_v2 = vpack.c.bf16 %v542_v42, %v539_v40 }
  0xe2   :  { %v4213_v43 = vpop.f32.mrf.mxu0 }
  0xe4   :  { %v555_v44 = vpop.f32.mrf.mxu0 }
  0xe6   :  { %v4214_v45 = vpop.f32.mrf.mxu0 }
  0xe7   :  { %v783_v57 = vpack.c.bf16 %v4214_v45, %v4213_v43  ;;  %v4421_v43 = vld [vmem:[#allocation2 + $0x20] ss:$16 sps:$4 sm:$0xff]  }
  0xe8   :  { %v558_v46 = vpop.f32.mrf.mxu0 }
  0xe9   :  { %v782_v60 = vpack.c.bf16 %v558_v46, %v555_v44  ;;  %v4422_v44 = vld [vmem:[#allocation2 + $0x44] ss:$16 sps:$4 sm:$0xff]  }
  0xea   :  { %v4217_v47 = vpop.f32.mrf.mxu0 }
  0xec   :  { %v571_v48 = vpop.f32.mrf.mxu0 }
  0xee   :  { %v4218_v50 = vpop.f32.mrf.mxu0 }
  0xef   :  { %v785_v51 = vpack.c.bf16 %v4218_v50, %v4217_v47 }
  0xf0   :  { %v574_v52 = vpop.f32.mrf.mxu0 }
  0xf1   :  { %1451 = vmatpush1.bf16.msra.mxu1 %v785_v51  ;;  %v784_v54 = vpack.c.bf16 %v574_v52, %v571_v48  ;;  %v4424_v51 = vld [vmem:[#allocation2 + $0x40] ss:$16 sps:$4 sm:$0xff]   ;;  %v4425_v52 = vld [vmem:[#allocation2 + $0x64] ss:$16 sps:$4 sm:$0xff]  }
  0xf2   :  { %v5187_v53 = vpop.f32.mrf.mxu0  ;;  %1452 = vmatprep.subr.bf16.mxu1 %v5025_v28 }
  0xf4   :  { %v5190_v55 = vpop.f32.mrf.mxu0 }
  0xf5   :  { %1453 = vmatpush1.bf16.msra.mxu1 %v784_v54 }
  0xf6   :  { %v5192_v56 = vpop.f32.mrf.mxu0  ;;  %1454 = vmatprep.subr.bf16.mxu1 %v5025_v28 }
  0xf7   :  { %v787_v30 = vpack.c.bf16 %v5192_v56, %v5187_v53 }
  0xf8   :  { %v5195_v58 = vpop.f32.mrf.mxu0 }
  0xf9   :  { %1455 = vmatpush1.bf16.msra.mxu1 %v783_v57  ;;  %v786_v33 = vpack.c.bf16 %v5195_v58, %v5190_v55 }
  0xfa   :  { %v4225_v59 = vpop.f32.mrf.mxu0  ;;  %1456 = vmatprep.subr.bf16.mxu1 %v5025_v28 }
  0xfc   :  { %v603_v61 = vpop.f32.mrf.mxu0 }
  0xfd   :  { %1457 = vmatpush1.bf16.msra.mxu1 %v782_v60  ;;  %v4428_v60 = vld [vmem:[#allocation2 + $0x84] ss:$16 sps:$4 sm:$0xff]  }
  0xfe   :  { %v4226_v62 = vpop.f32.mrf.mxu0  ;;  %1458 = vmatprep.subr.bf16.mxu1 %v5025_v28 }
  0xff   :  { %v789_v23 = vpack.c.bf16 %v4226_v62, %v4225_v59  ;;  %v4427_v59 = vld [vmem:[#allocation2 + $0x60] ss:$16 sps:$4 sm:$0xff]  }
 0x100   :  { %v606_v0 = vpop.f32.mrf.mxu0 }
 0x101   :  { %1459 = vmatpush1.bf16.msra.mxu1 %v781_v63  ;;  %v788_v26 = vpack.c.bf16 %v606_v0, %v603_v61 }
 0x102   :  { %v4229_v1 = vpop.f32.mrf.mxu0  ;;  %1460 = vmatprep.subr.bf16.mxu1 %v5025_v28 }
 0x104   :  { %v619_v3 = vpop.f32.mrf.mxu0 }
 0x105   :  { %1461 = vmatpush1.bf16.msra.mxu1 %v780_v2 }
 0x106   :  { %v4230_v4 = vpop.f32.mrf.mxu0  ;;  %1462 = vmatprep.subr.bf16.mxu1 %v5025_v28 }
 0x107   :  { %v791_v17 = vpack.c.bf16 %v4230_v4, %v4229_v1  ;;  %v4431_v4 = vld [vmem:[#allocation2 + $0xa4] ss:$16 sps:$4 sm:$0xff]  }
 0x108   :  { %v622_v6 = vpop.f32.mrf.mxu0 }
 0x109   :  { %1463 = vmatpush1.bf16.msra.mxu1 %v779_v5  ;;  %v790_v20 = vpack.c.bf16 %v622_v6, %v619_v3  ;;  %v4430_v3 = vld [vmem:[#allocation2 + $0x80] ss:$16 sps:$4 sm:$0xff]  }
 0x10a   :  { %v4233_v7 = vpop.f32.mrf.mxu0  ;;  %1464 = vmatprep.subr.bf16.mxu1 %v5025_v28 }
 0x10c   :  { %v635_v9 = vpop.f32.mrf.mxu0 }
 0x10d   :  { %1465 = vmatpush1.bf16.msra.mxu1 %v778_v8 }
 0x10e   :  { %v4234_v10 = vpop.f32.mrf.mxu0  ;;  %1466 = vmatprep.subr.bf16.mxu1 %v5025_v28 }
 0x10f   :  { %v793_v11 = vpack.c.bf16 %v4234_v10, %v4233_v7  ;;  %v4437_v10 = vld [vmem:[#allocation2 + $0xc4] ss:$16 sps:$4 sm:$0xff]  }
 0x110   :  { %v638_v12 = vpop.f32.mrf.mxu0 }
 0x111   :  { %1467 = vmatpush2.bf16.msra.mxu1 %v793_v11  ;;  %v792_v14 = vpack.c.bf16 %v638_v12, %v635_v9  ;;  %v4433_v9 = vld [vmem:[#allocation2 + $0xa0] ss:$16 sps:$4 sm:$0xff]  }
 0x112   :  { %v5203_v13 = vpop.f32.mrf.mxu0  ;;  %1468 = vmatprep.subr.bf16.mxu1 %v5025_v28 }
 0x114   :  { %v5206_v15 = vpop.f32.mrf.mxu0 }
 0x115   :  { %1469 = vmatpush2.bf16.msra.mxu1 %v792_v14  ;;  %v4443_v14 = vld [vmem:[#allocation2 + $0xe4] ss:$16 sps:$4 sm:$0xff]  }
 0x116   :  { %v5208_v16 = vpop.f32.mrf.mxu0  ;;  %1470 = vmatprep.subr.bf16.mxu1 %v5025_v28 }
 0x117   :  { %v795_v62 = vpack.c.bf16 %v5208_v16, %v5203_v13  ;;  %v4439_v13 = vld [vmem:[#allocation2 + $0xc0] ss:$16 sps:$4 sm:$0xff]  }
 0x118   :  { %v5211_v18 = vpop.f32.mrf.mxu0 }
 0x119   :  { %1471 = vmatpush2.bf16.msra.mxu1 %v791_v17  ;;  %v794_v1 = vpack.c.bf16 %v5211_v18, %v5206_v15  ;;  %v4445_v17 = vld [vmem:[#allocation2 + $0xe0] ss:$16 sps:$4 sm:$0xff]   ;;  %v4449_v18 = vld [vmem:[#allocation2 + $0x104] ss:$16 sps:$4 sm:$0xff]  }
 0x11a   :  { %v4241_v19 = vpop.f32.mrf.mxu0  ;;  %1472 = vmatprep.subr.bf16.mxu1 %v5025_v28 }
 0x11c   :  { %v5214_v21 = vpop.f32.mrf.mxu0 }
 0x11d   :  { %1473 = vmatpush2.bf16.msra.mxu1 %v790_v20 }
 0x11e   :  { %v4242_v22 = vpop.f32.mrf.mxu0  ;;  %1474 = vmatprep.subr.bf16.mxu1 %v5025_v28 }
 0x11f   :  { %v797_v54 = vpack.c.bf16 %v4242_v22, %v4241_v19  ;;  %v4451_v22 = vld [vmem:[#allocation2 + $0x100] ss:$16 sps:$4 sm:$0xff]  }
 0x120   :  { %v670_v24 = vpop.f32.mrf.mxu0 }
 0x121   :  { %1475 = vmatpush2.bf16.msra.mxu1 %v789_v23  ;;  %v796_v57 = vpack.c.bf16 %v670_v24, %v5214_v21  ;;  %v4434_v21 = vld [vmem:[#allocation2 + $0x8] ss:$16 sps:$4 sm:$0xff]   ;;  %v4440_v23 = vld [vmem:[#allocation2 + $0x2c] ss:$16 sps:$4 sm:$0xff]   ;;  %v4455_v24 = vld [vmem:[#allocation2 + $0x124] ss:$16 sps:$4 sm:$0xff]  }
 0x122   :  { %v4245_v25 = vpop.f32.mrf.mxu0  ;;  %1476 = vmatprep.subr.bf16.mxu1 %v5025_v28 }
 0x124   :  { %v683_v27 = vpop.f32.mrf.mxu0 }
 0x125   :  { %1477 = vmatpush2.bf16.msra.mxu1 %v788_v26  ;;  %v4457_v26 = vld [vmem:[#allocation2 + $0x120] ss:$16 sps:$4 sm:$0xff]  }
 0x126   :  { %v4246_v29 = vpop.f32.mrf.mxu0  ;;  %1478 = vmatprep.subr.bf16.mxu1 %v5025_v28 }
 0x127   :  { %v799_v46 = vpack.c.bf16 %v4246_v29, %v4245_v25  ;;  %v4442_v25 = vld [vmem:[#allocation2 + $0x28] ss:$16 sps:$4 sm:$0xff]   ;;  %v4461_v29 = vld [vmem:[#allocation2 + $0x144] ss:$16 sps:$4 sm:$0xff]  }
 0x128   :  { %v686_v31 = vpop.f32.mrf.mxu0 }
 0x129   :  { %1479 = vmatpush2.bf16.msra.mxu1 %v787_v30  ;;  %v798_v49 = vpack.c.bf16 %v686_v31, %v683_v27  ;;  %v4446_v27 = vld [vmem:[#allocation2 + $0x4c] ss:$16 sps:$4 sm:$0xff]   ;;  %v4448_v30 = vld [vmem:[#allocation2 + $0x48] ss:$16 sps:$4 sm:$0xff]   ;;  %v4463_v31 = vld [vmem:[#allocation2 + $0x140] ss:$16 sps:$4 sm:$0xff]  }
 0x12a   :  { %v4249_v32 = vpop.f32.mrf.mxu0  ;;  %1480 = vmatprep.subr.bf16.mxu1 %v5025_v28 }
 0x12c   :  { %v699_v34 = vpop.f32.mrf.mxu0 }
 0x12d   :  { %1481 = vmatpush2.bf16.msra.mxu1 %v786_v33  ;;  %v4467_v33 = vld [vmem:[#allocation2 + $0x164] ss:$16 sps:$4 sm:$0xff]  }
 0x12e   :  { %v4250_v37 = vpop.f32.mrf.mxu0 }
 0x12f   :  { %v801_v38 = vpack.c.bf16 %v4250_v37, %v4249_v32  ;;  %v4452_v32 = vld [vmem:[#allocation2 + $0x6c] ss:$16 sps:$4 sm:$0xff]   ;;  %v4473_v37 = vld [vmem:[#allocation2 + $0x184] ss:$16 sps:$4 sm:$0xff]  }
 0x130   :  { %v702_v39 = vpop.f32.mrf.mxu0  ;;  %1483 = vmatmul.mubr.bf16.vlgmr.msra.gmra.mxu1 %v4416_v35  ;;  %v4469_v35 = vld [vmem:[#allocation2 + $0x160] ss:$16 sps:$4 sm:$0xff]  }
 0x131   :  { %1740 = vmatpush1.bf16.msra.mxu0 %v801_v38  ;;  %1490 = vmatprep.mubr.bf16.mxu1 %v4419_v36  ;;  %v800_v41 = vpack.c.bf16 %v702_v39, %v699_v34  ;;  %v4454_v34 = vld [vmem:[#allocation2 + $0x68] ss:$16 sps:$4 sm:$0xff]   ;;  %v4458_v36 = vld [vmem:[#allocation2 + $0x8c] ss:$16 sps:$4 sm:$0xff]   ;;  %v4475_v39 = vld [vmem:[#allocation2 + $0x180] ss:$16 sps:$4 sm:$0xff]  }
 0x132   :  { %v5224_v40 = vpop.f32.mrf.mxu0  ;;  %1741 = vmatprep.subr.bf16.mxu0 %v5025_v28  ;;  %v4460_v38 = vld [vmem:[#allocation2 + $0x88] ss:$16 sps:$4 sm:$0xff]  }
 0x134   :  { %v5227_v42 = vpop.f32.mrf.mxu0 }
 0x135   :  { %1742 = vmatpush1.bf16.msra.mxu0 %v800_v41  ;;  %v4479_v41 = vld [vmem:[#allocation2 + $0x1a4] ss:$16 sps:$4 sm:$0xff]  }
 0x136   :  { %v5229_v45 = vpop.f32.mrf.mxu0  ;;  %1743 = vmatprep.subr.bf16.mxu0 %v5025_v28 }
 0x137   :  { %v803_v19 = vpack.c.bf16 %v5229_v45, %v5224_v40  ;;  %v4464_v40 = vld [vmem:[#allocation2 + $0xac] ss:$16 sps:$4 sm:$0xff]   ;;  %v4485_v45 = vld [vmem:[#allocation2 + $0x1c4] ss:$16 sps:$4 sm:$0xff]  }
 0x138   :  { %v5232_v47 = vpop.f32.mrf.mxu0  ;;  %1491 = vmatmul.mubr.bf16.gmra.mxu1 %v4421_v43  ;;  %v4481_v43 = vld [vmem:[#allocation2 + $0x1a0] ss:$16 sps:$4 sm:$0xff]  }
 0x139   :  { %1744 = vmatpush1.bf16.msra.mxu0 %v799_v46  ;;  %1498 = vmatprep.mubr.bf16.mxu1 %v4422_v44  ;;  %v802_v20 = vpack.c.bf16 %v5232_v47, %v5227_v42  ;;  %v4466_v42 = vld [vmem:[#allocation2 + $0xa8] ss:$16 sps:$4 sm:$0xff]   ;;  %v4470_v44 = vld [vmem:[#allocation2 + $0xcc] ss:$16 sps:$4 sm:$0xff]  }
 0x13a   :  { %v4257_v48 = vpop.f32.mrf.mxu0  ;;  %1745 = vmatprep.subr.bf16.mxu0 %v5025_v28  ;;  %v4566_v46 = vld [vmem:[%s6650_s3 + $0x38] sm:$0xff]  }
 0x13b   :  { %4267 = vmatprep.subr.bf16.mxu1 %v4566_v46  ;;  %v4472_v47 = vld [vmem:[#allocation2 + $0xc8] ss:$16 sps:$4 sm:$0xff]  }
 0x13c   :  { %v731_v50 = vpop.f32.mrf.mxu0  ;;  %4268 = vmatpush3.bf16.msra.mxu1 %v4566_v46 }
 0x13d   :  { %1746 = vmatpush1.bf16.msra.mxu0 %v798_v49  ;;  %v4476_v49 = vld [vmem:[#allocation2 + $0xec] ss:$16 sps:$4 sm:$0xff]  }
 0x13e   :  { %v4258_v53 = vpop.f32.mrf.mxu0  ;;  %1747 = vmatprep.subr.bf16.mxu0 %v5025_v28 }
 0x13f   :  { %v805_v15 = vpack.c.bf16 %v4258_v53, %v4257_v48  ;;  %v4487_v48 = vld [vmem:[#allocation2 + $0x1c0] ss:$16 sps:$4 sm:$0xff]  }
 0x140   :  { %v734_v55 = vpop.f32.mrf.mxu0  ;;  %1499 = vmatmul.mubr.bf16.gmra.mxu1 %v4424_v51  ;;  %v4576_v51 = vld [vmem:[%s6650_s3 + $0x30] sm:$0xff]  }
 0x141   :  { %1748 = vmatpush1.bf16.msra.mxu0 %v797_v54  ;;  %1506 = vmatprep.mubr.bf16.mxu1 %v4425_v52  ;;  %v804_v16 = vpack.c.bf16 %v734_v55, %v731_v50  ;;  %v4491_v50 = vld [vmem:[#allocation2 + $0x1e4] ss:$16 sps:$4 sm:$0xff]   ;;  %v4478_v52 = vld [vmem:[#allocation2 + $0xe8] ss:$16 sps:$4 sm:$0xff]   ;;  %v4493_v53 = vld [vmem:[#allocation2 + $0x1e0] ss:$16 sps:$4 sm:$0xff]  }
 0x142   :  { %v4261_v56 = vpop.f32.mrf.mxu0  ;;  %1749 = vmatprep.subr.bf16.mxu0 %v5025_v28  ;;  %4269 = vmatprep.subr.bf16.mxu1 %v4576_v51  ;;  %v4482_v54 = vld [vmem:[#allocation2 + $0x10c] ss:$16 sps:$4 sm:$0xff]   ;;  %v4497_v55 = vld [vmem:[#allocation2 + $0x204] ss:$16 sps:$4 sm:$0xff]  }
 0x143   :  { %4270 = vmatpush3.bf16.msra.mxu1 %v4576_v51 }
 0x144   :  { %v747_v58 = vpop.f32.mrf.mxu0 }
 0x145   :  { %1750 = vmatpush1.bf16.msra.mxu0 %v796_v57  ;;  %v4584_v57 = vld [vmem:[%s6650_s3 + $0x20] sm:$0xff]  }
 0x146   :  { %v4262_v61 = vpop.f32.mrf.mxu0  ;;  %1751 = vmatprep.subr.bf16.mxu0 %v5025_v28 }
 0x147   :  { %v807_v11 = vpack.c.bf16 %v4262_v61, %v4261_v56  ;;  %v4580_v56 = vld [vmem:[%s6650_s3 + $0x28] sm:$0xff]   ;;  %v4503_v61 = vld [vmem:[#allocation2 + $0x224] ss:$16 sps:$4 sm:$0xff]  }
 0x148   :  { %v750_v63 = vpop.f32.mrf.mxu0  ;;  %1507 = vmatmul.mubr.bf16.gmra.mxu1 %v4427_v59  ;;  %4271 = vmatprep.subr.bf16.mxu1 %v4580_v56  ;;  %v4499_v59 = vld [vmem:[#allocation2 + $0x200] ss:$16 sps:$4 sm:$0xff]  }
 0x149   :  { %1752 = vmatpush1.bf16.msra.mxu0 %v795_v62  ;;  %1514 = vmatprep.mubr.bf16.mxu1 %v4428_v60  ;;  %v806_v12 = vpack.c.bf16 %v750_v63, %v747_v58  ;;  %v4484_v58 = vld [vmem:[#allocation2 + $0x108] ss:$16 sps:$4 sm:$0xff]   ;;  %v4488_v60 = vld [vmem:[#allocation2 + $0x12c] ss:$16 sps:$4 sm:$0xff]  }
 0x14a   :  { %v4265_v0 = vpop.f32.mrf.mxu0  ;;  %1753 = vmatprep.subr.bf16.mxu0 %v5025_v28  ;;  %4272 = vmatpush3.bf16.msra.mxu1 %v4580_v56  ;;  %v4588_v62 = vld [vmem:[%s6650_s3 + $0x18] sm:$0xff]  }
 0x14b   :  { %4273 = vmatprep.subr.bf16.mxu1 %v4584_v57  ;;  %v4490_v63 = vld [vmem:[#allocation2 + $0x128] ss:$16 sps:$4 sm:$0xff]   ;;  %v4556_v56 = vld [vmem:[#allocation2 + $0x28c] ss:$16 sps:$4 sm:$0xff]  }
 0x14c   :  { %v763_v2 = vpop.f32.mrf.mxu0 }
 0x14d   :  { %1754 = vmatpush1.bf16.msra.mxu0 %v794_v1  ;;  %v4494_v1 = vld [vmem:[#allocation2 + $0x14c] ss:$16 sps:$4 sm:$0xff]  }
 0x14e   :  { %v4266_v5 = vpop.f32.mrf.mxu0  ;;  %1755 = vmatprep.subr.bf16.mxu0 %v5025_v28  ;;  %4274 = vmatpush3.bf16.msra.mxu1 %v4584_v57  ;;  %v4572_v57 = vld [vmem:[#allocation2 + $0x384] ss:$16 sps:$4 sm:$0xff]  }
 0x14f   :  { %v809_v6 = vpack.c.bf16 %v4266_v5, %v4265_v0  ;;  %4275 = vmatprep.subr.bf16.mxu1 %v4588_v62  ;;  %v4505_v0 = vld [vmem:[#allocation2 + $0x220] ss:$16 sps:$4 sm:$0xff]   ;;  %v4496_v5 = vld [vmem:[#allocation2 + $0x148] ss:$16 sps:$4 sm:$0xff]  }
 0x150   :  { %v766_v7 = vpop.f32.mrf.mxu0  ;;  %1515 = vmatmul.mubr.bf16.gmra.mxu1 %v4430_v3  ;;  %v4592_v3 = vld [vmem:[%s6650_s3 + $0x10] sm:$0xff]  }
 0x151   :  { %1756 = vmatpush2.bf16.msra.mxu0 %v809_v6  ;;  %1522 = vmatprep.mubr.bf16.mxu1 %v4431_v4  ;;  %v808_v8 = vpack.c.bf16 %v766_v7, %v763_v2  ;;  %v4509_v2 = vld [vmem:[#allocation2 + $0x244] ss:$16 sps:$4 sm:$0xff]   ;;  %v4596_v4 = vld [vmem:[%s6650_s3 + $0x8] sm:$0xff]   ;;  %v4511_v6 = vld [vmem:[#allocation2 + $0x240] ss:$16 sps:$4 sm:$0xff]  }
 0x152   :  { %1757 = vmatprep.subr.bf16.mxu0 %v5025_v28  ;;  %4276 = vmatpush3.bf16.msra.mxu1 %v4588_v62  ;;  %v4500_v7 = vld [vmem:[#allocation2 + $0x16c] ss:$16 sps:$4 sm:$0xff]  }
 0x153   :  { %4277 = vmatprep.subr.bf16.mxu1 %v4592_v3 }
 0x155   :  { %1758 = vmatpush2.bf16.msra.mxu0 %v808_v8  ;;  %v4515_v8 = vld [vmem:[#allocation2 + $0x264] ss:$16 sps:$4 sm:$0xff]  }
 0x156   :  { %1759 = vmatprep.subr.bf16.mxu0 %v5025_v28  ;;  %4278 = vmatpush3.bf16.msra.mxu1 %v4592_v3 }
 0x157   :  { %4279 = vmatprep.subr.bf16.mxu1 %v4596_v4 }
 0x158   :  { %1523 = vmatmul.mubr.bf16.gmra.mxu1 %v4433_v9  ;;  %v4600_v9 = vld [vmem:[%s6650_s3] sm:$0xff]  }
 0x159   :  { %1760 = vmatpush2.bf16.msra.mxu0 %v807_v11  ;;  %1530 = vmatprep.mubr.bf16.mxu1 %v4437_v10  ;;  %v4502_v10 = vld [vmem:[#allocation2 + $0x168] ss:$16 sps:$4 sm:$0xff]   ;;  %v4517_v11 = vld [vmem:[#allocation2 + $0x260] ss:$16 sps:$4 sm:$0xff]  }
 0x15a   :  { %1761 = vmatprep.subr.bf16.mxu0 %v5025_v28  ;;  %4280 = vmatpush3.bf16.msra.mxu1 %v4596_v4 }
 0x15b   :  { %4281 = vmatprep.subr.bf16.mxu1 %v4600_v9 }
 0x15d   :  { %1762 = vmatpush2.bf16.msra.mxu0 %v806_v12  ;;  %v4508_v12 = vld [vmem:[#allocation2 + $0x18c] ss:$16 sps:$4 sm:$0xff]  }
 0x15e   :  { %1763 = vmatprep.subr.bf16.mxu0 %v5025_v28  ;;  %4282 = vmatpush3.bf16.msra.mxu1 %v4600_v9  ;;  %v4587_v9 = vld [vmem:[#allocation2 + $0x3c4] ss:$16 sps:$4 sm:$0xff]  }
 0x15f   :  { %4347 = vmatprep.subr.bf16.mxu1 %v5025_v28 }
 0x160   :  { %1531 = vmatmul.mubr.bf16.gmra.mxu1 %v4439_v13  ;;  %v4521_v13 = vld [vmem:[#allocation2 + $0x284] ss:$16 sps:$4 sm:$0xff]  }
 0x161   :  { %1764 = vmatpush2.bf16.msra.mxu0 %v805_v15  ;;  %1538 = vmatprep.mubr.bf16.mxu1 %v4443_v14  ;;  %v4506_v14 = vld [vmem:[#allocation2 + $0x188] ss:$16 sps:$4 sm:$0xff]   ;;  %v4523_v15 = vld [vmem:[#allocation2 + $0x280] ss:$16 sps:$4 sm:$0xff]  }
 0x162   :  { %1765 = vmatprep.subr.bf16.mxu0 %v5025_v28 }
 0x165   :  { %1766 = vmatpush2.bf16.msra.mxu0 %v804_v16  ;;  %v4514_v16 = vld [vmem:[#allocation2 + $0x1ac] ss:$16 sps:$4 sm:$0xff]  }
 0x166   :  { %1767 = vmatprep.subr.bf16.mxu0 %v5025_v28 }
 0x168   :  { %1539 = vmatmul.mubr.bf16.gmra.mxu1 %v4445_v17  ;;  %v4527_v17 = vld [vmem:[#allocation2 + $0x2a4] ss:$16 sps:$4 sm:$0xff]  }
 0x169   :  { %1768 = vmatpush2.bf16.msra.mxu0 %v803_v19  ;;  %1546 = vmatprep.mubr.bf16.mxu1 %v4449_v18  ;;  %v4512_v18 = vld [vmem:[#allocation2 + $0x1a8] ss:$16 sps:$4 sm:$0xff]   ;;  %v4529_v19 = vld [vmem:[#allocation2 + $0x2a0] ss:$16 sps:$4 sm:$0xff]  }
 0x16a   :  { %1769 = vmatprep.subr.bf16.mxu0 %v5025_v28 }
 0x16d   :  { %1770 = vmatpush2.bf16.msra.mxu0 %v802_v20  ;;  %v4520_v20 = vld [vmem:[#allocation2 + $0x1cc] ss:$16 sps:$4 sm:$0xff]  }
 0x16e   :  { %2509 = vmatprep.subr.bf16.mxu0 %v5025_v28 }
 0x170   :  { %1772 = vmatmul.mubr.bf16.vlgmr.msra.gmra.mxu0 %v4434_v21  ;;  %1547 = vmatmul.mubr.bf16.gmra.mxu1 %v4451_v22  ;;  %v4533_v21 = vld [vmem:[#allocation2 + $0x2c4] ss:$16 sps:$4 sm:$0xff]   ;;  %v4518_v22 = vld [vmem:[#allocation2 + $0x1c8] ss:$16 sps:$4 sm:$0xff]  }
 0x171   :  { %1779 = vmatprep.mubr.bf16.mxu0 %v4440_v23  ;;  %1554 = vmatprep.mubr.bf16.mxu1 %v4455_v24  ;;  %v4535_v23 = vld [vmem:[#allocation2 + $0x2c0] ss:$16 sps:$4 sm:$0xff]   ;;  %v4526_v24 = vld [vmem:[#allocation2 + $0x1ec] ss:$16 sps:$4 sm:$0xff]  }
 0x178   :  { %1780 = vmatmul.mubr.bf16.gmra.mxu0 %v4442_v25  ;;  %1555 = vmatmul.mubr.bf16.gmra.mxu1 %v4457_v26  ;;  %v4539_v25 = vld [vmem:[#allocation2 + $0x2e4] ss:$16 sps:$4 sm:$0xff]   ;;  %v4524_v26 = vld [vmem:[#allocation2 + $0x1e8] ss:$16 sps:$4 sm:$0xff]  }
 0x179   :  { %1787 = vmatprep.mubr.bf16.mxu0 %v4446_v27  ;;  %1562 = vmatprep.mubr.bf16.mxu1 %v4461_v29  ;;  %v4541_v27 = vld [vmem:[#allocation2 + $0x2e0] ss:$16 sps:$4 sm:$0xff]   ;;  %v4532_v29 = vld [vmem:[#allocation2 + $0x20c] ss:$16 sps:$4 sm:$0xff]  }
 0x180   :  { %1788 = vmatmul.mubr.bf16.gmra.mxu0 %v4448_v30  ;;  %1563 = vmatmul.mubr.bf16.gmra.mxu1 %v4463_v31  ;;  %v4545_v30 = vld [vmem:[#allocation2 + $0x304] ss:$16 sps:$4 sm:$0xff]   ;;  %v4530_v31 = vld [vmem:[#allocation2 + $0x208] ss:$16 sps:$4 sm:$0xff]  }
 0x181   :  { %1795 = vmatprep.mubr.bf16.mxu0 %v4452_v32  ;;  %1570 = vmatprep.mubr.bf16.mxu1 %v4467_v33  ;;  %v4547_v32 = vld [vmem:[#allocation2 + $0x300] ss:$16 sps:$4 sm:$0xff]   ;;  %v4538_v33 = vld [vmem:[#allocation2 + $0x22c] ss:$16 sps:$4 sm:$0xff]  }
 0x188   :  { %1796 = vmatmul.mubr.bf16.gmra.mxu0 %v4454_v34  ;;  %1571 = vmatmul.mubr.bf16.gmra.mxu1 %v4469_v35  ;;  %v4551_v34 = vld [vmem:[#allocation2 + $0x324] ss:$16 sps:$4 sm:$0xff]  }
 0x189   :  { %1803 = vmatprep.mubr.bf16.mxu0 %v4458_v36  ;;  %1578 = vmatprep.mubr.bf16.mxu1 %v4473_v37  ;;  %v4536_v37 = vld [vmem:[#allocation2 + $0x228] ss:$16 sps:$4 sm:$0xff]  }
 0x190   :  { %1804 = vmatmul.mubr.bf16.gmra.mxu0 %v4460_v38  ;;  %1579 = vmatmul.mubr.bf16.gmra.mxu1 %v4475_v39  ;;  %v4553_v39 = vld [vmem:[#allocation2 + $0x320] ss:$16 sps:$4 sm:$0xff]  }
 0x191   :  { %1811 = vmatprep.mubr.bf16.mxu0 %v4464_v40  ;;  %1586 = vmatprep.mubr.bf16.mxu1 %v4479_v41  ;;  %v4544_v40 = vld [vmem:[#allocation2 + $0x24c] ss:$16 sps:$4 sm:$0xff]   ;;  %v4557_v41 = vld [vmem:[#allocation2 + $0x344] ss:$16 sps:$4 sm:$0xff]  }
 0x198   :  { %1812 = vmatmul.mubr.bf16.gmra.mxu0 %v4466_v42  ;;  %1587 = vmatmul.mubr.bf16.gmra.mxu1 %v4481_v43 }
 0x199   :  { %1819 = vmatprep.mubr.bf16.mxu0 %v4470_v44  ;;  %1594 = vmatprep.mubr.bf16.mxu1 %v4485_v45  ;;  %v4542_v45 = vld [vmem:[#allocation2 + $0x248] ss:$16 sps:$4 sm:$0xff]  }
 0x1a0   :  { %1820 = vmatmul.mubr.bf16.gmra.mxu0 %v4472_v47  ;;  %1595 = vmatmul.mubr.bf16.gmra.mxu1 %v4487_v48  ;;  %v4559_v47 = vld [vmem:[#allocation2 + $0x340] ss:$16 sps:$4 sm:$0xff]   ;;  %v4550_v48 = vld [vmem:[#allocation2 + $0x26c] ss:$16 sps:$4 sm:$0xff]  }
 0x1a1   :  { %1827 = vmatprep.mubr.bf16.mxu0 %v4476_v49  ;;  %1602 = vmatprep.mubr.bf16.mxu1 %v4491_v50  ;;  %v4563_v49 = vld [vmem:[#allocation2 + $0x364] ss:$16 sps:$4 sm:$0xff]  }
 0x1a8   :  { %1828 = vmatmul.mubr.bf16.gmra.mxu0 %v4478_v52  ;;  %1603 = vmatmul.mubr.bf16.gmra.mxu1 %v4493_v53  ;;  %v4548_v53 = vld [vmem:[#allocation2 + $0x268] ss:$16 sps:$4 sm:$0xff]  }
 0x1a9   :  { %1835 = vmatprep.mubr.bf16.mxu0 %v4482_v54  ;;  %1610 = vmatprep.mubr.bf16.mxu1 %v4497_v55  ;;  %v4565_v55 = vld [vmem:[#allocation2 + $0x360] ss:$16 sps:$4 sm:$0xff]  }
 0x1b0   :  { %1836 = vmatmul.mubr.bf16.gmra.mxu0 %v4484_v58  ;;  %1611 = vmatmul.mubr.bf16.gmra.mxu1 %v4499_v59 }
 0x1b1   :  { %1843 = vmatprep.mubr.bf16.mxu0 %v4488_v60  ;;  %1618 = vmatprep.mubr.bf16.mxu1 %v4503_v61  ;;  %v4554_v61 = vld [vmem:[#allocation2 + $0x288] ss:$16 sps:$4 sm:$0xff]  }
 0x1b8   :  { %1844 = vmatmul.mubr.bf16.gmra.mxu0 %v4490_v63  ;;  %1619 = vmatmul.mubr.bf16.gmra.mxu1 %v4505_v0  ;;  %v4570_v63 = vld [vmem:[#allocation2 + $0x380] ss:$16 sps:$4 sm:$0xff]   ;;  %v4562_v0 = vld [vmem:[#allocation2 + $0x2ac] ss:$16 sps:$4 sm:$0xff]  }
 0x1b9   :  { %1851 = vmatprep.mubr.bf16.mxu0 %v4494_v1  ;;  %1626 = vmatprep.mubr.bf16.mxu1 %v4509_v2  ;;  %v4579_v1 = vld [vmem:[#allocation2 + $0x3a4] ss:$16 sps:$4 sm:$0xff]  }
 0x1c0   :  { %1852 = vmatmul.mubr.bf16.gmra.mxu0 %v4496_v5  ;;  %1627 = vmatmul.mubr.bf16.gmra.mxu1 %v4511_v6  ;;  %v4560_v5 = vld [vmem:[#allocation2 + $0x2a8] ss:$16 sps:$4 sm:$0xff]  }
 0x1c1   :  { %1859 = vmatprep.mubr.bf16.mxu0 %v4500_v7  ;;  %1634 = vmatprep.mubr.bf16.mxu1 %v4515_v8  ;;  %v4577_v7 = vld [vmem:[#allocation2 + $0x3a0] ss:$16 sps:$4 sm:$0xff]   ;;  %v4569_v8 = vld [vmem:[#allocation2 + $0x2cc] ss:$16 sps:$4 sm:$0xff]  }
 0x1c8   :  { %1860 = vmatmul.mubr.bf16.gmra.mxu0 %v4502_v10  ;;  %1635 = vmatmul.mubr.bf16.gmra.mxu1 %v4517_v11 }
 0x1c9   :  { %1867 = vmatprep.mubr.bf16.mxu0 %v4508_v12  ;;  %1642 = vmatprep.mubr.bf16.mxu1 %v4521_v13  ;;  %v4567_v13 = vld [vmem:[#allocation2 + $0x2c8] ss:$16 sps:$4 sm:$0xff]  }
 0x1d0   :  { %1868 = vmatmul.mubr.bf16.gmra.mxu0 %v4506_v14  ;;  %1643 = vmatmul.mubr.bf16.gmra.mxu1 %v4523_v15  ;;  %v4585_v15 = vld [vmem:[#allocation2 + $0x3c0] ss:$16 sps:$4 sm:$0xff]  }
 0x1d1   :  { %1875 = vmatprep.mubr.bf16.mxu0 %v4514_v16  ;;  %1650 = vmatprep.mubr.bf16.mxu1 %v4527_v17  ;;  %v4575_v16 = vld [vmem:[#allocation2 + $0x2ec] ss:$16 sps:$4 sm:$0xff]   ;;  %v4595_v17 = vld [vmem:[#allocation2 + $0x3e4] ss:$16 sps:$4 sm:$0xff]  }
 0x1d8   :  { %1876 = vmatmul.mubr.bf16.gmra.mxu0 %v4512_v18  ;;  %1651 = vmatmul.mubr.bf16.gmra.mxu1 %v4529_v19 }
 0x1d9   :  { %1883 = vmatprep.mubr.bf16.mxu0 %v4520_v20  ;;  %1658 = vmatprep.mubr.bf16.mxu1 %v4533_v21  ;;  %v4573_v21 = vld [vmem:[#allocation2 + $0x2e8] ss:$16 sps:$4 sm:$0xff]  }
 0x1e0   :  { %1884 = vmatmul.mubr.bf16.gmra.mxu0 %v4518_v22  ;;  %1659 = vmatmul.mubr.bf16.gmra.mxu1 %v4535_v23  ;;  %v4593_v23 = vld [vmem:[#allocation2 + $0x3e0] ss:$16 sps:$4 sm:$0xff]  }
 0x1e1   :  { %1891 = vmatprep.mubr.bf16.mxu0 %v4526_v24  ;;  %1666 = vmatprep.mubr.bf16.mxu1 %v4539_v25  ;;  %v4583_v24 = vld [vmem:[#allocation2 + $0x30c] ss:$16 sps:$4 sm:$0xff]  }
 0x1e8   :  { %1892 = vmatmul.mubr.bf16.gmra.mxu0 %v4524_v26  ;;  %1667 = vmatmul.mubr.bf16.gmra.mxu1 %v4541_v27 }
 0x1e9   :  { %1899 = vmatprep.mubr.bf16.mxu0 %v4532_v29  ;;  %1674 = vmatprep.mubr.bf16.mxu1 %v4545_v30  ;;  %v4581_v29 = vld [vmem:[#allocation2 + $0x308] ss:$16 sps:$4 sm:$0xff]  }
 0x1f0   :  { %1900 = vmatmul.mubr.bf16.gmra.mxu0 %v4530_v31  ;;  %1675 = vmatmul.mubr.bf16.gmra.mxu1 %v4547_v32  ;;  %v5282_v35 = vpop.f32.mrf.mxu1  ;;  %v4591_v31 = vld [vmem:[#allocation2 + $0x32c] ss:$16 sps:$4 sm:$0xff]  }
 0x1f1   :  { %1907 = vmatprep.mubr.bf16.mxu0 %v4538_v33  ;;  %1682 = vmatprep.mubr.bf16.mxu1 %v4551_v34 }
 0x1f2   :  { %v1486_v36 = vpop.f32.mrf.mxu1 }
 0x1f4   :  { %v5284_v38 = vpop.f32.mrf.mxu1 }
 0x1f6   :  { %v1489_v42 = vpop.f32.mrf.mxu1 }
 0x1f8   :  { %1908 = vmatmul.mubr.bf16.gmra.mxu0 %v4536_v37  ;;  %1683 = vmatmul.mubr.bf16.gmra.mxu1 %v4553_v39  ;;  %v5286_v43 = vpop.f32.mrf.mxu1 }
 0x1f9   :  { %1915 = vmatprep.mubr.bf16.mxu0 %v4544_v40  ;;  %1690 = vmatprep.mubr.bf16.mxu1 %v4557_v41  ;;  %v4589_v41 = vld [vmem:[#allocation2 + $0x328] ss:$16 sps:$4 sm:$0xff]  }
 0x1fa   :  { %v1494_v44 = vpop.f32.mrf.mxu1 }
 0x1fc   :  { %v5288_v46 = vpop.f32.mrf.mxu1 }
 0x1fe   :  { %v1497_v50 = vpop.f32.mrf.mxu1 }
 0x200   :  { %1916 = vmatmul.mubr.bf16.gmra.mxu0 %v4542_v45  ;;  %1691 = vmatmul.mubr.bf16.gmra.mxu1 %v4559_v47  ;;  %v5290_v51 = vpop.f32.mrf.mxu1  ;;  %v4599_v45 = vld [vmem:[#allocation2 + $0x34c] ss:$16 sps:$4 sm:$0xff]  }
 0x201   :  { %1923 = vmatprep.mubr.bf16.mxu0 %v4550_v48  ;;  %1698 = vmatprep.mubr.bf16.mxu1 %v4563_v49 }
 0x202   :  { %v1502_v52 = vpop.f32.mrf.mxu1 }
 0x204   :  { %v5292_v54 = vpop.f32.mrf.mxu1 }
 0x206   :  { %v1505_v58 = vpop.f32.mrf.mxu1 }
 0x208   :  { %1924 = vmatmul.mubr.bf16.gmra.mxu0 %v4548_v53  ;;  %1699 = vmatmul.mubr.bf16.gmra.mxu1 %v4565_v55  ;;  %v5294_v59 = vpop.f32.mrf.mxu1 }
 0x209   :  { %1931 = vmatprep.mubr.bf16.mxu0 %v4556_v56  ;;  %1706 = vmatprep.mubr.bf16.mxu1 %v4572_v57 }
 0x20a   :  { %v1510_v60 = vpop.f32.mrf.mxu1 }
 0x20b   :  { %v4597_v60 = vld [vmem:[#allocation2 + $0x348] ss:$16 sps:$4 sm:$0xff]  }
 0x20c   :  { %v5296_v62 = vpop.f32.mrf.mxu1 }
 0x20e   :  { %v1513_v2 = vpop.f32.mrf.mxu1 }
 0x210   :  { %1932 = vmatmul.mubr.bf16.gmra.mxu0 %v4554_v61  ;;  %1707 = vmatmul.mubr.bf16.gmra.mxu1 %v4570_v63  ;;  %v5298_v3 = vpop.f32.mrf.mxu1  ;;  %v4603_v63 = vld [vmem:[#allocation2 + $0x36c] ss:$16 sps:$4 sm:$0xff]  }
 0x211   :  { %1939 = vmatprep.mubr.bf16.mxu0 %v4562_v0  ;;  %1714 = vmatprep.mubr.bf16.mxu1 %v4579_v1 }
 0x212   :  { %v1518_v4 = vpop.f32.mrf.mxu1 }
 0x214   :  { %v5300_v6 = vpop.f32.mrf.mxu1 }
 0x216   :  { %v1521_v10 = vpop.f32.mrf.mxu1 }
 0x218   :  { %1940 = vmatmul.mubr.bf16.gmra.mxu0 %v4560_v5  ;;  %1715 = vmatmul.mubr.bf16.gmra.mxu1 %v4577_v7  ;;  %v5302_v11 = vpop.f32.mrf.mxu1 }
 0x219   :  { %1947 = vmatprep.mubr.bf16.mxu0 %v4569_v8  ;;  %1722 = vmatprep.mubr.bf16.mxu1 %v4587_v9 }
 0x21a   :  { %v1526_v12 = vpop.f32.mrf.mxu1 }
 0x21c   :  { %v5304_v14 = vpop.f32.mrf.mxu1 }
 0x21e   :  { %v1529_v18 = vpop.f32.mrf.mxu1 }
 0x220   :  { %1948 = vmatmul.mubr.bf16.gmra.mxu0 %v4567_v13  ;;  %1723 = vmatmul.mubr.bf16.gmra.mxu1 %v4585_v15  ;;  %v5306_v19 = vpop.f32.mrf.mxu1  ;;  %v4601_v13 = vld [vmem:[#allocation2 + $0x368] ss:$16 sps:$4 sm:$0xff]  }
 0x221   :  { %1955 = vmatprep.mubr.bf16.mxu0 %v4575_v16  ;;  %1730 = vmatprep.mubr.bf16.mxu1 %v4595_v17  ;;  %v4606_v16 = vld [vmem:[#allocation2 + $0x38c] ss:$16 sps:$4 sm:$0xff]  }
 0x222   :  { %v1534_v20 = vpop.f32.mrf.mxu1 }
 0x224   :  { %v5308_v22 = vpop.f32.mrf.mxu1 }
 0x226   :  { %v1537_v25 = vpop.f32.mrf.mxu1 }
 0x228   :  { %1956 = vmatmul.mubr.bf16.gmra.mxu0 %v4573_v21  ;;  %1731 = vmatmul.mubr.bf16.gmra.mxu1 %v4593_v23  ;;  %v5310_v26 = vpop.f32.mrf.mxu1 }
 0x229   :  { %1963 = vmatprep.mubr.bf16.mxu0 %v4583_v24 }
 0x22a   :  { %v1542_v27 = vpop.f32.mrf.mxu1 }
 0x22c   :  { %v5312_v30 = vpop.f32.mrf.mxu1 }
 0x22e   :  { %v1545_v32 = vpop.f32.mrf.mxu1 }
 0x22f   :  { %v4604_v32 = vld [vmem:[#allocation2 + $0x388] ss:$16 sps:$4 sm:$0xff]  }
 0x230   :  { %v1773_v33 = vpop.f32.mrf.mxu0  ;;  %1964 = vmatmul.mubr.bf16.gmra.mxu0 %v4581_v29  ;;  %v5314_v34 = vpop.f32.mrf.mxu1 }
 0x231   :  { %1971 = vmatprep.mubr.bf16.mxu0 %v4591_v31  ;;  %v1774_v39 = vadd.f32 %v1773_v33, %v5282_v35 }
 0x232   :  { %v1775_v36 = vpop.f32.mrf.mxu0  ;;  %v1550_v37 = vpop.f32.mrf.mxu1 }
 0x233   :  { %v2028_v49 = vmax.f32 %v1774_v39, 0.0  ;;  %v4609_v36 = vld [vmem:[#allocation2 + $0x3ac] ss:$16 sps:$4 sm:$0xff]  }
 0x234   :  { %v1776_v40 = vpop.f32.mrf.mxu0  ;;  %v5317_v42 = vpop.f32.mrf.mxu1 }
 0x235   :  { %v1777_v44 = vadd.f32 %v1776_v40, %v5284_v38 }
 0x236   :  { %v1778_v47 = vpop.f32.mrf.mxu0  ;;  %v1553_v48 = vpop.f32.mrf.mxu1 }
 0x237   :  { %v2029_v50 = vmax.f32 %v1777_v44, 0.0 }
 0x238   :  { %v1781_v52 = vpop.f32.mrf.mxu0  ;;  %1972 = vmatmul.mubr.bf16.gmra.mxu0 %v4589_v41  ;;  %v5320_v53 = vpop.f32.mrf.mxu1 }
 0x239   :  { %v2092_v55 = vpack.c.bf16 %v2029_v50, %v2028_v49  ;;  %1979 = vmatprep.mubr.bf16.mxu0 %v4599_v45  ;;  %v1782_v35 = vadd.f32 %v1781_v52, %v5286_v43  ;;  %v4607_v52 = vld [vmem:[#allocation2 + $0x3a8] ss:$16 sps:$4 sm:$0xff]  }
 0x23a   :  { %v1783_v56 = vpop.f32.mrf.mxu0  ;;  %v1558_v57 = vpop.f32.mrf.mxu1 }
 0x23b   :  { %4283 = vmatprep.mubr.bf16.mxu1 %v2092_v55  ;;  %v2030_v2 = vmax.f32 %v1782_v35, 0.0  ;;  %v4612_v56 = vld [vmem:[#allocation2 + $0x3cc] ss:$16 sps:$4 sm:$0xff]  }
 0x23c   :  { %v1784_v58 = vpop.f32.mrf.mxu0  ;;  %v5323_v61 = vpop.f32.mrf.mxu1 }
 0x23d   :  { %v1785_v38 = vadd.f32 %v1784_v58, %v5288_v46 }
 0x23e   :  { %v1786_v0 = vpop.f32.mrf.mxu0  ;;  %v1561_v1 = vpop.f32.mrf.mxu1 }
 0x23f   :  { %v2031_v4 = vmax.f32 %v1785_v38, 0.0 }
 0x240   :  { %v1789_v5 = vpop.f32.mrf.mxu0  ;;  %1980 = vmatmul.mubr.bf16.gmra.mxu0 %v4597_v60  ;;  %v5326_v7 = vpop.f32.mrf.mxu1 }
 0x241   :  { %v2093_v8 = vpack.c.bf16 %v2031_v4, %v2030_v2  ;;  %1987 = vmatprep.mubr.bf16.mxu0 %v4603_v63  ;;  %v1790_v10 = vadd.f32 %v1789_v5, %v5290_v51  ;;  %v4610_v5 = vld [vmem:[#allocation2 + $0x3c8] ss:$16 sps:$4 sm:$0xff]  }
 0x242   :  { %v1791_v9 = vpop.f32.mrf.mxu0  ;;  %v1566_v43 = vpop.f32.mrf.mxu1 }
 0x243   :  { %4284 = vmatmul.mubr.bf16.vlgmr.msra.gmra.mxu1 %v2093_v8  ;;  %v2032_v20 = vmax.f32 %v1790_v10, 0.0  ;;  %v4615_v9 = vld [vmem:[#allocation2 + $0x3ec] ss:$16 sps:$4 sm:$0xff]  }
 0x244   :  { %v1792_v12 = vpop.f32.mrf.mxu0  ;;  %v5329_v15 = vpop.f32.mrf.mxu1 }
 0x245   :  { %v1793_v46 = vadd.f32 %v1792_v12, %v5292_v54 }
 0x246   :  { %v1794_v17 = vpop.f32.mrf.mxu0  ;;  %v1569_v18 = vpop.f32.mrf.mxu1 }
 0x247   :  { %v2033_v21 = vmax.f32 %v1793_v46, 0.0 }
 0x248   :  { %v1797_v23 = vpop.f32.mrf.mxu0  ;;  %1988 = vmatmul.mubr.bf16.gmra.mxu0 %v4601_v13  ;;  %v5332_v24 = vpop.f32.mrf.mxu1 }
 0x249   :  { %v2094_v25 = vpack.c.bf16 %v2033_v21, %v2032_v20  ;;  %1995 = vmatprep.mubr.bf16.mxu0 %v4606_v16  ;;  %v1798_v29 = vadd.f32 %v1797_v23, %v5294_v59  ;;  %v4613_v23 = vld [vmem:[#allocation2 + $0x3e8] ss:$16 sps:$4 sm:$0xff]  }
 0x24a   :  { %v1799_v27 = vpop.f32.mrf.mxu0  ;;  %v1574_v51 = vpop.f32.mrf.mxu1 }
 0x24b   :  { %4287 = vmatprep.mubr.bf16.mxu1 %v2094_v25  ;;  %v2034_v40 = vmax.f32 %v1798_v29, 0.0 }
 0x24c   :  { %v1800_v31 = vpop.f32.mrf.mxu0  ;;  %v5335_v33 = vpop.f32.mrf.mxu1 }
 0x24d   :  { %v1801_v54 = vadd.f32 %v1800_v31, %v5296_v62 }
 0x24e   :  { %v1802_v37 = vpop.f32.mrf.mxu0  ;;  %v1577_v39 = vpop.f32.mrf.mxu1 }
 0x24f   :  { %v2035_v41 = vmax.f32 %v1801_v54, 0.0  ;;  %v4872_v37 = vld [vmem:[#allocation2 + $0x4] ss:$16 sps:$4 sm:$0xff]  }
 0x250   :  { %v1805_v44 = vpop.f32.mrf.mxu0  ;;  %1996 = vmatmul.mubr.bf16.gmra.mxu0 %v4604_v32  ;;  %v5338_v45 = vpop.f32.mrf.mxu1 }
 0x251   :  { %v2095_v47 = vpack.c.bf16 %v2035_v41, %v2034_v40  ;;  %2003 = vmatprep.mubr.bf16.mxu0 %v4609_v36  ;;  %v1806_v49 = vadd.f32 %v1805_v44, %v5298_v3 }
 0x252   :  { %v1807_v48 = vpop.f32.mrf.mxu0  ;;  %v1582_v59 = vpop.f32.mrf.mxu1 }
 0x253   :  { %4288 = vmatmul.mubr.bf16.gmra.mxu1 %v2095_v47  ;;  %v2036_v58 = vmax.f32 %v1806_v49, 0.0 }
 0x254   :  { %v1808_v50 = vpop.f32.mrf.mxu0  ;;  %v5341_v55 = vpop.f32.mrf.mxu1 }
 0x255   :  { %v1809_v62 = vadd.f32 %v1808_v50, %v5300_v6 }
 0x256   :  { %v1810_v57 = vpop.f32.mrf.mxu0  ;;  %v1585_v35 = vpop.f32.mrf.mxu1 }
 0x257   :  { %v2037_v60 = vmax.f32 %v1809_v62, 0.0 }
 0x258   :  { %v1813_v38 = vpop.f32.mrf.mxu0  ;;  %2004 = vmatmul.mubr.bf16.gmra.mxu0 %v4607_v52  ;;  %v5344_v63 = vpop.f32.mrf.mxu1 }
 0x259   :  { %v2096_v0 = vpack.c.bf16 %v2037_v60, %v2036_v58  ;;  %2011 = vmatprep.mubr.bf16.mxu0 %v4612_v56  ;;  %v1814_v2 = vadd.f32 %v1813_v38, %v5302_v11 }
 0x25a   :  { %v1815_v1 = vpop.f32.mrf.mxu0  ;;  %v1590_v3 = vpop.f32.mrf.mxu1 }
 0x25b   :  { %4291 = vmatprep.mubr.bf16.mxu1 %v2096_v0  ;;  %v2038_v12 = vmax.f32 %v1814_v2, 0.0 }
 0x25c   :  { %v1816_v4 = vpop.f32.mrf.mxu0  ;;  %v5347_v8 = vpop.f32.mrf.mxu1 }
 0x25d   :  { %v1817_v6 = vadd.f32 %v1816_v4, %v5304_v14 }
 0x25e   :  { %v1818_v43 = vpop.f32.mrf.mxu0  ;;  %v1593_v10 = vpop.f32.mrf.mxu1 }
 0x25f   :  { %v2039_v13 = vmax.f32 %v1817_v6, 0.0 }
 0x260   :  { %v1821_v46 = vpop.f32.mrf.mxu0  ;;  %2012 = vmatmul.mubr.bf16.gmra.mxu0 %v4610_v5  ;;  %v5350_v16 = vpop.f32.mrf.mxu1 }
 0x261   :  { %v2097_v17 = vpack.c.bf16 %v2039_v13, %v2038_v12  ;;  %2019 = vmatprep.mubr.bf16.mxu0 %v4615_v9  ;;  %v1822_v20 = vadd.f32 %v1821_v46, %v5306_v19 }
 0x262   :  { %v1823_v18 = vpop.f32.mrf.mxu0  ;;  %v1598_v11 = vpop.f32.mrf.mxu1 }
 0x263   :  { %4292 = vmatmul.mubr.bf16.gmra.mxu1 %v2097_v17  ;;  %v2040_v29 = vmax.f32 %v1822_v20, 0.0 }
 0x264   :  { %v1824_v21 = vpop.f32.mrf.mxu0  ;;  %v5353_v25 = vpop.f32.mrf.mxu1 }
 0x265   :  { %v1825_v14 = vadd.f32 %v1824_v21, %v5308_v22 }
 0x266   :  { %v1826_v27 = vpop.f32.mrf.mxu0  ;;  %v1601_v51 = vpop.f32.mrf.mxu1 }
 0x267   :  { %v2041_v31 = vmax.f32 %v1825_v14, 0.0 }
 0x268   :  { %v1829_v32 = vpop.f32.mrf.mxu0  ;;  %2020 = vmatmul.mubr.bf16.gmra.mxu0 %v4613_v23  ;;  %v5356_v54 = vpop.f32.mrf.mxu1 }
 0x269   :  { %v2098_v36 = vpack.c.bf16 %v2041_v31, %v2040_v29  ;;  %2541 = vmatprep.mubr.bf16.mxu0 %v4872_v37  ;;  %v1830_v40 = vadd.f32 %v1829_v32, %v5310_v26 }
 0x26a   :  { %v1831_v39 = vpop.f32.mrf.mxu0  ;;  %v1606_v19 = vpop.f32.mrf.mxu1 }
 0x26b   :  { %4295 = vmatprep.mubr.bf16.mxu1 %v2098_v36  ;;  %v2042_v59 = vmax.f32 %v1830_v40, 0.0 }
 0x26c   :  { %v1832_v41 = vpop.f32.mrf.mxu0  ;;  %v5359_v44 = vpop.f32.mrf.mxu1 }
 0x26d   :  { %v1833_v22 = vadd.f32 %v1832_v41, %v5312_v30 }
 0x26e   :  { %v1834_v47 = vpop.f32.mrf.mxu0  ;;  %v1609_v48 = vpop.f32.mrf.mxu1 }
 0x26f   :  { %v2043_v49 = vmax.f32 %v1833_v22, 0.0 }
 0x270   :  { %v1837_v50 = vpop.f32.mrf.mxu0  ;;  %v5362_v52 = vpop.f32.mrf.mxu1 }
 0x271   :  { %v2099_v62 = vpack.c.bf16 %v2043_v49, %v2042_v59  ;;  %v1838_v35 = vadd.f32 %v1837_v50, %v5314_v34 }
 0x272   :  { %v1839_v56 = vpop.f32.mrf.mxu0  ;;  %v1614_v57 = vpop.f32.mrf.mxu1 }
 0x273   :  { %4296 = vmatmul.mubr.bf16.gmra.mxu1 %v2099_v62  ;;  %v2044_v0 = vmax.f32 %v1838_v35, 0.0 }
 0x274   :  { %v1840_v26 = vpop.f32.mrf.mxu0  ;;  %v5365_v58 = vpop.f32.mrf.mxu1 }
 0x275   :  { %v1841_v60 = vadd.f32 %v1840_v26, %v5317_v42 }
 0x276   :  { %v1842_v38 = vpop.f32.mrf.mxu0  ;;  %v1617_v30 = vpop.f32.mrf.mxu1 }
 0x277   :  { %v2045_v1 = vmax.f32 %v1841_v60, 0.0 }
 0x278   :  { %v1845_v3 = vpop.f32.mrf.mxu0  ;;  %v5368_v2 = vpop.f32.mrf.mxu1 }
 0x279   :  { %v2100_v4 = vpack.c.bf16 %v2045_v1, %v2044_v0  ;;  %v1846_v9 = vadd.f32 %v1845_v3, %v5320_v53 }
 0x27a   :  { %v1847_v5 = vpop.f32.mrf.mxu0  ;;  %v1622_v6 = vpop.f32.mrf.mxu1 }
 0x27b   :  { %4299 = vmatprep.mubr.bf16.mxu1 %v2100_v4  ;;  %v2046_v13 = vmax.f32 %v1846_v9, 0.0 }
 0x27c   :  { %v1848_v34 = vpop.f32.mrf.mxu0  ;;  %v5371_v43 = vpop.f32.mrf.mxu1 }
 0x27d   :  { %v1849_v10 = vadd.f32 %v1848_v34, %v5323_v61 }
 0x27e   :  { %v1850_v12 = vpop.f32.mrf.mxu0  ;;  %v1625_v42 = vpop.f32.mrf.mxu1 }
 0x27f   :  { %v2047_v46 = vmax.f32 %v1849_v10, 0.0 }
 0x280   :  { %v1853_v17 = vpop.f32.mrf.mxu0  ;;  %v5374_v18 = vpop.f32.mrf.mxu1 }
 0x281   :  { %v2101_v11 = vpack.c.bf16 %v2047_v46, %v2046_v13  ;;  %v1854_v23 = vadd.f32 %v1853_v17, %v5326_v7 }
 0x282   :  { %v1855_v20 = vpop.f32.mrf.mxu0  ;;  %v1630_v21 = vpop.f32.mrf.mxu1 }
 0x283   :  { %4300 = vmatmul.mubr.bf16.gmra.mxu1 %v2101_v11  ;;  %v2048_v29 = vmax.f32 %v1854_v23, 0.0 }
 0x284   :  { %v1856_v53 = vpop.f32.mrf.mxu0  ;;  %v5377_v14 = vpop.f32.mrf.mxu1 }
 0x285   :  { %v1857_v27 = vadd.f32 %v1856_v53, %v5329_v15 }
 0x286   :  { %v1858_v51 = vpop.f32.mrf.mxu0  ;;  %v1633_v61 = vpop.f32.mrf.mxu1 }
 0x287   :  { %v2049_v31 = vmax.f32 %v1857_v27, 0.0 }
 0x288   :  { %v1861_v32 = vpop.f32.mrf.mxu0  ;;  %v5380_v36 = vpop.f32.mrf.mxu1 }
 0x289   :  { %v2102_v37 = vpack.c.bf16 %v2049_v31, %v2048_v29  ;;  %v1862_v40 = vadd.f32 %v1861_v32, %v5332_v24 }
 0x28a   :  { %v1863_v39 = vpop.f32.mrf.mxu0  ;;  %v1638_v19 = vpop.f32.mrf.mxu1 }
 0x28b   :  { %4303 = vmatprep.mubr.bf16.mxu1 %v2102_v37  ;;  %v2050_v48 = vmax.f32 %v1862_v40, 0.0 }
 0x28c   :  { %v1864_v7 = vpop.f32.mrf.mxu0  ;;  %v5383_v41 = vpop.f32.mrf.mxu1 }
 0x28d   :  { %v1865_v22 = vadd.f32 %v1864_v7, %v5335_v33 }
 0x28e   :  { %v1866_v47 = vpop.f32.mrf.mxu0  ;;  %v1641_v15 = vpop.f32.mrf.mxu1 }
 0x28f   :  { %v2051_v59 = vmax.f32 %v1865_v22, 0.0 }
 0x290   :  { %v1869_v49 = vpop.f32.mrf.mxu0  ;;  %v5386_v50 = vpop.f32.mrf.mxu1 }
 0x291   :  { %v2103_v62 = vpack.c.bf16 %v2051_v59, %v2050_v48  ;;  %v1870_v35 = vadd.f32 %v1869_v49, %v5338_v45 }
 0x292   :  { %v1871_v56 = vpop.f32.mrf.mxu0  ;;  %v1646_v57 = vpop.f32.mrf.mxu1 }
 0x293   :  { %4304 = vmatmul.mubr.bf16.gmra.mxu1 %v2103_v62  ;;  %v2052_v30 = vmax.f32 %v1870_v35, 0.0 }
 0x294   :  { %v1872_v24 = vpop.f32.mrf.mxu0  ;;  %v5389_v26 = vpop.f32.mrf.mxu1 }
 0x295   :  { %v1873_v60 = vadd.f32 %v1872_v24, %v5341_v55 }
 0x296   :  { %v1874_v38 = vpop.f32.mrf.mxu0  ;;  %v1649_v33 = vpop.f32.mrf.mxu1 }
 0x297   :  { %v2053_v0 = vmax.f32 %v1873_v60, 0.0 }
 0x298   :  { %v1877_v1 = vpop.f32.mrf.mxu0  ;;  %v5392_v3 = vpop.f32.mrf.mxu1 }
 0x299   :  { %v2104_v4 = vpack.c.bf16 %v2053_v0, %v2052_v30  ;;  %v1878_v9 = vadd.f32 %v1877_v1, %v5344_v63 }
 0x29a   :  { %v1879_v5 = vpop.f32.mrf.mxu0  ;;  %v1654_v6 = vpop.f32.mrf.mxu1 }
 0x29b   :  { %4307 = vmatprep.mubr.bf16.mxu1 %v2104_v4  ;;  %v2054_v42 = vmax.f32 %v1878_v9, 0.0 }
 0x29c   :  { %v1880_v45 = vpop.f32.mrf.mxu0  ;;  %v5395_v34 = vpop.f32.mrf.mxu1 }
 0x29d   :  { %v1881_v10 = vadd.f32 %v1880_v45, %v5347_v8 }
 0x29e   :  { %v1882_v12 = vpop.f32.mrf.mxu0  ;;  %v1657_v55 = vpop.f32.mrf.mxu1 }
 0x29f   :  { %v2055_v13 = vmax.f32 %v1881_v10, 0.0 }
 0x2a0   :  { %v1885_v46 = vpop.f32.mrf.mxu0  ;;  %v5398_v17 = vpop.f32.mrf.mxu1 }
 0x2a1   :  { %v2105_v11 = vpack.c.bf16 %v2055_v13, %v2054_v42  ;;  %v1886_v23 = vadd.f32 %v1885_v46, %v5350_v16 }
 0x2a2   :  { %v1887_v20 = vpop.f32.mrf.mxu0  ;;  %v1662_v21 = vpop.f32.mrf.mxu1 }
 0x2a3   :  { %4308 = vmatmul.mubr.bf16.gmra.mxu1 %v2105_v11  ;;  %v2056_v61 = vmax.f32 %v1886_v23, 0.0 }
 0x2a4   :  { %v1888_v63 = vpop.f32.mrf.mxu0  ;;  %v5401_v53 = vpop.f32.mrf.mxu1 }
 0x2a5   :  { %v1889_v27 = vadd.f32 %v1888_v63, %v5353_v25 }
 0x2a6   :  { %v1890_v51 = vpop.f32.mrf.mxu0  ;;  %v1665_v8 = vpop.f32.mrf.mxu1 }
 0x2a7   :  { %v2057_v29 = vmax.f32 %v1889_v27, 0.0 }
 0x2a8   :  { %v1893_v31 = vpop.f32.mrf.mxu0  ;;  %v5404_v32 = vpop.f32.mrf.mxu1 }
 0x2a9   :  { %v2106_v37 = vpack.c.bf16 %v2057_v29, %v2056_v61  ;;  %v1894_v40 = vadd.f32 %v1893_v31, %v5356_v54 }
 0x2aa   :  { %v1895_v39 = vpop.f32.mrf.mxu0  ;;  %v1670_v19 = vpop.f32.mrf.mxu1 }
 0x2ab   :  { %4311 = vmatprep.mubr.bf16.mxu1 %v2106_v37  ;;  %v2058_v15 = vmax.f32 %v1894_v40, 0.0 }
 0x2ac   :  { %v1896_v16 = vpop.f32.mrf.mxu0  ;;  %v5407_v7 = vpop.f32.mrf.mxu1 }
 0x2ad   :  { %v1897_v22 = vadd.f32 %v1896_v16, %v5359_v44 }
 0x2ae   :  { %v1898_v47 = vpop.f32.mrf.mxu0  ;;  %v1673_v25 = vpop.f32.mrf.mxu1 }
 0x2af   :  { %v2059_v48 = vmax.f32 %v1897_v22, 0.0 }
 0x2b0   :  { %v1901_v59 = vpop.f32.mrf.mxu0  ;;  %v5410_v49 = vpop.f32.mrf.mxu1 }
 0x2b1   :  { %v2107_v62 = vpack.c.bf16 %v2059_v48, %v2058_v15  ;;  %v1902_v35 = vadd.f32 %v1901_v59, %v5362_v52 }
 0x2b2   :  { %v1903_v56 = vpop.f32.mrf.mxu0  ;;  %v1678_v57 = vpop.f32.mrf.mxu1 }
 0x2b3   :  { %4312 = vmatmul.mubr.bf16.gmra.mxu1 %v2107_v62  ;;  %v2060_v33 = vmax.f32 %v1902_v35, 0.0 }
 0x2b4   :  { %v1904_v54 = vpop.f32.mrf.mxu0  ;;  %v5413_v24 = vpop.f32.mrf.mxu1 }
 0x2b5   :  { %v1905_v60 = vadd.f32 %v1904_v54, %v5365_v58 }
 0x2b6   :  { %v1906_v38 = vpop.f32.mrf.mxu0  ;;  %v1681_v44 = vpop.f32.mrf.mxu1 }
 0x2b7   :  { %v2061_v30 = vmax.f32 %v1905_v60, 0.0 }
 0x2b8   :  { %v1909_v0 = vpop.f32.mrf.mxu0  ;;  %v5416_v1 = vpop.f32.mrf.mxu1 }
 0x2b9   :  { %v2108_v4 = vpack.c.bf16 %v2061_v30, %v2060_v33  ;;  %v1910_v9 = vadd.f32 %v1909_v0, %v5368_v2 }
 0x2ba   :  { %v1911_v5 = vpop.f32.mrf.mxu0  ;;  %v1686_v6 = vpop.f32.mrf.mxu1 }
 0x2bb   :  { %4315 = vmatprep.mubr.bf16.mxu1 %v2108_v4  ;;  %v2062_v55 = vmax.f32 %v1910_v9, 0.0 }
 0x2bc   :  { %v1912_v52 = vpop.f32.mrf.mxu0  ;;  %v5419_v45 = vpop.f32.mrf.mxu1 }
 0x2bd   :  { %v1913_v10 = vadd.f32 %v1912_v52, %v5371_v43 }
 0x2be   :  { %v1914_v12 = vpop.f32.mrf.mxu0  ;;  %v1689_v58 = vpop.f32.mrf.mxu1 }
 0x2bf   :  { %v2063_v42 = vmax.f32 %v1913_v10, 0.0 }
 0x2c0   :  { %v1917_v13 = vpop.f32.mrf.mxu0  ;;  %v5422_v46 = vpop.f32.mrf.mxu1 }
 0x2c1   :  { %v2109_v11 = vpack.c.bf16 %v2063_v42, %v2062_v55  ;;  %v1918_v23 = vadd.f32 %v1917_v13, %v5374_v18 }
 0x2c2   :  { %v1919_v20 = vpop.f32.mrf.mxu0  ;;  %v1694_v21 = vpop.f32.mrf.mxu1 }
 0x2c3   :  { %4316 = vmatmul.mubr.bf16.gmra.mxu1 %v2109_v11  ;;  %v2064_v8 = vmax.f32 %v1918_v23, 0.0 }
 0x2c4   :  { %v1920_v2 = vpop.f32.mrf.mxu0  ;;  %v5425_v63 = vpop.f32.mrf.mxu1 }
 0x2c5   :  { %v1921_v27 = vadd.f32 %v1920_v2, %v5377_v14 }
 0x2c6   :  { %v1922_v51 = vpop.f32.mrf.mxu0  ;;  %v1697_v43 = vpop.f32.mrf.mxu1 }
 0x2c7   :  { %v2065_v61 = vmax.f32 %v1921_v27, 0.0 }
 0x2c8   :  { %v1925_v29 = vpop.f32.mrf.mxu0  ;;  %v5428_v31 = vpop.f32.mrf.mxu1 }
 0x2c9   :  { %v2110_v37 = vpack.c.bf16 %v2065_v61, %v2064_v8  ;;  %v1926_v40 = vadd.f32 %v1925_v29, %v5380_v36 }
 0x2ca   :  { %v1927_v39 = vpop.f32.mrf.mxu0  ;;  %v1702_v19 = vpop.f32.mrf.mxu1 }
 0x2cb   :  { %4319 = vmatprep.mubr.bf16.mxu1 %v2110_v37  ;;  %v2066_v25 = vmax.f32 %v1926_v40, 0.0 }
 0x2cc   :  { %v1928_v18 = vpop.f32.mrf.mxu0  ;;  %v5431_v16 = vpop.f32.mrf.mxu1 }
 0x2cd   :  { %v1929_v22 = vadd.f32 %v1928_v18, %v5383_v41 }
 0x2ce   :  { %v1930_v47 = vpop.f32.mrf.mxu0  ;;  %v1705_v14 = vpop.f32.mrf.mxu1 }
 0x2cf   :  { %v2067_v15 = vmax.f32 %v1929_v22, 0.0 }
 0x2d0   :  { %v1933_v48 = vpop.f32.mrf.mxu0  ;;  %v5434_v59 = vpop.f32.mrf.mxu1 }
 0x2d1   :  { %v2111_v62 = vpack.c.bf16 %v2067_v15, %v2066_v25  ;;  %v1934_v35 = vadd.f32 %v1933_v48, %v5386_v50 }
 0x2d2   :  { %v1935_v56 = vpop.f32.mrf.mxu0  ;;  %v1710_v57 = vpop.f32.mrf.mxu1 }
 0x2d3   :  { %4320 = vmatmul.mubr.bf16.gmra.mxu1 %v2111_v62  ;;  %v2068_v44 = vmax.f32 %v1934_v35, 0.0 }
 0x2d4   :  { %v1936_v36 = vpop.f32.mrf.mxu0  ;;  %v5437_v54 = vpop.f32.mrf.mxu1 }
 0x2d5   :  { %v1937_v60 = vadd.f32 %v1936_v36, %v5389_v26 }
 0x2d6   :  { %v1938_v38 = vpop.f32.mrf.mxu0  ;;  %v1713_v41 = vpop.f32.mrf.mxu1 }
 0x2d7   :  { %v2069_v33 = vmax.f32 %v1937_v60, 0.0 }
 0x2d8   :  { %v1941_v30 = vpop.f32.mrf.mxu0  ;;  %v5440_v0 = vpop.f32.mrf.mxu1 }
 0x2d9   :  { %v2112_v4 = vpack.c.bf16 %v2069_v33, %v2068_v44  ;;  %v1942_v9 = vadd.f32 %v1941_v30, %v5392_v3 }
 0x2da   :  { %v1943_v5 = vpop.f32.mrf.mxu0  ;;  %v1718_v6 = vpop.f32.mrf.mxu1 }
 0x2db   :  { %4323 = vmatprep.mubr.bf16.mxu1 %v2112_v4  ;;  %v2070_v58 = vmax.f32 %v1942_v9, 0.0 }
 0x2dc   :  { %v1944_v50 = vpop.f32.mrf.mxu0  ;;  %v5443_v52 = vpop.f32.mrf.mxu1 }
 0x2dd   :  { %v1945_v10 = vadd.f32 %v1944_v50, %v5395_v34 }
 0x2de   :  { %v1946_v12 = vpop.f32.mrf.mxu0  ;;  %v1721_v26 = vpop.f32.mrf.mxu1 }
 0x2df   :  { %v2071_v55 = vmax.f32 %v1945_v10, 0.0 }
 0x2e0   :  { %v1949_v42 = vpop.f32.mrf.mxu0  ;;  %v5446_v13 = vpop.f32.mrf.mxu1 }
 0x2e1   :  { %v2113_v11 = vpack.c.bf16 %v2071_v55, %v2070_v58  ;;  %v1950_v23 = vadd.f32 %v1949_v42, %v5398_v17 }
 0x2e2   :  { %v1951_v20 = vpop.f32.mrf.mxu0  ;;  %v1726_v21 = vpop.f32.mrf.mxu1 }
 0x2e3   :  { %4324 = vmatmul.mubr.bf16.gmra.mxu1 %v2113_v11  ;;  %v2072_v43 = vmax.f32 %v1950_v23, 0.0 }
 0x2e4   :  { %v1952_v3 = vpop.f32.mrf.mxu0  ;;  %v5449_v2 = vpop.f32.mrf.mxu1 }
 0x2e5   :  { %v1953_v27 = vadd.f32 %v1952_v3, %v5401_v53 }
 0x2e6   :  { %v1954_v51 = vpop.f32.mrf.mxu0  ;;  %v1729_v34 = vpop.f32.mrf.mxu1 }
 0x2e7   :  { %v2073_v8 = vmax.f32 %v1953_v27, 0.0 }
 0x2e8   :  { %v1957_v61 = vpop.f32.mrf.mxu0  ;;  %v5452_v29 = vpop.f32.mrf.mxu1 }
 0x2e9   :  { %v2114_v37 = vpack.c.bf16 %v2073_v8, %v2072_v43  ;;  %v1958_v40 = vadd.f32 %v1957_v61, %v5404_v32 }
 0x2ea   :  { %v1959_v39 = vpop.f32.mrf.mxu0  ;;  %v1734_v19 = vpop.f32.mrf.mxu1 }
 0x2eb   :  { %4327 = vmatprep.mubr.bf16.mxu1 %v2114_v37  ;;  %v2074_v14 = vmax.f32 %v1958_v40, 0.0 }
 0x2ec   :  { %v1960_v17 = vpop.f32.mrf.mxu0  ;;  %v5455_v18 = vpop.f32.mrf.mxu1 }
 0x2ed   :  { %v1961_v22 = vadd.f32 %v1960_v17, %v5407_v7 }
 0x2ee   :  { %v1962_v47 = vpop.f32.mrf.mxu0  ;;  %v1737_v53 = vpop.f32.mrf.mxu1 }
 0x2ef   :  { %v2075_v25 = vmax.f32 %v1961_v22, 0.0 }
 0x2f0   :  { %v1965_v15 = vpop.f32.mrf.mxu0 }
 0x2f1   :  { %v2115_v48 = vpack.c.bf16 %v2075_v25, %v2074_v14  ;;  %v1966_v56 = vadd.f32 %v1965_v15, %v5410_v49 }
 0x2f2   :  { %v1967_v62 = vpop.f32.mrf.mxu0 }
 0x2f3   :  { %4328 = vmatmul.mubr.bf16.gmra.mxu1 %v2115_v48  ;;  %v2076_v36 = vmax.f32 %v1966_v56, 0.0 }
 0x2f4   :  { %v1968_v57 = vpop.f32.mrf.mxu0 }
 0x2f5   :  { %v1969_v35 = vadd.f32 %v1968_v57, %v5413_v24 }
 0x2f6   :  { %v1970_v32 = vpop.f32.mrf.mxu0 }
 0x2f7   :  { %v2077_v60 = vmax.f32 %v1969_v35, 0.0 }
 0x2f8   :  { %v1973_v38 = vpop.f32.mrf.mxu0 }
 0x2f9   :  { %v2116_v41 = vpack.c.bf16 %v2077_v60, %v2076_v36  ;;  %v1974_v7 = vadd.f32 %v1973_v38, %v5416_v1 }
 0x2fa   :  { %v1975_v44 = vpop.f32.mrf.mxu0 }
 0x2fb   :  { %4331 = vmatprep.mubr.bf16.mxu1 %v2116_v41  ;;  %v2078_v5 = vmax.f32 %v1974_v7, 0.0 }
 0x2fc   :  { %v1976_v33 = vpop.f32.mrf.mxu0 }
 0x2fd   :  { %v1977_v30 = vadd.f32 %v1976_v33, %v5419_v45 }
 0x2fe   :  { %v1978_v4 = vpop.f32.mrf.mxu0 }
 0x2ff   :  { %v2079_v6 = vmax.f32 %v1977_v30, 0.0 }
 0x300   :  { %v1981_v49 = vpop.f32.mrf.mxu0 }
 0x301   :  { %v2117_v9 = vpack.c.bf16 %v2079_v6, %v2078_v5  ;;  %v1982_v24 = vadd.f32 %v1981_v49, %v5422_v46 }
 0x302   :  { %v1983_v50 = vpop.f32.mrf.mxu0 }
 0x303   :  { %4332 = vmatmul.mubr.bf16.gmra.mxu1 %v2117_v9  ;;  %v2080_v58 = vmax.f32 %v1982_v24, 0.0  ;;  %v5464_v42 = vpop.f32.mrf.mxu1 }
 0x304   :  { %v1984_v10 = vpop.f32.mrf.mxu0 }
 0x305   :  { %v1985_v12 = vadd.f32 %v1984_v10, %v5425_v63  ;;  %v5467_v23 = vpop.f32.mrf.mxu1 }
 0x306   :  { %v1986_v26 = vpop.f32.mrf.mxu0 }
 0x307   :  { %v2081_v55 = vmax.f32 %v1985_v12, 0.0  ;;  %v5470_v34 = vpop.f32.mrf.mxu1 }
 0x308   :  { %v1989_v1 = vpop.f32.mrf.mxu0 }
 0x309   :  { %v2118_v11 = vpack.c.bf16 %v2081_v55, %v2080_v58  ;;  %v1990_v20 = vadd.f32 %v1989_v1, %v5428_v31  ;;  %v5473_v39 = vpop.f32.mrf.mxu1  ;;  %v4873_v58 = vld [vmem:[#allocation2 + $0x6c] ss:$16 sps:$4 sm:$0xff]  }
 0x30a   :  { %v1991_v45 = vpop.f32.mrf.mxu0 }
 0x30b   :  { %4335 = vmatprep.mubr.bf16.mxu1 %v2118_v11  ;;  %v2082_v27 = vmax.f32 %v1990_v20, 0.0 }
 0x30c   :  { %v1992_v21 = vpop.f32.mrf.mxu0 }
 0x30d   :  { %v1993_v46 = vadd.f32 %v1992_v21, %v5431_v16 }
 0x30e   :  { %v1994_v3 = vpop.f32.mrf.mxu0 }
 0x30f   :  { %v2083_v51 = vmax.f32 %v1993_v46, 0.0 }
 0x310   :  { %v1997_v63 = vpop.f32.mrf.mxu0 }
 0x311   :  { %v2119_v43 = vpack.c.bf16 %v2083_v51, %v2082_v27  ;;  %v1998_v61 = vadd.f32 %v1997_v63, %v5434_v59  ;;  %v2478_v51 = vpack.c.bf16 %v5470_v34, %v5464_v42 }
 0x312   :  { %v1999_v8 = vpop.f32.mrf.mxu0 }
 0x313   :  { %4336 = vmatmul.mubr.bf16.gmra.mxu1 %v2119_v43  ;;  %v2084_v40 = vmax.f32 %v1998_v61, 0.0  ;;  %v4289_v17 = vpop.f32.mrf.mxu1  ;;  %v2477_v43 = vpack.c.bf16 %v5473_v39, %v5467_v23 }
 0x314   :  { %v2000_v37 = vpop.f32.mrf.mxu0 }
 0x315   :  { %v2001_v31 = vadd.f32 %v2000_v37, %v5437_v54  ;;  %v2238_v14 = vpop.f32.mrf.mxu1 }
 0x316   :  { %v2002_v19 = vpop.f32.mrf.mxu0 }
 0x317   :  { %v2085_v16 = vmax.f32 %v2001_v31, 0.0  ;;  %v4290_v62 = vpop.f32.mrf.mxu1 }
 0x318   :  { %v2005_v22 = vpop.f32.mrf.mxu0  ;;  %v2480_v21 = vpack.c.bf16 %v4290_v62, %v4289_v17 }
 0x319   :  { %v2120_v47 = vpack.c.bf16 %v2085_v16, %v2084_v40  ;;  %v2006_v25 = vadd.f32 %v2005_v22, %v5440_v0  ;;  %v2241_v36 = vpop.f32.mrf.mxu1 }
 0x31a   :  { %v2007_v53 = vpop.f32.mrf.mxu0  ;;  %v2479_v3 = vpack.c.bf16 %v2241_v36, %v2238_v14  ;;  %v4874_v36 = vld [vmem:[#allocation2] ss:$16 sps:$4 sm:$0xff]  }
 0x31b   :  { %4339 = vmatprep.mubr.bf16.mxu1 %v2120_v47  ;;  %v2086_v56 = vmax.f32 %v2006_v25, 0.0 }
 0x31c   :  { %v2008_v15 = vpop.f32.mrf.mxu0 }
 0x31d   :  { %v2009_v59 = vadd.f32 %v2008_v15, %v5443_v52 }
 0x31e   :  { %v2010_v48 = vpop.f32.mrf.mxu0 }
 0x31f   :  { %v2087_v57 = vmax.f32 %v2009_v59, 0.0 }
 0x320   :  { %v2013_v35 = vpop.f32.mrf.mxu0 }
 0x321   :  { %v2121_v54 = vpack.c.bf16 %v2087_v57, %v2086_v56  ;;  %v2014_v60 = vadd.f32 %v2013_v35, %v5446_v13 }
 0x322   :  { %v2015_v32 = vpop.f32.mrf.mxu0 }
 0x323   :  { %4340 = vmatmul.mubr.bf16.gmra.mxu1 %v2121_v54  ;;  %v4293_v41 = vpop.f32.mrf.mxu1  ;;  %v2088_v7 = vmax.f32 %v2014_v60, 0.0  ;;  %v4875_v60 = vld [vmem:[#allocation2 + $0x24] ss:$16 sps:$4 sm:$0xff]  }
 0x324   :  { %v2016_v38 = vpop.f32.mrf.mxu0 }
 0x325   :  { %v2017_v44 = vadd.f32 %v2016_v38, %v5449_v2  ;;  %v2254_v4 = vpop.f32.mrf.mxu1 }
 0x326   :  { %v2018_v0 = vpop.f32.mrf.mxu0 }
 0x327   :  { %v2089_v33 = vmax.f32 %v2017_v44, 0.0  ;;  %v4294_v9 = vpop.f32.mrf.mxu1  ;;  %v4876_v44 = vld [vmem:[#allocation2 + $0x20] ss:$16 sps:$4 sm:$0xff]   ;;  %v4877_v0 = vld [vmem:[#allocation2 + $0x44] ss:$16 sps:$4 sm:$0xff]  }
 0x328   :  { %v2021_v30 = vpop.f32.mrf.mxu0 }
 0x329   :  { %v2122_v52 = vpack.c.bf16 %v2089_v33, %v2088_v7  ;;  %v2022_v6 = vadd.f32 %v2021_v30, %v5452_v29  ;;  %v2257_v12 = vpop.f32.mrf.mxu1 }
 0x32a   :  { %v2023_v5 = vpop.f32.mrf.mxu0  ;;  %v2481_v20 = vpack.c.bf16 %v2257_v12, %v2254_v4  ;;  %v4879_v4 = vld [vmem:[#allocation2 + $0x64] ss:$16 sps:$4 sm:$0xff]  }
 0x32b   :  { %4343 = vmatprep.mubr.bf16.mxu1 %v2122_v52  ;;  %v2090_v24 = vmax.f32 %v2022_v6, 0.0  ;;  %v4878_v52 = vld [vmem:[#allocation2 + $0x40] ss:$16 sps:$4 sm:$0xff]  }
 0x32c   :  { %v2024_v49 = vpop.f32.mrf.mxu0 }
 0x32d   :  { %v2025_v50 = vadd.f32 %v2024_v49, %v5455_v18  ;;  %v2482_v18 = vpack.c.bf16 %v4294_v9, %v4293_v41  ;;  %v4880_v49 = vld [vmem:[#allocation2 + $0x60] ss:$16 sps:$4 sm:$0xff]   ;;  %v4881_v9 = vld [vmem:[#allocation2 + $0x84] ss:$16 sps:$4 sm:$0xff]  }
 0x32e   :  { %v2026_v13 = vpop.f32.mrf.mxu0 }
 0x32f   :  { %v2091_v10 = vmax.f32 %v2025_v50, 0.0 }
 0x331   :  { %v2123_v26 = vpack.c.bf16 %v2091_v10, %v2090_v24 }
 0x333   :  { %v4297_v2 = vpop.f32.mrf.mxu1  ;;  %4344 = vmatmul.mubr.bf16.gmra.mxu1 %v2123_v26  ;;  %v4882_v26 = vld [vmem:[#allocation2 + $0x80] ss:$16 sps:$4 sm:$0xff]  }
 0x334   :  { %2854 = vmatprep.mubr.bf16.mxu1 %v4873_v58  ;;  %v4883_v58 = vld [vmem:[#allocation2 + $0xa4] ss:$16 sps:$4 sm:$0xff]  }
 0x335   :  { %v2270_v55 = vpop.f32.mrf.mxu1 }
 0x337   :  { %v4298_v1 = vpop.f32.mrf.mxu1 }
 0x338   :  { %v2484_v11 = vpack.c.bf16 %v4298_v1, %v4297_v2  ;;  %v4884_v1 = vld [vmem:[#allocation2 + $0xa0] ss:$16 sps:$4 sm:$0xff]  }
 0x339   :  { %v2273_v45 = vpop.f32.mrf.mxu1 }
 0x33a   :  { %2510 = vmatpush1.bf16.msra.mxu0 %v2484_v11  ;;  %v2483_v29 = vpack.c.bf16 %v2273_v45, %v2270_v55  ;;  %v4885_v45 = vld [vmem:[#allocation2 + $0xc4] ss:$16 sps:$4 sm:$0xff]  }
 0x33b   :  { %2511 = vmatprep.subr.bf16.mxu0 %v5025_v28 }
 0x33e   :  { %2512 = vmatpush1.bf16.msra.mxu0 %v2483_v29 }
 0x33f   :  { %2513 = vmatprep.subr.bf16.mxu0 %v5025_v28 }
 0x342   :  { %2514 = vmatpush1.bf16.msra.mxu0 %v2482_v18 }
 0x343   :  { %2515 = vmatprep.subr.bf16.mxu0 %v5025_v28  ;;  %v4301_v46 = vpop.f32.mrf.mxu1 }
 0x345   :  { %v2286_v27 = vpop.f32.mrf.mxu1 }
 0x346   :  { %2516 = vmatpush1.bf16.msra.mxu0 %v2481_v20  ;;  %v4886_v20 = vld [vmem:[#allocation2 + $0xc0] ss:$16 sps:$4 sm:$0xff]  }
 0x347   :  { %2517 = vmatprep.subr.bf16.mxu0 %v5025_v28  ;;  %v4302_v63 = vpop.f32.mrf.mxu1 }
 0x348   :  { %v2486_v56 = vpack.c.bf16 %v4302_v63, %v4301_v46  ;;  %v4887_v46 = vld [vmem:[#allocation2 + $0xe4] ss:$16 sps:$4 sm:$0xff]   ;;  %v4888_v63 = vld [vmem:[#allocation2 + $0xe0] ss:$16 sps:$4 sm:$0xff]  }
 0x349   :  { %v2289_v8 = vpop.f32.mrf.mxu1 }
 0x34a   :  { %2518 = vmatpush1.bf16.msra.mxu0 %v2480_v21  ;;  %v2485_v35 = vpack.c.bf16 %v2289_v8, %v2286_v27  ;;  %v4889_v8 = vld [vmem:[#allocation2 + $0x104] ss:$16 sps:$4 sm:$0xff]  }
 0x34b   :  { %2519 = vmatprep.subr.bf16.mxu0 %v5025_v28 }
 0x34e   :  { %2520 = vmatpush1.bf16.msra.mxu0 %v2479_v3 }
 0x34f   :  { %2521 = vmatprep.subr.bf16.mxu0 %v5025_v28 }
 0x352   :  { %2522 = vmatpush1.bf16.msra.mxu0 %v2478_v51 }
 0x353   :  { %2523 = vmatprep.subr.bf16.mxu0 %v5025_v28  ;;  %v4305_v61 = vpop.f32.mrf.mxu1 }
 0x355   :  { %v2302_v37 = vpop.f32.mrf.mxu1 }
 0x356   :  { %2524 = vmatpush1.bf16.msra.mxu0 %v2477_v43 }
 0x357   :  { %2525 = vmatprep.subr.bf16.mxu0 %v5025_v28  ;;  %v4306_v31 = vpop.f32.mrf.mxu1 }
 0x358   :  { %v2488_v15 = vpack.c.bf16 %v4306_v31, %v4305_v61  ;;  %v4890_v31 = vld [vmem:[#allocation2 + $0x100] ss:$16 sps:$4 sm:$0xff]  }
 0x359   :  { %v2305_v19 = vpop.f32.mrf.mxu1 }
 0x35a   :  { %v2487_v48 = vpack.c.bf16 %v2305_v19, %v2302_v37  ;;  %v4891_v19 = vld [vmem:[#allocation2 + $0x124] ss:$16 sps:$4 sm:$0xff]  }
 0x363   :  { %v4309_v40 = vpop.f32.mrf.mxu1 }
 0x365   :  { %v2318_v17 = vpop.f32.mrf.mxu1 }
 0x367   :  { %v4310_v16 = vpop.f32.mrf.mxu1 }
 0x368   :  { %v2490_v39 = vpack.c.bf16 %v4310_v16, %v4309_v40  ;;  %v4892_v16 = vld [vmem:[#allocation2 + $0x120] ss:$16 sps:$4 sm:$0xff]  }
 0x369   :  { %v2321_v22 = vpop.f32.mrf.mxu1 }
 0x36a   :  { %v2489_v25 = vpack.c.bf16 %v2321_v22, %v2318_v17  ;;  %v4893_v22 = vld [vmem:[#allocation2 + $0x144] ss:$16 sps:$4 sm:$0xff]  }
 0x373   :  { %v4313_v42 = vpop.f32.mrf.mxu1 }
 0x375   :  { %v2334_v34 = vpop.f32.mrf.mxu1 }
 0x377   :  { %v4314_v47 = vpop.f32.mrf.mxu1 }
 0x378   :  { %v2492_v53 = vpack.c.bf16 %v4314_v47, %v4313_v42 }
 0x379   :  { %v2337_v14 = vpop.f32.mrf.mxu1 }
 0x37a   :  { %2526 = vmatpush2.bf16.msra.mxu0 %v2492_v53  ;;  %v2491_v23 = vpack.c.bf16 %v2337_v14, %v2334_v34  ;;  %v4894_v53 = vld [vmem:[#allocation2 + $0x140] ss:$16 sps:$4 sm:$0xff]   ;;  %v4895_v14 = vld [vmem:[#allocation2 + $0x164] ss:$16 sps:$4 sm:$0xff]  }
 0x37b   :  { %2527 = vmatprep.subr.bf16.mxu0 %v5025_v28 }
 0x37e   :  { %2528 = vmatpush2.bf16.msra.mxu0 %v2491_v23 }
 0x37f   :  { %2529 = vmatprep.subr.bf16.mxu0 %v5025_v28 }
 0x382   :  { %2530 = vmatpush2.bf16.msra.mxu0 %v2490_v39 }
 0x383   :  { %2531 = vmatprep.subr.bf16.mxu0 %v5025_v28  ;;  %v5498_v59 = vpop.f32.mrf.mxu1 }
 0x385   :  { %v5501_v62 = vpop.f32.mrf.mxu1 }
 0x386   :  { %2532 = vmatpush2.bf16.msra.mxu0 %v2489_v25  ;;  %v4896_v25 = vld [vmem:[#allocation2 + $0x160] ss:$16 sps:$4 sm:$0xff]  }
 0x387   :  { %2533 = vmatprep.subr.bf16.mxu0 %v5025_v28  ;;  %v5504_v57 = vpop.f32.mrf.mxu1 }
 0x388   :  { %v2494_v27 = vpack.c.bf16 %v5504_v57, %v5498_v59 }
 0x389   :  { %v5507_v54 = vpop.f32.mrf.mxu1 }
 0x38a   :  { %2534 = vmatpush2.bf16.msra.mxu0 %v2488_v15  ;;  %v2493_v43 = vpack.c.bf16 %v5507_v54, %v5501_v62  ;;  %v4897_v15 = vld [vmem:[#allocation2 + $0x184] ss:$16 sps:$4 sm:$0xff]  }
 0x38b   :  { %2535 = vmatprep.subr.bf16.mxu0 %v5025_v28 }
 0x38e   :  { %2536 = vmatpush2.bf16.msra.mxu0 %v2487_v48 }
 0x38f   :  { %2537 = vmatprep.subr.bf16.mxu0 %v5025_v28 }
 0x392   :  { %2538 = vmatpush2.bf16.msra.mxu0 %v2486_v56 }
 0x393   :  { %2539 = vmatprep.subr.bf16.mxu0 %v5025_v28  ;;  %v4321_v32 = vpop.f32.mrf.mxu1 }
 0x395   :  { %v2366_v38 = vpop.f32.mrf.mxu1 }
 0x396   :  { %2540 = vmatpush2.bf16.msra.mxu0 %v2485_v35  ;;  %v4898_v35 = vld [vmem:[#allocation2 + $0x180] ss:$16 sps:$4 sm:$0xff]  }
 0x397   :  { %2798 = vmatprep.subr.bf16.mxu0 %v5025_v28  ;;  %v4322_v41 = vpop.f32.mrf.mxu1 }
 0x398   :  { %v2496_v29 = vpack.c.bf16 %v4322_v41, %v4321_v32  ;;  %v4899_v32 = vld [vmem:[#allocation2 + $0x1a4] ss:$16 sps:$4 sm:$0xff]  }
 0x399   :  { %2542 = vmatmul.mubr.bf16.vlgmr.msra.gmra.mxu0 %v4874_v36  ;;  %v2369_v7 = vpop.f32.mrf.mxu1  ;;  %v4901_v41 = vld [vmem:[#allocation2 + $0x1c4] ss:$16 sps:$4 sm:$0xff]  }
 0x39a   :  { %2549 = vmatprep.mubr.bf16.mxu0 %v4875_v60  ;;  %v2495_v21 = vpack.c.bf16 %v2369_v7, %v2366_v38  ;;  %v4900_v60 = vld [vmem:[#allocation2 + $0x1a0] ss:$16 sps:$4 sm:$0xff]  }
 0x3a1   :  { %2550 = vmatmul.mubr.bf16.gmra.mxu0 %v4876_v44 }
 0x3a2   :  { %2557 = vmatprep.mubr.bf16.mxu0 %v4877_v0  ;;  %v4902_v0 = vld [vmem:[#allocation2 + $0x1c0] ss:$16 sps:$4 sm:$0xff]  }
 0x3a3   :  { %v4325_v33 = vpop.f32.mrf.mxu1 }
 0x3a5   :  { %v2382_v30 = vpop.f32.mrf.mxu1 }
 0x3a7   :  { %v4326_v5 = vpop.f32.mrf.mxu1 }
 0x3a8   :  { %v2498_v55 = vpack.c.bf16 %v4326_v5, %v4325_v33  ;;  %v4903_v33 = vld [vmem:[#allocation2 + $0x1e4] ss:$16 sps:$4 sm:$0xff]  }
 0x3a9   :  { %2558 = vmatmul.mubr.bf16.gmra.mxu0 %v4878_v52  ;;  %v2385_v6 = vpop.f32.mrf.mxu1  ;;  %v4904_v52 = vld [vmem:[#allocation2 + $0x1e0] ss:$16 sps:$4 sm:$0xff]   ;;  %v4905_v5 = vld [vmem:[#allocation2 + $0x204] ss:$16 sps:$4 sm:$0xff]  }
 0x3aa   :  { %2565 = vmatprep.mubr.bf16.mxu0 %v4879_v4  ;;  %v2497_v11 = vpack.c.bf16 %v2385_v6, %v2382_v30  ;;  %v4906_v6 = vld [vmem:[#allocation2 + $0x200] ss:$16 sps:$4 sm:$0xff]  }
 0x3b1   :  { %2566 = vmatmul.mubr.bf16.gmra.mxu0 %v4880_v49  ;;  %v4907_v49 = vld [vmem:[#allocation2 + $0x68] ss:$16 sps:$4 sm:$0xff]  }
 0x3b2   :  { %2573 = vmatprep.mubr.bf16.mxu0 %v4881_v9  ;;  %v4908_v9 = vld [vmem:[#allocation2 + $0x224] ss:$16 sps:$4 sm:$0xff]  }
 0x3b3   :  { %v4329_v50 = vpop.f32.mrf.mxu1 }
 0x3b5   :  { %v2398_v13 = vpop.f32.mrf.mxu1 }
 0x3b7   :  { %v4330_v24 = vpop.f32.mrf.mxu1 }
 0x3b8   :  { %v2500_v10 = vpack.c.bf16 %v4330_v24, %v4329_v50  ;;  %v4909_v50 = vld [vmem:[#allocation2 + $0x8c] ss:$16 sps:$4 sm:$0xff]   ;;  %v4911_v24 = vld [vmem:[#allocation2 + $0x88] ss:$16 sps:$4 sm:$0xff]  }
 0x3b9   :  { %v2401_v12 = vpop.f32.mrf.mxu1  ;;  %2574 = vmatmul.mubr.bf16.gmra.mxu0 %v4882_v26  ;;  %v4915_v26 = vld [vmem:[#allocation2 + $0xa8] ss:$16 sps:$4 sm:$0xff]  }
 0x3ba   :  { %2799 = vmatpush1.bf16.msra.mxu0 %v2500_v10  ;;  %4363 = vmatpush1.bf16.msra.mxu1 %v2500_v10  ;;  %v2499_v2 = vpack.c.bf16 %v2401_v12, %v2398_v13  ;;  %v4910_v13 = vld [vmem:[#allocation2 + $0x220] ss:$16 sps:$4 sm:$0xff]   ;;  %v4913_v10 = vld [vmem:[#allocation2 + $0xac] ss:$16 sps:$4 sm:$0xff]  }
 0x3bb   :  { %2800 = vmatprep.subr.bf16.mxu0 %v5025_v28  ;;  %4348 = vmatprep.subr.bf16.mxu1 %v5025_v28  ;;  %v4914_v12 = vld [vmem:[#allocation2 + $0x240] ss:$16 sps:$4 sm:$0xff]  }
 0x3bc   :  { %2581 = vmatprep.mubr.bf16.mxu0 %v4883_v58  ;;  %v4917_v58 = vld [vmem:[#allocation2 + $0xcc] ss:$16 sps:$4 sm:$0xff]  }
 0x3be   :  { %2801 = vmatpush1.bf16.msra.mxu0 %v2499_v2  ;;  %4364 = vmatpush1.bf16.msra.mxu1 %v2499_v2  ;;  %v4916_v2 = vld [vmem:[#allocation2 + $0x264] ss:$16 sps:$4 sm:$0xff]  }
 0x3bf   :  { %2802 = vmatprep.subr.bf16.mxu0 %v5025_v28  ;;  %4349 = vmatprep.subr.bf16.mxu1 %v5025_v28 }
 0x3c1   :  { %2582 = vmatmul.mubr.bf16.gmra.mxu0 %v4884_v1  ;;  %v4919_v1 = vld [vmem:[#allocation2 + $0xc8] ss:$16 sps:$4 sm:$0xff]  }
 0x3c2   :  { %2803 = vmatpush1.bf16.msra.mxu0 %v2498_v55  ;;  %4365 = vmatpush1.bf16.msra.mxu1 %v2498_v55  ;;  %v4918_v55 = vld [vmem:[#allocation2 + $0x260] ss:$16 sps:$4 sm:$0xff]  }
 0x3c3   :  { %2804 = vmatprep.subr.bf16.mxu0 %v5025_v28  ;;  %4350 = vmatprep.subr.bf16.mxu1 %v5025_v28  ;;  %v5518_v18 = vpop.f32.mrf.mxu1 }
 0x3c4   :  { %2589 = vmatprep.mubr.bf16.mxu0 %v4885_v45  ;;  %v4921_v45 = vld [vmem:[#allocation2 + $0xec] ss:$16 sps:$4 sm:$0xff]  }
 0x3c5   :  { %v5522_v3 = vpop.f32.mrf.mxu1 }
 0x3c6   :  { %2805 = vmatpush1.bf16.msra.mxu0 %v2497_v11  ;;  %4366 = vmatpush1.bf16.msra.mxu1 %v2497_v11  ;;  %v4920_v11 = vld [vmem:[#allocation2 + $0x284] ss:$16 sps:$4 sm:$0xff]  }
 0x3c7   :  { %2806 = vmatprep.subr.bf16.mxu0 %v5025_v28  ;;  %4351 = vmatprep.subr.bf16.mxu1 %v5025_v28  ;;  %v5528_v51 = vpop.f32.mrf.mxu1 }
 0x3c8   :  { %v2502_v30 = vpack.c.bf16 %v5528_v51, %v5518_v18  ;;  %v4923_v18 = vld [vmem:[#allocation2 + $0xe8] ss:$16 sps:$4 sm:$0xff]   ;;  %v4929_v51 = vld [vmem:[#allocation2 + $0x12c] ss:$16 sps:$4 sm:$0xff]  }
 0x3c9   :  { %2590 = vmatmul.mubr.bf16.gmra.mxu0 %v4886_v20  ;;  %v5534_v61 = vpop.f32.mrf.mxu1  ;;  %v4924_v20 = vld [vmem:[#allocation2 + $0x2a4] ss:$16 sps:$4 sm:$0xff]  }
 0x3ca   :  { %2807 = vmatpush1.bf16.msra.mxu0 %v2496_v29  ;;  %4367 = vmatpush1.bf16.msra.mxu1 %v2496_v29  ;;  %v2501_v4 = vpack.c.bf16 %v5534_v61, %v5522_v3  ;;  %v4922_v29 = vld [vmem:[#allocation2 + $0x280] ss:$16 sps:$4 sm:$0xff]   ;;  %v4927_v3 = vld [vmem:[#allocation2 + $0x108] ss:$16 sps:$4 sm:$0xff]   ;;  %v4933_v61 = vld [vmem:[#allocation2 + $0x14c] ss:$16 sps:$4 sm:$0xff]  }
 0x3cb   :  { %2808 = vmatprep.subr.bf16.mxu0 %v5025_v28  ;;  %4352 = vmatprep.subr.bf16.mxu1 %v5025_v28 }
 0x3cc   :  { %2597 = vmatprep.mubr.bf16.mxu0 %v4887_v46  ;;  %v4926_v46 = vld [vmem:[#allocation2 + $0x2a0] ss:$16 sps:$4 sm:$0xff]  }
 0x3ce   :  { %2809 = vmatpush1.bf16.msra.mxu0 %v2495_v21  ;;  %4368 = vmatpush1.bf16.msra.mxu1 %v2495_v21  ;;  %v4925_v21 = vld [vmem:[#allocation2 + $0x10c] ss:$16 sps:$4 sm:$0xff]  }
 0x3cf   :  { %2810 = vmatprep.subr.bf16.mxu0 %v5025_v28  ;;  %4353 = vmatprep.subr.bf16.mxu1 %v5025_v28 }
 0x3d1   :  { %2598 = vmatmul.mubr.bf16.gmra.mxu0 %v4888_v63  ;;  %v4930_v63 = vld [vmem:[#allocation2 + $0x2c0] ss:$16 sps:$4 sm:$0xff]  }
 0x3d2   :  { %2811 = vmatpush1.bf16.msra.mxu0 %v2494_v27  ;;  %4369 = vmatpush1.bf16.msra.mxu1 %v2494_v27  ;;  %v4928_v27 = vld [vmem:[#allocation2 + $0x2c4] ss:$16 sps:$4 sm:$0xff]  }
 0x3d3   :  { %2812 = vmatprep.subr.bf16.mxu0 %v5025_v28  ;;  %4354 = vmatprep.subr.bf16.mxu1 %v5025_v28  ;;  %v4337_v37 = vpop.f32.mrf.mxu1 }
 0x3d4   :  { %2605 = vmatprep.mubr.bf16.mxu0 %v4889_v8  ;;  %v4932_v8 = vld [vmem:[#allocation2 + $0x2e4] ss:$16 sps:$4 sm:$0xff]  }
 0x3d5   :  { %v2430_v40 = vpop.f32.mrf.mxu1 }
 0x3d6   :  { %2813 = vmatpush1.bf16.msra.mxu0 %v2493_v43  ;;  %4370 = vmatpush1.bf16.msra.mxu1 %v2493_v43  ;;  %v4931_v43 = vld [vmem:[#allocation2 + $0x128] ss:$16 sps:$4 sm:$0xff]  }
 0x3d7   :  { %2814 = vmatprep.subr.bf16.mxu0 %v5025_v28  ;;  %4355 = vmatprep.subr.bf16.mxu1 %v5025_v28  ;;  %v4338_v17 = vpop.f32.mrf.mxu1 }
 0x3d8   :  { %v2504_v44 = vpack.c.bf16 %v4338_v17, %v4337_v37  ;;  %v4934_v37 = vld [vmem:[#allocation2 + $0x2e0] ss:$16 sps:$4 sm:$0xff]  }
 0x3d9   :  { %2606 = vmatmul.mubr.bf16.gmra.mxu0 %v4890_v31  ;;  %v2433_v42 = vpop.f32.mrf.mxu1  ;;  %v4935_v31 = vld [vmem:[#allocation2 + $0x148] ss:$16 sps:$4 sm:$0xff]  }
 0x3da   :  { %2613 = vmatprep.mubr.bf16.mxu0 %v4891_v19  ;;  %v2503_v7 = vpack.c.bf16 %v2433_v42, %v2430_v40  ;;  %v4936_v19 = vld [vmem:[#allocation2 + $0x304] ss:$16 sps:$4 sm:$0xff]   ;;  %v4937_v40 = vld [vmem:[#allocation2 + $0x16c] ss:$16 sps:$4 sm:$0xff]  }
 0x3db   :  { %v4940_v42 = vld [vmem:[#allocation2 + $0x324] ss:$16 sps:$4 sm:$0xff]  }
 0x3e1   :  { %2614 = vmatmul.mubr.bf16.gmra.mxu0 %v4892_v16  ;;  %v4938_v16 = vld [vmem:[#allocation2 + $0x300] ss:$16 sps:$4 sm:$0xff]  }
 0x3e2   :  { %2621 = vmatprep.mubr.bf16.mxu0 %v4893_v22  ;;  %v4939_v22 = vld [vmem:[#allocation2 + $0x168] ss:$16 sps:$4 sm:$0xff]  }
 0x3e3   :  { %v4341_v34 = vpop.f32.mrf.mxu1 }
 0x3e5   :  { %v2446_v47 = vpop.f32.mrf.mxu1 }
 0x3e7   :  { %v4342_v23 = vpop.f32.mrf.mxu1 }
 0x3e8   :  { %v2506_v36 = vpack.c.bf16 %v4342_v23, %v4341_v34  ;;  %v4941_v34 = vld [vmem:[#allocation2 + $0x18c] ss:$16 sps:$4 sm:$0xff]  }
 0x3e9   :  { %2622 = vmatmul.mubr.bf16.gmra.mxu0 %v4894_v53  ;;  %v2449_v39 = vpop.f32.mrf.mxu1 }
 0x3ea   :  { %2629 = vmatprep.mubr.bf16.mxu0 %v4895_v14  ;;  %v2505_v38 = vpack.c.bf16 %v2449_v39, %v2446_v47  ;;  %v4942_v39 = vld [vmem:[#allocation2 + $0x320] ss:$16 sps:$4 sm:$0xff]  }
 0x3f1   :  { %2630 = vmatmul.mubr.bf16.gmra.mxu0 %v4896_v25  ;;  %v4943_v25 = vld [vmem:[#allocation2 + $0x188] ss:$16 sps:$4 sm:$0xff]  }
 0x3f2   :  { %2637 = vmatprep.mubr.bf16.mxu0 %v4897_v15  ;;  %v4944_v15 = vld [vmem:[#allocation2 + $0x344] ss:$16 sps:$4 sm:$0xff]  }
 0x3f3   :  { %v4345_v59 = vpop.f32.mrf.mxu1 }
 0x3f5   :  { %v2462_v48 = vpop.f32.mrf.mxu1 }
 0x3f7   :  { %v4346_v62 = vpop.f32.mrf.mxu1 }
 0x3f8   :  { %v2508_v56 = vpack.c.bf16 %v4346_v62, %v4345_v59  ;;  %v4945_v59 = vld [vmem:[#allocation2 + $0x1ac] ss:$16 sps:$4 sm:$0xff]  }
 0x3f9   :  { %v2465_v57 = vpop.f32.mrf.mxu1  ;;  %2638 = vmatmul.mubr.bf16.gmra.mxu0 %v4898_v35  ;;  %v4946_v35 = vld [vmem:[#allocation2 + $0x340] ss:$16 sps:$4 sm:$0xff]  }
 0x3fa   :  { %2815 = vmatpush2.bf16.msra.mxu0 %v2508_v56  ;;  %4371 = vmatpush2.bf16.msra.mxu1 %v2508_v56  ;;  %v2507_v54 = vpack.c.bf16 %v2465_v57, %v2462_v48 }
 0x3fb   :  { %2816 = vmatprep.subr.bf16.mxu0 %v5025_v28  ;;  %4356 = vmatprep.subr.bf16.mxu1 %v5025_v28 }
 0x3fc   :  { %2645 = vmatprep.mubr.bf16.mxu0 %v4899_v32  ;;  %v4948_v32 = vld [vmem:[#allocation2 + $0x364] ss:$16 sps:$4 sm:$0xff]  }
 0x3fe   :  { %2817 = vmatpush2.bf16.msra.mxu0 %v2507_v54  ;;  %4372 = vmatpush2.bf16.msra.mxu1 %v2507_v54  ;;  %v4947_v54 = vld [vmem:[#allocation2 + $0x1a8] ss:$16 sps:$4 sm:$0xff]  }
 0x3ff   :  { %2818 = vmatprep.subr.bf16.mxu0 %v5025_v28  ;;  %4357 = vmatprep.subr.bf16.mxu1 %v5025_v28 }
 0x401   :  { %2646 = vmatmul.mubr.bf16.gmra.mxu0 %v4900_v60 }
 0x402   :  { %2819 = vmatpush2.bf16.msra.mxu0 %v2506_v36  ;;  %4373 = vmatpush2.bf16.msra.mxu1 %v2506_v36  ;;  %v4949_v36 = vld [vmem:[#allocation2 + $0x1cc] ss:$16 sps:$4 sm:$0xff]  }
 0x403   :  { %2820 = vmatprep.subr.bf16.mxu0 %v5025_v28  ;;  %4358 = vmatprep.subr.bf16.mxu1 %v5025_v28 }
 0x404   :  { %2653 = vmatprep.mubr.bf16.mxu0 %v4901_v41 }
 0x406   :  { %2821 = vmatpush2.bf16.msra.mxu0 %v2505_v38  ;;  %4374 = vmatpush2.bf16.msra.mxu1 %v2505_v38 }
 0x407   :  { %2822 = vmatprep.subr.bf16.mxu0 %v5025_v28  ;;  %4359 = vmatprep.subr.bf16.mxu1 %v5025_v28 }
 0x409   :  { %2654 = vmatmul.mubr.bf16.gmra.mxu0 %v4902_v0  ;;  %v4950_v0 = vld [vmem:[#allocation2 + $0x360] ss:$16 sps:$4 sm:$0xff]  }
 0x40a   :  { %2823 = vmatpush2.bf16.msra.mxu0 %v2504_v44  ;;  %4375 = vmatpush2.bf16.msra.mxu1 %v2504_v44 }
 0x40b   :  { %2824 = vmatprep.subr.bf16.mxu0 %v5025_v28  ;;  %4360 = vmatprep.subr.bf16.mxu1 %v5025_v28 }
 0x40c   :  { %2661 = vmatprep.mubr.bf16.mxu0 %v4903_v33  ;;  %v4952_v33 = vld [vmem:[#allocation2 + $0x384] ss:$16 sps:$4 sm:$0xff]  }
 0x40e   :  { %2825 = vmatpush2.bf16.msra.mxu0 %v2503_v7  ;;  %4376 = vmatpush2.bf16.msra.mxu1 %v2503_v7  ;;  %v4951_v7 = vld [vmem:[#allocation2 + $0x1c8] ss:$16 sps:$4 sm:$0xff]  }
 0x40f   :  { %2826 = vmatprep.subr.bf16.mxu0 %v5025_v28  ;;  %4361 = vmatprep.subr.bf16.mxu1 %v5025_v28 }
 0x411   :  { %2662 = vmatmul.mubr.bf16.gmra.mxu0 %v4904_v52 }
 0x412   :  { %2827 = vmatpush2.bf16.msra.mxu0 %v2502_v30  ;;  %4377 = vmatpush2.bf16.msra.mxu1 %v2502_v30  ;;  %v4953_v30 = vld [vmem:[#allocation2 + $0x1ec] ss:$16 sps:$4 sm:$0xff]  }
 0x413   :  { %2828 = vmatprep.subr.bf16.mxu0 %v5025_v28  ;;  %4362 = vmatprep.subr.bf16.mxu1 %v5025_v28  ;;  %v4912_v28 = vld [vmem:[#allocation2 + $0x244] ss:$16 sps:$4 sm:$0xff]  }
 0x414   :  { %2669 = vmatprep.mubr.bf16.mxu0 %v4905_v5 }
 0x416   :  { %2829 = vmatpush2.bf16.msra.mxu0 %v2501_v4  ;;  %4378 = vmatpush2.bf16.msra.mxu1 %v2501_v4 }
 0x419   :  { %2670 = vmatmul.mubr.bf16.gmra.mxu0 %v4906_v6  ;;  %2855 = vmatmul.mubr.bf16.vlgmr.msra.gmra.mxu1 %v4907_v49  ;;  %v4954_v49 = vld [vmem:[#allocation2 + $0x380] ss:$16 sps:$4 sm:$0xff]  }
 0x41a   :  { %2677 = vmatprep.mubr.bf16.mxu0 %v4908_v9  ;;  %2862 = vmatprep.mubr.bf16.mxu1 %v4909_v50  ;;  %v4955_v9 = vld [vmem:[#allocation2 + $0x1e8] ss:$16 sps:$4 sm:$0xff]   ;;  %v4956_v50 = vld [vmem:[#allocation2 + $0x3a4] ss:$16 sps:$4 sm:$0xff]  }
 0x421   :  { %2678 = vmatmul.mubr.bf16.gmra.mxu0 %v4910_v13  ;;  %2863 = vmatmul.mubr.bf16.gmra.mxu1 %v4911_v24  ;;  %v4957_v13 = vld [vmem:[#allocation2 + $0x20c] ss:$16 sps:$4 sm:$0xff]  }
 0x422   :  { %2685 = vmatprep.mubr.bf16.mxu0 %v4912_v28  ;;  %2870 = vmatprep.mubr.bf16.mxu1 %v4913_v10 }
 0x429   :  { %2686 = vmatmul.mubr.bf16.gmra.mxu0 %v4914_v12  ;;  %2871 = vmatmul.mubr.bf16.gmra.mxu1 %v4915_v26  ;;  %v4958_v26 = vld [vmem:[#allocation2 + $0x3a0] ss:$16 sps:$4 sm:$0xff]  }
 0x42a   :  { %2693 = vmatprep.mubr.bf16.mxu0 %v4916_v2  ;;  %2878 = vmatprep.mubr.bf16.mxu1 %v4917_v58  ;;  %v4959_v2 = vld [vmem:[#allocation2 + $0x208] ss:$16 sps:$4 sm:$0xff]   ;;  %v4960_v58 = vld [vmem:[#allocation2 + $0x3c4] ss:$16 sps:$4 sm:$0xff]  }
 0x431   :  { %2694 = vmatmul.mubr.bf16.gmra.mxu0 %v4918_v55  ;;  %2879 = vmatmul.mubr.bf16.gmra.mxu1 %v4919_v1  ;;  %v4961_v55 = vld [vmem:[#allocation2 + $0x22c] ss:$16 sps:$4 sm:$0xff]  }
 0x432   :  { %2701 = vmatprep.mubr.bf16.mxu0 %v4920_v11  ;;  %2886 = vmatprep.mubr.bf16.mxu1 %v4921_v45 }
 0x439   :  { %2702 = vmatmul.mubr.bf16.gmra.mxu0 %v4922_v29  ;;  %2887 = vmatmul.mubr.bf16.gmra.mxu1 %v4923_v18  ;;  %v4962_v18 = vld [vmem:[#allocation2 + $0x3c0] ss:$16 sps:$4 sm:$0xff]  }
 0x43a   :  { %2709 = vmatprep.mubr.bf16.mxu0 %v4924_v20  ;;  %2894 = vmatprep.mubr.bf16.mxu1 %v4925_v21  ;;  %v4963_v20 = vld [vmem:[#allocation2 + $0x228] ss:$16 sps:$4 sm:$0xff]   ;;  %v4964_v21 = vld [vmem:[#allocation2 + $0x3e4] ss:$16 sps:$4 sm:$0xff]  }
 0x441   :  { %2710 = vmatmul.mubr.bf16.gmra.mxu0 %v4926_v46  ;;  %2895 = vmatmul.mubr.bf16.gmra.mxu1 %v4927_v3  ;;  %v4965_v46 = vld [vmem:[#allocation2 + $0x24c] ss:$16 sps:$4 sm:$0xff]  }
 0x442   :  { %2717 = vmatprep.mubr.bf16.mxu0 %v4928_v27  ;;  %2902 = vmatprep.mubr.bf16.mxu1 %v4929_v51 }
 0x449   :  { %2718 = vmatmul.mubr.bf16.gmra.mxu0 %v4930_v63  ;;  %2903 = vmatmul.mubr.bf16.gmra.mxu1 %v4931_v43  ;;  %v4966_v43 = vld [vmem:[#allocation2 + $0x3e0] ss:$16 sps:$4 sm:$0xff]  }
 0x44a   :  { %2725 = vmatprep.mubr.bf16.mxu0 %v4932_v8  ;;  %2910 = vmatprep.mubr.bf16.mxu1 %v4933_v61  ;;  %v4967_v8 = vld [vmem:[#allocation2 + $0x248] ss:$16 sps:$4 sm:$0xff]   ;;  %v4968_v61 = vld [vmem:[#allocation2 + $0xc] ss:$16 sps:$4 sm:$0xff]  }
 0x451   :  { %2726 = vmatmul.mubr.bf16.gmra.mxu0 %v4934_v37  ;;  %2911 = vmatmul.mubr.bf16.gmra.mxu1 %v4935_v31  ;;  %v4969_v37 = vld [vmem:[#allocation2 + $0x26c] ss:$16 sps:$4 sm:$0xff]  }
 0x452   :  { %2733 = vmatprep.mubr.bf16.mxu0 %v4936_v19  ;;  %2918 = vmatprep.mubr.bf16.mxu1 %v4937_v40 }
 0x459   :  { %v5556_v17 = vpop.f32.mrf.mxu0  ;;  %2734 = vmatmul.mubr.bf16.gmra.mxu0 %v4938_v16  ;;  %2919 = vmatmul.mubr.bf16.gmra.mxu1 %v4939_v22  ;;  %v4970_v22 = vld [vmem:[#allocation2 + $0x8] ss:$16 sps:$4 sm:$0xff]  }
 0x45a   :  { %2741 = vmatprep.mubr.bf16.mxu0 %v4940_v42  ;;  %2926 = vmatprep.mubr.bf16.mxu1 %v4941_v34  ;;  %v4971_v42 = vld [vmem:[#allocation2 + $0x268] ss:$16 sps:$4 sm:$0xff]   ;;  %v4972_v34 = vld [vmem:[#allocation2 + $0x2c] ss:$16 sps:$4 sm:$0xff]  }
 0x45b   :  { %v2545_v47 = vpop.f32.mrf.mxu0 }
 0x45c   :  { %v4973_v47 = vld [vmem:[#allocation2 + $0x28c] ss:$16 sps:$4 sm:$0xff]  }
 0x45d   :  { %v5558_v53 = vpop.f32.mrf.mxu0 }
 0x45f   :  { %v2548_v14 = vpop.f32.mrf.mxu0 }
 0x461   :  { %v5560_v23 = vpop.f32.mrf.mxu0  ;;  %2742 = vmatmul.mubr.bf16.gmra.mxu0 %v4942_v39  ;;  %2927 = vmatmul.mubr.bf16.gmra.mxu1 %v4943_v25 }
 0x462   :  { %2749 = vmatprep.mubr.bf16.mxu0 %v4944_v15  ;;  %2934 = vmatprep.mubr.bf16.mxu1 %v4945_v59  ;;  %v4974_v59 = vld [vmem:[#allocation2 + $0x28] ss:$16 sps:$4 sm:$0xff]  }
 0x463   :  { %v2553_v48 = vpop.f32.mrf.mxu0 }
 0x464   :  { %v4975_v48 = vld [vmem:[#allocation2 + $0x288] ss:$16 sps:$4 sm:$0xff]  }
 0x465   :  { %v5562_v62 = vpop.f32.mrf.mxu0 }
 0x467   :  { %v2556_v56 = vpop.f32.mrf.mxu0 }
 0x468   :  { %v4976_v56 = vld [vmem:[#allocation2 + $0x4c] ss:$16 sps:$4 sm:$0xff]  }
 0x469   :  { %v5564_v57 = vpop.f32.mrf.mxu0  ;;  %2750 = vmatmul.mubr.bf16.gmra.mxu0 %v4946_v35  ;;  %2935 = vmatmul.mubr.bf16.gmra.mxu1 %v4947_v54  ;;  %v4977_v35 = vld [vmem:[#allocation2 + $0x2ac] ss:$16 sps:$4 sm:$0xff]  }
 0x46a   :  { %2757 = vmatprep.mubr.bf16.mxu0 %v4948_v32  ;;  %2942 = vmatprep.mubr.bf16.mxu1 %v4949_v36 }
 0x46b   :  { %v2561_v60 = vpop.f32.mrf.mxu0 }
 0x46d   :  { %v5566_v38 = vpop.f32.mrf.mxu0 }
 0x46f   :  { %v2564_v41 = vpop.f32.mrf.mxu0 }
 0x470   :  { %v4978_v41 = vld [vmem:[#allocation2 + $0x48] ss:$16 sps:$4 sm:$0xff]  }
 0x471   :  { %v5568_v44 = vpop.f32.mrf.mxu0  ;;  %2758 = vmatmul.mubr.bf16.gmra.mxu0 %v4950_v0  ;;  %2943 = vmatmul.mubr.bf16.gmra.mxu1 %v4951_v7  ;;  %v4979_v0 = vld [vmem:[#allocation2 + $0x2a8] ss:$16 sps:$4 sm:$0xff]   ;;  %v4980_v7 = vld [vmem:[#allocation2 + $0x2cc] ss:$16 sps:$4 sm:$0xff]  }
 0x472   :  { %2765 = vmatprep.mubr.bf16.mxu0 %v4952_v33  ;;  %2950 = vmatprep.mubr.bf16.mxu1 %v4953_v30 }
 0x473   :  { %v2569_v52 = vpop.f32.mrf.mxu0 }
 0x475   :  { %v5570_v4 = vpop.f32.mrf.mxu0 }
 0x477   :  { %v2572_v5 = vpop.f32.mrf.mxu0 }
 0x479   :  { %v5572_v6 = vpop.f32.mrf.mxu0  ;;  %2766 = vmatmul.mubr.bf16.gmra.mxu0 %v4954_v49  ;;  %2951 = vmatmul.mubr.bf16.gmra.mxu1 %v4955_v9  ;;  %v4981_v49 = vld [vmem:[#allocation2 + $0x2c8] ss:$16 sps:$4 sm:$0xff]   ;;  %v4982_v9 = vld [vmem:[#allocation2 + $0x2ec] ss:$16 sps:$4 sm:$0xff]  }
 0x47a   :  { %2773 = vmatprep.mubr.bf16.mxu0 %v4956_v50  ;;  %2958 = vmatprep.mubr.bf16.mxu1 %v4957_v13 }
 0x47b   :  { %v2577_v24 = vpop.f32.mrf.mxu0 }
 0x47d   :  { %v5574_v28 = vpop.f32.mrf.mxu0 }
 0x47f   :  { %v2580_v10 = vpop.f32.mrf.mxu0 }
 0x481   :  { %v5576_v12 = vpop.f32.mrf.mxu0  ;;  %2774 = vmatmul.mubr.bf16.gmra.mxu0 %v4958_v26  ;;  %2959 = vmatmul.mubr.bf16.gmra.mxu1 %v4959_v2  ;;  %v4983_v26 = vld [vmem:[#allocation2 + $0x2e8] ss:$16 sps:$4 sm:$0xff]   ;;  %v4984_v2 = vld [vmem:[#allocation2 + $0x30c] ss:$16 sps:$4 sm:$0xff]  }
 0x482   :  { %2781 = vmatprep.mubr.bf16.mxu0 %v4960_v58  ;;  %2966 = vmatprep.mubr.bf16.mxu1 %v4961_v55 }
 0x483   :  { %v2585_v1 = vpop.f32.mrf.mxu0 }
 0x485   :  { %v5578_v11 = vpop.f32.mrf.mxu0 }
 0x487   :  { %v2588_v45 = vpop.f32.mrf.mxu0 }
 0x489   :  { %v5580_v29 = vpop.f32.mrf.mxu0  ;;  %2782 = vmatmul.mubr.bf16.gmra.mxu0 %v4962_v18  ;;  %2967 = vmatmul.mubr.bf16.gmra.mxu1 %v4963_v20  ;;  %v4985_v18 = vld [vmem:[#allocation2 + $0x308] ss:$16 sps:$4 sm:$0xff]   ;;  %v4986_v20 = vld [vmem:[#allocation2 + $0x32c] ss:$16 sps:$4 sm:$0xff]  }
 0x48a   :  { %2789 = vmatprep.mubr.bf16.mxu0 %v4964_v21  ;;  %2974 = vmatprep.mubr.bf16.mxu1 %v4965_v46 }
 0x48b   :  { %v2593_v3 = vpop.f32.mrf.mxu0 }
 0x48d   :  { %v5582_v27 = vpop.f32.mrf.mxu0 }
 0x48f   :  { %v2596_v51 = vpop.f32.mrf.mxu0 }
 0x491   :  { %v5584_v63 = vpop.f32.mrf.mxu0  ;;  %2790 = vmatmul.mubr.bf16.gmra.mxu0 %v4966_v43  ;;  %2975 = vmatmul.mubr.bf16.gmra.mxu1 %v4967_v8  ;;  %v4987_v43 = vld [vmem:[#allocation2 + $0x328] ss:$16 sps:$4 sm:$0xff]   ;;  %v4988_v8 = vld [vmem:[#allocation2 + $0x34c] ss:$16 sps:$4 sm:$0xff]  }
 0x492   :  { %2830 = vmatprep.mubr.bf16.mxu0 %v4968_v61  ;;  %2982 = vmatprep.mubr.bf16.mxu1 %v4969_v37 }
 0x493   :  { %v2601_v31 = vpop.f32.mrf.mxu0 }
 0x495   :  { %v5586_v19 = vpop.f32.mrf.mxu0 }
 0x497   :  { %v2604_v40 = vpop.f32.mrf.mxu0 }
 0x499   :  { %v5588_v16 = vpop.f32.mrf.mxu0  ;;  %2831 = vmatmul.mubr.bf16.vlgmr.msra.gmra.mxu0 %v4970_v22  ;;  %2983 = vmatmul.mubr.bf16.gmra.mxu1 %v4971_v42  ;;  %v4989_v22 = vld [vmem:[#allocation2 + $0x348] ss:$16 sps:$4 sm:$0xff]   ;;  %v3087_v42 = vlaneseq }
 0x49a   :  { %2838 = vmatprep.mubr.bf16.mxu0 %v4972_v34  ;;  %2990 = vmatprep.mubr.bf16.mxu1 %v4973_v47  ;;  %v4990_v34 = vld [vmem:[#allocation2 + $0x36c] ss:$16 sps:$4 sm:$0xff]  }
 0x49b   :  { %v2609_v14 = vpop.f32.mrf.mxu0 }
 0x49d   :  { %v5590_v39 = vpop.f32.mrf.mxu0 }
 0x49f   :  { %v2612_v25 = vpop.f32.mrf.mxu0 }
 0x4a0   :  { %v5620_v25 = vand.u32 127, %v3087_v42  ;;  %v4995_v42 = vld [vmem:[#allocation2 + $0x3a8] ss:$16 sps:$4 sm:$0xff]  }
 0x4a1   :  { %v5592_v15 = vpop.f32.mrf.mxu0  ;;  %2839 = vmatmul.mubr.bf16.gmra.mxu0 %v4974_v59  ;;  %2991 = vmatmul.mubr.bf16.gmra.mxu1 %v4975_v48 }
 0x4a2   :  { %2846 = vmatprep.mubr.bf16.mxu0 %v4976_v56  ;;  %2998 = vmatprep.mubr.bf16.mxu1 %v4977_v35  ;;  %v4991_v35 = vld [vmem:[#allocation2 + $0x368] ss:$16 sps:$4 sm:$0xff]   ;;  %vm3089_vm1 = vcmp.lt.s32.totalorder %v5620_v25, 10 }
 0x4a3   :  { %v2617_v54 = vpop.f32.mrf.mxu0 }
 0x4a5   :  { %v5594_v32 = vpop.f32.mrf.mxu0 }
 0x4a7   :  { %v2620_v36 = vpop.f32.mrf.mxu0 }
 0x4a8   :  { %v4992_v36 = vld [vmem:[#allocation2 + $0x38c] ss:$16 sps:$4 sm:$0xff]  }
 0x4a9   :  { %v5596_v60 = vpop.f32.mrf.mxu0  ;;  %2847 = vmatmul.mubr.bf16.gmra.mxu0 %v4978_v41  ;;  %2999 = vmatmul.mubr.bf16.gmra.mxu1 %v4979_v0 }
 0x4aa   :  { %3006 = vmatprep.mubr.bf16.mxu1 %v4980_v7 }
 0x4ab   :  { %v2625_v33 = vpop.f32.mrf.mxu0 }
 0x4ad   :  { %v5598_v30 = vpop.f32.mrf.mxu0 }
 0x4af   :  { %v2628_v52 = vpop.f32.mrf.mxu0 }
 0x4b1   :  { %v5600_v5 = vpop.f32.mrf.mxu0  ;;  %3007 = vmatmul.mubr.bf16.gmra.mxu1 %v4981_v49 }
 0x4b2   :  { %3014 = vmatprep.mubr.bf16.mxu1 %v4982_v9 }
 0x4b3   :  { %v2633_v50 = vpop.f32.mrf.mxu0 }
 0x4b5   :  { %v5602_v13 = vpop.f32.mrf.mxu0 }
 0x4b7   :  { %v2636_v24 = vpop.f32.mrf.mxu0 }
 0x4b9   :  { %v5604_v10 = vpop.f32.mrf.mxu0  ;;  %3015 = vmatmul.mubr.bf16.gmra.mxu1 %v4983_v26 }
 0x4ba   :  { %3022 = vmatprep.mubr.bf16.mxu1 %v4984_v2  ;;  %v4993_v2 = vld [vmem:[#allocation2 + $0x388] ss:$16 sps:$4 sm:$0xff]  }
 0x4bb   :  { %v2641_v58 = vpop.f32.mrf.mxu0 }
 0x4bd   :  { %v5606_v55 = vpop.f32.mrf.mxu0 }
 0x4bf   :  { %v2644_v1 = vpop.f32.mrf.mxu0 }
 0x4c0   :  { %v4994_v1 = vld [vmem:[#allocation2 + $0x3ac] ss:$16 sps:$4 sm:$0xff]  }
 0x4c1   :  { %v5608_v45 = vpop.f32.mrf.mxu0  ;;  %3023 = vmatmul.mubr.bf16.gmra.mxu1 %v4985_v18 }
 0x4c2   :  { %3030 = vmatprep.mubr.bf16.mxu1 %v4986_v20 }
 0x4c3   :  { %v2649_v21 = vpop.f32.mrf.mxu0 }
 0x4c5   :  { %v5610_v46 = vpop.f32.mrf.mxu0 }
 0x4c7   :  { %v2652_v3 = vpop.f32.mrf.mxu0 }
 0x4c9   :  { %v5612_v51 = vpop.f32.mrf.mxu0  ;;  %3031 = vmatmul.mubr.bf16.gmra.mxu1 %v4987_v43 }
 0x4ca   :  { %3038 = vmatprep.mubr.bf16.mxu1 %v4988_v8 }
 0x4cb   :  { %v2657_v61 = vpop.f32.mrf.mxu0 }
 0x4cd   :  { %v5614_v37 = vpop.f32.mrf.mxu0 }
 0x4cf   :  { %v2660_v31 = vpop.f32.mrf.mxu0 }
 0x4d1   :  { %v5616_v40 = vpop.f32.mrf.mxu0  ;;  %3039 = vmatmul.mubr.bf16.gmra.mxu1 %v4989_v22 }
 0x4d2   :  { %3046 = vmatprep.mubr.bf16.mxu1 %v4990_v34 }
 0x4d3   :  { %v2665_v47 = vpop.f32.mrf.mxu0 }
 0x4d4   :  { %v4996_v47 = vld [vmem:[#allocation2 + $0x3cc] ss:$16 sps:$4 sm:$0xff]  }
 0x4d5   :  { %v5618_v14 = vpop.f32.mrf.mxu0 }
 0x4d7   :  { %v2668_v59 = vpop.f32.mrf.mxu0 }
 0x4d9   :  { %v5622_v48 = vpop.f32.mrf.mxu0  ;;  %v2856_v56 = vpop.f32.mrf.mxu1  ;;  %3047 = vmatmul.mubr.bf16.gmra.mxu1 %v4991_v35 }
 0x4da   :  { %v2857_v54 = vadd.f32 %v2856_v56, %v5568_v44  ;;  %3054 = vmatprep.mubr.bf16.mxu1 %v4992_v36 }
 0x4db   :  { %v2673_v41 = vpop.f32.mrf.mxu0  ;;  %v2858_v0 = vpop.f32.mrf.mxu1 }
 0x4dc   :  { %v5628_v7 = vsel %vm3089_vm1, %v2857_v54, -inf }
 0x4dd   :  { %v5630_v33 = vpop.f32.mrf.mxu0  ;;  %v2859_v52 = vpop.f32.mrf.mxu1  ;;  %3166 = vmax.xlane.f32.xlu0 %v5628_v7 }
 0x4de   :  { %v2860_v49 = vadd.f32 %v2859_v52, %v5570_v4 }
 0x4df   :  { %v2676_v9 = vpop.f32.mrf.mxu0  ;;  %v2861_v50 = vpop.f32.mrf.mxu1 }
 0x4e0   :  { %v5636_v44 = vsel %vm3089_vm1, %v2860_v49, -inf  ;;  %v4997_v9 = vld [vmem:[#allocation2 + $0x3c8] ss:$16 sps:$4 sm:$0xff]  }
 0x4e1   :  { %6730 = vst [vmem:[#allocation5_spill] sm:$0xff] %v5636_v44  ;;  %v5638_v24 = vpop.f32.mrf.mxu0  ;;  %v2864_v26 = vpop.f32.mrf.mxu1  ;;  %3055 = vmatmul.mubr.bf16.gmra.mxu1 %v4993_v2  ;;  %3168 = vmax.xlane.f32.xlu1 %v5636_v44 }
 0x4e2   :  { %v2865_v58 = vadd.f32 %v2864_v26, %v5572_v6  ;;  %3062 = vmatprep.mubr.bf16.mxu1 %v4994_v1  ;;  %v4998_v26 = vld [vmem:[#allocation2 + $0x3ec] ss:$16 sps:$4 sm:$0xff]  }
 0x4e3   :  { %v2681_v18 = vpop.f32.mrf.mxu0  ;;  %v2866_v20 = vpop.f32.mrf.mxu1 }
 0x4e4   :  { %v5644_v4 = vsel %vm3089_vm1, %v2865_v58, -inf }
 0x4e5   :  { %v5646_v21 = vpop.f32.mrf.mxu0  ;;  %v2867_v3 = vpop.f32.mrf.mxu1  ;;  %3170 = vmax.xlane.f32.xlu0 %v5644_v4 }
 0x4e6   :  { %v2868_v43 = vadd.f32 %v2867_v3, %v5574_v28 }
 0x4e7   :  { %v2684_v8 = vpop.f32.mrf.mxu0  ;;  %v2869_v61 = vpop.f32.mrf.mxu1 }
 0x4e8   :  { %v5652_v6 = vsel %vm3089_vm1, %v2868_v43, -inf }
 0x4e9   :  { %6731 = vst [vmem:[#allocation6_spill] sm:$0xff] %v5652_v6  ;;  %v5654_v31 = vpop.f32.mrf.mxu0  ;;  %v2872_v22 = vpop.f32.mrf.mxu1  ;;  %3063 = vmatmul.mubr.bf16.gmra.mxu1 %v4995_v42  ;;  %3172 = vmax.xlane.f32.xlu1 %v5652_v6 }
 0x4ea   :  { %v2873_v34 = vadd.f32 %v2872_v22, %v5576_v12  ;;  %3070 = vmatprep.mubr.bf16.mxu1 %v4996_v47  ;;  %v4999_v22 = vld [vmem:[#allocation2 + $0x3e8] ss:$16 sps:$4 sm:$0xff]  }
 0x4eb   :  { %v2689_v59 = vpop.f32.mrf.mxu0  ;;  %v2874_v56 = vpop.f32.mrf.mxu1 }
 0x4ec   :  { %v5660_v28 = vsel %vm3089_vm1, %v2873_v34, -inf }
 0x4ed   :  { %6732 = vst [vmem:[#allocation7_spill] sm:$0xff] %v5660_v28  ;;  %v5662_v35 = vpop.f32.mrf.mxu0  ;;  %v2875_v54 = vpop.f32.mrf.mxu1  ;;  %3174 = vmax.xlane.f32.xlu0 %v5660_v28 }
 0x4ee   :  { %v2876_v36 = vadd.f32 %v2875_v54, %v5578_v11 }
 0x4ef   :  { %v2692_v41 = vpop.f32.mrf.mxu0  ;;  %v2877_v0 = vpop.f32.mrf.mxu1 }
 0x4f0   :  { %v5668_v12 = vsel %vm3089_vm1, %v2876_v36, -inf }
 0x4f1   :  { %6733 = vst [vmem:[#allocation8_spill] sm:$0xff] %v5668_v12  ;;  %v5670_v52 = vpop.f32.mrf.mxu0  ;;  %v2880_v49 = vpop.f32.mrf.mxu1  ;;  %3071 = vmatmul.mubr.bf16.gmra.mxu1 %v4997_v9  ;;  %3176 = vmax.xlane.f32.xlu1 %v5668_v12 }
 0x4f2   :  { %v2881_v50 = vadd.f32 %v2880_v49, %v5580_v29  ;;  %3078 = vmatprep.mubr.bf16.mxu1 %v4998_v26 }
 0x4f3   :  { %v2697_v2 = vpop.f32.mrf.mxu0  ;;  %v2882_v58 = vpop.f32.mrf.mxu1 }
 0x4f4   :  { %v5676_v11 = vsel %vm3089_vm1, %v2881_v50, -inf }
 0x4f5   :  { %6734 = vst [vmem:[#allocation9_spill] sm:$0xff] %v5676_v11  ;;  %v5678_v1 = vpop.f32.mrf.mxu0  ;;  %v2883_v18 = vpop.f32.mrf.mxu1  ;;  %3178 = vmax.xlane.f32.xlu0 %v5676_v11 }
 0x4f6   :  { %v2884_v20 = vadd.f32 %v2883_v18, %v5582_v27 }
 0x4f7   :  { %v2700_v3 = vpop.f32.mrf.mxu0  ;;  %v2885_v43 = vpop.f32.mrf.mxu1 }
 0x4f8   :  { %v5684_v29 = vsel %vm3089_vm1, %v2884_v20, -inf }
 0x4f9   :  { %6735 = vst [vmem:[#allocation10_spill] sm:$0xff] %v5684_v29  ;;  %v5686_v8 = vpop.f32.mrf.mxu0  ;;  %v2888_v61 = vpop.f32.mrf.mxu1  ;;  %3079 = vmatmul.mubr.bf16.gmra.mxu1 %v4999_v22  ;;  %3180 = vmax.xlane.f32.xlu1 %v5684_v29 }
 0x4fa   :  { %v2889_v42 = vadd.f32 %v2888_v61, %v5584_v63 }
 0x4fb   :  { %v2705_v34 = vpop.f32.mrf.mxu0  ;;  %v2890_v47 = vpop.f32.mrf.mxu1 }
 0x4fc   :  { %v5692_v27 = vsel %vm3089_vm1, %v2889_v42, -inf }
 0x4fd   :  { %6736 = vst [vmem:[#allocation11_spill] sm:$0xff] %v5692_v27  ;;  %v5694_v59 = vpop.f32.mrf.mxu0  ;;  %v2891_v56 = vpop.f32.mrf.mxu1  ;;  %3182 = vmax.xlane.f32.xlu0 %v5692_v27 }
 0x4fe   :  { %v2892_v54 = vadd.f32 %v2891_v56, %v5586_v19 }
 0x4ff   :  { %v2708_v36 = vpop.f32.mrf.mxu0  ;;  %v2893_v41 = vpop.f32.mrf.mxu1 }
 0x500   :  { %v5700_v0 = vsel %vm3089_vm1, %v2892_v54, -inf }
 0x501   :  { %6737 = vst [vmem:[#allocation12_spill] sm:$0xff] %v5700_v0  ;;  %v5702_v63 = vpop.f32.mrf.mxu0  ;;  %v2896_v49 = vpop.f32.mrf.mxu1  ;;  %3184 = vmax.xlane.f32.xlu1 %v5700_v0 }
 0x502   :  { %v2897_v9 = vadd.f32 %v2896_v49, %v5588_v16 }
 0x503   :  { %v2713_v50 = vpop.f32.mrf.mxu0  ;;  %v2898_v26 = vpop.f32.mrf.mxu1 }
 0x504   :  { %v5708_v2 = vsel %vm3089_vm1, %v2897_v9, -inf }
 0x505   :  { %6738 = vst [vmem:[#allocation13_spill] sm:$0xff] %v5708_v2  ;;  %v5710_v19 = vpop.f32.mrf.mxu0  ;;  %v2899_v58 = vpop.f32.mrf.mxu1  ;;  %3186 = vmax.xlane.f32.xlu0 %v5708_v2 }
 0x506   :  { %v2900_v18 = vadd.f32 %v2899_v58, %v5590_v39 }
 0x507   :  { %v2716_v20 = vpop.f32.mrf.mxu0  ;;  %v2901_v3 = vpop.f32.mrf.mxu1 }
 0x508   :  { %v5716_v43 = vsel %vm3089_vm1, %v2900_v18, -inf }
 0x509   :  { %6739 = vst [vmem:[#allocation14_spill] sm:$0xff] %v5716_v43  ;;  %v5718_v16 = vpop.f32.mrf.mxu0  ;;  %v2904_v61 = vpop.f32.mrf.mxu1  ;;  %3188 = vmax.xlane.f32.xlu1 %v5716_v43 }
 0x50a   :  { %v2905_v22 = vadd.f32 %v2904_v61, %v5592_v15 }
 0x50b   :  { %v2721_v42 = vpop.f32.mrf.mxu0  ;;  %v2906_v34 = vpop.f32.mrf.mxu1 }
 0x50c   :  { %v5724_v47 = vsel %vm3089_vm1, %v2905_v22, -inf }
 0x50d   :  { %6740 = vst [vmem:[#allocation15_spill] sm:$0xff] %v5724_v47  ;;  %v5726_v39 = vpop.f32.mrf.mxu0  ;;  %v2907_v56 = vpop.f32.mrf.mxu1  ;;  %3190 = vmax.xlane.f32.xlu0 %v5724_v47 }
 0x50e   :  { %v2908_v54 = vadd.f32 %v2907_v56, %v5594_v32 }
 0x50f   :  { %v2724_v36 = vpop.f32.mrf.mxu0  ;;  %v2909_v41 = vpop.f32.mrf.mxu1 }
 0x510   :  { %v5732_v49 = vsel %vm3089_vm1, %v2908_v54, -inf }
 0x511   :  { %6741 = vst [vmem:[#allocation16_spill] sm:$0xff] %v5732_v49  ;;  %v5734_v15 = vpop.f32.mrf.mxu0  ;;  %v2912_v9 = vpop.f32.mrf.mxu1  ;;  %3192 = vmax.xlane.f32.xlu1 %v5732_v49 }
 0x512   :  { %v2913_v50 = vadd.f32 %v2912_v9, %v5596_v60 }
 0x513   :  { %v2729_v26 = vpop.f32.mrf.mxu0  ;;  %v2914_v58 = vpop.f32.mrf.mxu1 }
 0x514   :  { %v5740_v18 = vsel %vm3089_vm1, %v2913_v50, -inf }
 0x515   :  { %6742 = vst [vmem:[#allocation17_spill] sm:$0xff] %v5740_v18  ;;  %v5742_v32 = vpop.f32.mrf.mxu0  ;;  %v2915_v20 = vpop.f32.mrf.mxu1  ;;  %3194 = vmax.xlane.f32.xlu0 %v5740_v18 }
 0x516   :  { %v2916_v3 = vadd.f32 %v2915_v20, %v5598_v30 }
 0x517   :  { %v2732_v61 = vpop.f32.mrf.mxu0  ;;  %v2917_v22 = vpop.f32.mrf.mxu1 }
 0x518   :  { %v5748_v42 = vsel %vm3089_vm1, %v2916_v3, -inf }
 0x519   :  { %6743 = vst [vmem:[#allocation18_spill] sm:$0xff] %v5748_v42  ;;  %v5750_v60 = vpop.f32.mrf.mxu0  ;;  %v2920_v34 = vpop.f32.mrf.mxu1  ;;  %3196 = vmax.xlane.f32.xlu1 %v5748_v42 }
 0x51a   :  { %v2921_v56 = vadd.f32 %v2920_v34, %v5600_v5 }
 0x51b   :  { %v2737_v54 = vpop.f32.mrf.mxu0  ;;  %v2922_v36 = vpop.f32.mrf.mxu1 }
 0x51c   :  { %v5756_v41 = vsel %vm3089_vm1, %v2921_v56, -inf }
 0x51d   :  { %6744 = vst [vmem:[#allocation19_spill] sm:$0xff] %v5756_v41  ;;  %v5758_v30 = vpop.f32.mrf.mxu0  ;;  %v2923_v9 = vpop.f32.mrf.mxu1  ;;  %3198 = vmax.xlane.f32.xlu0 %v5756_v41 }
 0x51e   :  { %v2924_v50 = vadd.f32 %v2923_v9, %v5602_v13 }
 0x51f   :  { %v2740_v26 = vpop.f32.mrf.mxu0  ;;  %v2925_v58 = vpop.f32.mrf.mxu1 }
 0x520   :  { %v5764_v20 = vsel %vm3089_vm1, %v2924_v50, -inf }
 0x521   :  { %6745 = vst [vmem:[#allocation20_spill] sm:$0xff] %v5764_v20  ;;  %v5766_v5 = vpop.f32.mrf.mxu0  ;;  %v2928_v3 = vpop.f32.mrf.mxu1  ;;  %3200 = vmax.xlane.f32.xlu1 %v5764_v20 }
 0x522   :  { %v2929_v61 = vadd.f32 %v2928_v3, %v5604_v10 }
 0x523   :  { %v2745_v22 = vpop.f32.mrf.mxu0  ;;  %v2930_v34 = vpop.f32.mrf.mxu1 }
 0x524   :  { %v5772_v56 = vsel %vm3089_vm1, %v2929_v61, -inf }
 0x525   :  { %6746 = vst [vmem:[#allocation21_spill] sm:$0xff] %v5772_v56  ;;  %v5774_v13 = vpop.f32.mrf.mxu0  ;;  %v2931_v54 = vpop.f32.mrf.mxu1  ;;  %3202 = vmax.xlane.f32.xlu0 %v5772_v56 }
 0x526   :  { %v2932_v36 = vadd.f32 %v2931_v54, %v5606_v55 }
 0x527   :  { %v2748_v9 = vpop.f32.mrf.mxu0  ;;  %v2933_v50 = vpop.f32.mrf.mxu1 }
 0x528   :  { %v5780_v26 = vsel %vm3089_vm1, %v2932_v36, -inf }
 0x529   :  { %6747 = vst [vmem:[#allocation22_spill] sm:$0xff] %v5780_v26  ;;  %v5782_v10 = vpop.f32.mrf.mxu0  ;;  %v2936_v58 = vpop.f32.mrf.mxu1  ;;  %3204 = vmax.xlane.f32.xlu1 %v5780_v26 }
 0x52a   :  { %v2937_v3 = vadd.f32 %v2936_v58, %v5608_v45 }
 0x52b   :  { %v2753_v61 = vpop.f32.mrf.mxu0  ;;  %v2938_v22 = vpop.f32.mrf.mxu1 }
 0x52c   :  { %v5788_v34 = vsel %vm3089_vm1, %v2937_v3, -inf }
 0x52d   :  { %6748 = vst [vmem:[#allocation23_spill] sm:$0xff] %v5788_v34  ;;  %v5790_v55 = vpop.f32.mrf.mxu0  ;;  %v2939_v54 = vpop.f32.mrf.mxu1  ;;  %3206 = vmax.xlane.f32.xlu0 %v5788_v34 }
 0x52e   :  { %v2940_v36 = vadd.f32 %v2939_v54, %v5610_v46 }
 0x52f   :  { %v2756_v9 = vpop.f32.mrf.mxu0  ;;  %v2941_v50 = vpop.f32.mrf.mxu1 }
 0x530   :  { %v5796_v26 = vsel %vm3089_vm1, %v2940_v36, -inf }
 0x531   :  { %6749 = vst [vmem:[#allocation24_spill] sm:$0xff] %v5796_v26  ;;  %v5798_v45 = vpop.f32.mrf.mxu0  ;;  %v2944_v58 = vpop.f32.mrf.mxu1  ;;  %3208 = vmax.xlane.f32.xlu1 %v5796_v26 }
 0x532   :  { %v2945_v3 = vadd.f32 %v2944_v58, %v5612_v51 }
 0x533   :  { %v2761_v61 = vpop.f32.mrf.mxu0  ;;  %v2946_v22 = vpop.f32.mrf.mxu1 }
 0x534   :  { %v5804_v34 = vsel %vm3089_vm1, %v2945_v3, -inf }
 0x535   :  { %6750 = vst [vmem:[#allocation25_spill] sm:$0xff] %v5804_v34  ;;  %v5806_v46 = vpop.f32.mrf.mxu0  ;;  %v2947_v54 = vpop.f32.mrf.mxu1  ;;  %3210 = vmax.xlane.f32.xlu0 %v5804_v34 }
 0x536   :  { %v2948_v36 = vadd.f32 %v2947_v54, %v5614_v37 }
 0x537   :  { %v2764_v9 = vpop.f32.mrf.mxu0  ;;  %v2949_v50 = vpop.f32.mrf.mxu1 }
 0x538   :  { %v5812_v26 = vsel %vm3089_vm1, %v2948_v36, -inf }
 0x539   :  { %6751 = vst [vmem:[#allocation26_spill] sm:$0xff] %v5812_v26  ;;  %v5814_v51 = vpop.f32.mrf.mxu0  ;;  %v2952_v58 = vpop.f32.mrf.mxu1  ;;  %3212 = vmax.xlane.f32.xlu1 %v5812_v26 }
 0x53a   :  { %v2953_v3 = vadd.f32 %v2952_v58, %v5616_v40 }
 0x53b   :  { %v2769_v61 = vpop.f32.mrf.mxu0  ;;  %v2954_v22 = vpop.f32.mrf.mxu1 }
 0x53c   :  { %v5820_v34 = vsel %vm3089_vm1, %v2953_v3, -inf }
 0x53d   :  { %6752 = vst [vmem:[#allocation27_spill] sm:$0xff] %v5820_v34  ;;  %v5822_v37 = vpop.f32.mrf.mxu0  ;;  %v2955_v54 = vpop.f32.mrf.mxu1  ;;  %3214 = vmax.xlane.f32.xlu0 %v5820_v34 }
 0x53e   :  { %v2956_v36 = vadd.f32 %v2955_v54, %v5618_v14 }
 0x53f   :  { %v2772_v9 = vpop.f32.mrf.mxu0  ;;  %v2957_v50 = vpop.f32.mrf.mxu1 }
 0x540   :  { %v5828_v26 = vsel %vm3089_vm1, %v2956_v36, -inf }
 0x541   :  { %6753 = vst [vmem:[#allocation28_spill] sm:$0xff] %v5828_v26  ;;  %v5830_v40 = vpop.f32.mrf.mxu0  ;;  %v2960_v58 = vpop.f32.mrf.mxu1  ;;  %3216 = vmax.xlane.f32.xlu1 %v5828_v26 }
 0x542   :  { %v2961_v3 = vadd.f32 %v2960_v58, %v5622_v48 }
 0x543   :  { %v2777_v61 = vpop.f32.mrf.mxu0  ;;  %v2962_v22 = vpop.f32.mrf.mxu1 }
 0x544   :  { %v5836_v34 = vsel %vm3089_vm1, %v2961_v3, -inf  ;;  %v6789_v25 = vld [vmem:[#allocation27_spill] sm:$0xff] }
 0x545   :  { %6754 = vst [vmem:[#allocation29_spill] sm:$0xff] %v5836_v34  ;;  %v5838_v14 = vpop.f32.mrf.mxu0  ;;  %v2963_v54 = vpop.f32.mrf.mxu1  ;;  %3218 = vmax.xlane.f32.xlu0 %v5836_v34 }
 0x546   :  { %v2964_v36 = vadd.f32 %v2963_v54, %v5630_v33 }
 0x547   :  { %v2780_v9 = vpop.f32.mrf.mxu0  ;;  %v2965_v50 = vpop.f32.mrf.mxu1 }
 0x548   :  { %v5844_v26 = vsel %vm3089_vm1, %v2964_v36, -inf }
 0x549   :  { %6755 = vst [vmem:[#allocation30_spill] sm:$0xff] %v5844_v26  ;;  %v5846_v48 = vpop.f32.mrf.mxu0  ;;  %v2968_v58 = vpop.f32.mrf.mxu1  ;;  %3220 = vmax.xlane.f32.xlu1 %v5844_v26 }
 0x54a   :  { %v2969_v3 = vadd.f32 %v2968_v58, %v5638_v24 }
 0x54b   :  { %v2785_v61 = vpop.f32.mrf.mxu0  ;;  %v2970_v22 = vpop.f32.mrf.mxu1 }
 0x54c   :  { %v5852_v34 = vsel %vm3089_vm1, %v2969_v3, -inf }
 0x54d   :  { %6756 = vst [vmem:[#allocation31_spill] sm:$0xff] %v5852_v34  ;;  %v5854_v33 = vpop.f32.mrf.mxu0  ;;  %v2971_v54 = vpop.f32.mrf.mxu1  ;;  %3222 = vmax.xlane.f32.xlu0 %v5852_v34 }
 0x54e   :  { %v2972_v36 = vadd.f32 %v2971_v54, %v5646_v21 }
 0x54f   :  { %v2788_v9 = vpop.f32.mrf.mxu0  ;;  %v2973_v50 = vpop.f32.mrf.mxu1 }
 0x550   :  { %v5860_v26 = vsel %vm3089_vm1, %v2972_v36, -inf }
 0x551   :  { %6757 = vst [vmem:[#allocation32_spill] sm:$0xff] %v5860_v26  ;;  %v5862_v24 = vpop.f32.mrf.mxu0  ;;  %v2976_v58 = vpop.f32.mrf.mxu1  ;;  %3224 = vmax.xlane.f32.xlu1 %v5860_v26 }
 0x552   :  { %v2977_v3 = vadd.f32 %v2976_v58, %v5654_v31 }
 0x553   :  { %v2793_v61 = vpop.f32.mrf.mxu0  ;;  %v2978_v22 = vpop.f32.mrf.mxu1 }
 0x554   :  { %v5868_v34 = vsel %vm3089_vm1, %v2977_v3, -inf }
 0x555   :  { %6758 = vst [vmem:[#allocation33_spill] sm:$0xff] %v5868_v34  ;;  %v5870_v21 = vpop.f32.mrf.mxu0  ;;  %v2979_v54 = vpop.f32.mrf.mxu1  ;;  %3226 = vmax.xlane.f32.xlu0 %v5868_v34 }
 0x556   :  { %6759 = vst [vmem:[#allocation34_spill] sm:$0xff] %v5870_v21  ;;  %v2980_v36 = vadd.f32 %v2979_v54, %v5662_v35 }
 0x557   :  { %v2796_v9 = vpop.f32.mrf.mxu0  ;;  %v2981_v50 = vpop.f32.mrf.mxu1 }
 0x558   :  { %v5876_v26 = vsel %vm3089_vm1, %v2980_v36, -inf }
 0x559   :  { %6760 = vst [vmem:[#allocation35_spill] sm:$0xff] %v5876_v26  ;;  %v2984_v31 = vpop.f32.mrf.mxu1  ;;  %3228 = vmax.xlane.f32.xlu1 %v5876_v26  ;;  %v2832_v58 = vpop.f32.mrf.mxu0 }
 0x55a   :  { %v2833_v3 = vadd.f32 %v2832_v58, %v5556_v17  ;;  %v2985_v21 = vadd.f32 %v2984_v31, %v5670_v52 }
 0x55b   :  { %v2834_v61 = vpop.f32.mrf.mxu0  ;;  %v2986_v22 = vpop.f32.mrf.mxu1 }
 0x55c   :  { %v5883_v34 = vsel %vm3089_vm1, %v2833_v3, -inf  ;;  %v5894_v52 = vsel %vm3089_vm1, %v2985_v21, -inf }
 0x55d   :  { %6761 = vst [vmem:[#allocation36_spill] sm:$0xff] %v5883_v34  ;;  %v2835_v35 = vpop.f32.mrf.mxu0  ;;  %v2987_v54 = vpop.f32.mrf.mxu1  ;;  %3154 = vmax.xlane.f32.xlu0 %v5883_v34  ;;  %6763 = vst [vmem:[#allocation38_spill] sm:$0xff] %v5894_v52 }
 0x55e   :  { %v2988_v36 = vadd.f32 %v2987_v54, %v5678_v1  ;;  %v2836_v26 = vadd.f32 %v2835_v35, %v5558_v53 }
 0x55f   :  { %v2837_v9 = vpop.f32.mrf.mxu0  ;;  %v2989_v50 = vpop.f32.mrf.mxu1 }
 0x560   :  { %v5890_v17 = vsel %vm3089_vm1, %v2988_v36, -inf  ;;  %v5906_v21 = vsel %vm3089_vm1, %v2836_v26, -inf }
 0x561   :  { %6762 = vst [vmem:[#allocation37_spill] sm:$0xff] %v5890_v17  ;;  %v2992_v31 = vpop.f32.mrf.mxu1  ;;  %3232 = vmax.xlane.f32.xlu1 %v5890_v17  ;;  %v2840_v58 = vpop.f32.mrf.mxu0  ;;  %3230 = vmax.xlane.f32.xlu0 %v5894_v52  ;;  %6765 = vst [vmem:[#allocation40_spill] sm:$0xff] %v5906_v21 }
 0x562   :  { %v2841_v1 = vadd.f32 %v2840_v58, %v5560_v23  ;;  %v2993_v53 = vadd.f32 %v2992_v31, %v5686_v8 }
 0x563   :  { %v2842_v3 = vpop.f32.mrf.mxu0  ;;  %v2994_v61 = vpop.f32.mrf.mxu1 }
 0x564   :  { %v5902_v22 = vsel %vm3089_vm1, %v2841_v1, -inf  ;;  %v5922_v58 = vsel %vm3089_vm1, %v2993_v53, -inf }
 0x565   :  { %6764 = vst [vmem:[#allocation39_spill] sm:$0xff] %v5902_v22  ;;  %v2843_v35 = vpop.f32.mrf.mxu0  ;;  %v2995_v54 = vpop.f32.mrf.mxu1  ;;  %3158 = vmax.xlane.f32.xlu1 %v5902_v22  ;;  %3156 = vmax.xlane.f32.xlu0 %v5906_v21 }
 0x566   :  { %v2844_v23 = vadd.f32 %v2843_v35, %v5562_v62  ;;  %v5911_v36 = vpop.xlane.xlu0 %3166  ;;  %v2996_v31 = vadd.f32 %v2995_v54, %v5694_v59 }
 0x567   :  { %v3288_v8 = vsub.f32 %v5628_v7, %v5911_v36  ;;  %v2845_v9 = vpop.f32.mrf.mxu0  ;;  %v2997_v50 = vpop.f32.mrf.mxu1 }
 0x568   :  { %v5918_v26 = vsel %vm3089_vm1, %v2844_v23, -inf }
 0x569   :  { %6766 = vst [vmem:[#allocation41_spill] sm:$0xff] %v5918_v26  ;;  %v3358_v1 = vmul.f32 1.442695, %v3288_v8  ;;  %v2848_v3 = vpop.f32.mrf.mxu0  ;;  %v3000_v62 = vpop.f32.mrf.mxu1  ;;  %3160 = vmax.xlane.f32.xlu1 %v5918_v26  ;;  %3234 = vmax.xlane.f32.xlu0 %v5922_v58  ;;  %v5934_v8 = vsel %vm3089_vm1, %v2996_v31, -inf }
 0x56a   :  { %v2849_v61 = vadd.f32 %v2848_v3, %v5564_v57  ;;  %v5927_v35 = vpop.xlane.xlu1 %3168  ;;  %v3001_v53 = vadd.f32 %v3000_v62, %v5702_v63  ;;  %6767 = vst [vmem:[#allocation42_spill] sm:$0xff] %v5934_v8 }
 0x56b   :  { %4616 = vpow2.f32 %v3358_v1  ;;  %v3289_v59 = vsub.f32 %v5636_v44, %v5927_v35  ;;  %v2850_v54 = vpop.f32.mrf.mxu0  ;;  %v3002_v23 = vpop.f32.mrf.mxu1 }
 0x56c   :  { %v5938_v9 = vsel %vm3089_vm1, %v2849_v61, -inf  ;;  %v5954_v23 = vsel %vm3089_vm1, %v3001_v53, -inf }
 0x56d   :  { %v3360_v50 = vmul.f32 1.442695, %v3289_v59  ;;  %v2851_v57 = vpop.f32.mrf.mxu0  ;;  %v3003_v3 = vpop.f32.mrf.mxu1  ;;  %3236 = vmax.xlane.f32.xlu1 %v5934_v8  ;;  %3162 = vmax.xlane.f32.xlu0 %v5938_v9 }
 0x56e   :  { %v2852_v1 = vadd.f32 %v2851_v57, %v5566_v38  ;;  %v5943_v54 = vpop.xlane.xlu0 %3170  ;;  %v3004_v61 = vadd.f32 %v3003_v3, %v5710_v19 }
 0x56f   :  { %4618 = vpow2.f32 %v3360_v50  ;;  %v3290_v63 = vsub.f32 %v5644_v4, %v5943_v54  ;;  %v3005_v31 = vpop.f32.mrf.mxu1  ;;  %v2853_v62 = vpop.f32.mrf.mxu0 }
 0x570   :  { %v5950_v59 = vsel %vm3089_vm1, %v2852_v1, -inf  ;;  %v5965_v1 = vsel %vm3089_vm1, %v3004_v61, -inf }
 0x571   :  { %6768 = vst [vmem:[#allocation43_spill] sm:$0xff] %v5950_v59  ;;  %v3362_v44 = vmul.f32 1.442695, %v3290_v63  ;;  %v3008_v38 = vpop.f32.mrf.mxu1  ;;  %3164 = vmax.xlane.f32.xlu1 %v5950_v59  ;;  %3238 = vmax.xlane.f32.xlu0 %v5954_v23  ;;  %6769 = vst [vmem:[#allocation44_spill] sm:$0xff] %v5965_v1 }
 0x572   :  { %v3009_v50 = vadd.f32 %v3008_v38, %v5718_v16  ;;  %v5959_v57 = vpop.xlane.xlu1 %3172 }
 0x573   :  { %4620 = vpow2.f32 %v3362_v44  ;;  %v3291_v19 = vsub.f32 %v5652_v6, %v5959_v57  ;;  %v3010_v3 = vpop.f32.mrf.mxu1 }
 0x574   :  { %v5969_v53 = vsel %vm3089_vm1, %v3009_v50, -inf }
 0x575   :  { %6770 = vst [vmem:[#allocation45_spill] sm:$0xff] %v5969_v53  ;;  %v3364_v63 = vmul.f32 1.442695, %v3291_v19  ;;  %v3011_v31 = vpop.f32.mrf.mxu1  ;;  %3240 = vmax.xlane.f32.xlu1 %v5965_v1  ;;  %3242 = vmax.xlane.f32.xlu0 %v5969_v53 }
 0x576   :  { %v3012_v44 = vadd.f32 %v3011_v31, %v5726_v39  ;;  %v5974_v16 = vpop.xlane.xlu0 %3174 }
 0x577   :  { %4622 = vpow2.f32 %v3364_v63  ;;  %v3292_v62 = vsub.f32 %v5660_v28, %v5974_v16  ;;  %v3013_v61 = vpop.f32.mrf.mxu1 }
 0x578   :  { %v4617_v38 = vpop.eup %4616  ;;  %v5980_v50 = vsel %vm3089_vm1, %v3012_v44, -inf }
 0x579   :  { %v3366_v19 = vmul.f32 1.442695, %v3292_v62  ;;  %v3016_v3 = vpop.f32.mrf.mxu1  ;;  %3244 = vmax.xlane.f32.xlu1 %v5980_v50  ;;  %3486 = vadd.xlane.f32.xlu0 %v4617_v38 }
 0x57a   :  { %v3017_v6 = vadd.f32 %v3016_v3, %v5734_v15  ;;  %v5984_v39 = vpop.xlane.xlu1 %3176 }
 0x57b   :  { %4624 = vpow2.f32 %v3366_v19  ;;  %v3293_v63 = vsub.f32 %v5668_v12, %v5984_v39  ;;  %v3018_v31 = vpop.f32.mrf.mxu1 }
 0x57c   :  { %v4619_v61 = vpop.eup %4618  ;;  %v5990_v28 = vsel %vm3089_vm1, %v3017_v6, -inf }
 0x57d   :  { %v3368_v44 = vmul.f32 1.442695, %v3293_v63  ;;  %v3019_v62 = vpop.f32.mrf.mxu1  ;;  %3488 = vadd.xlane.f32.xlu1 %v4619_v61  ;;  %3246 = vmax.xlane.f32.xlu0 %v5990_v28 }
 0x57e   :  { %v3020_v38 = vadd.f32 %v3019_v62, %v5742_v32  ;;  %v5994_v15 = vpop.xlane.xlu0 %3178 }
 0x57f   :  { %4626 = vpow2.f32 %v3368_v44  ;;  %v3294_v19 = vsub.f32 %v5676_v11, %v5994_v15  ;;  %v3021_v3 = vpop.f32.mrf.mxu1 }
 0x580   :  { %v4621_v31 = vpop.eup %4620  ;;  %v6000_v12 = vsel %vm3089_vm1, %v3020_v38, -inf }
 0x581   :  { %6771 = vst [vmem:[#allocation46_spill] sm:$0xff] %v6000_v12  ;;  %v3370_v6 = vmul.f32 1.442695, %v3294_v19  ;;  %v3024_v63 = vpop.f32.mrf.mxu1  ;;  %3248 = vmax.xlane.f32.xlu1 %v6000_v12  ;;  %3490 = vadd.xlane.f32.xlu0 %v4621_v31 }
 0x582   :  { %v3025_v61 = vadd.f32 %v3024_v63, %v5750_v60  ;;  %v6004_v32 = vpop.xlane.xlu1 %3180 }
 0x583   :  { %4628 = vpow2.f32 %v3370_v6  ;;  %v3295_v44 = vsub.f32 %v5684_v29, %v6004_v32  ;;  %v3026_v62 = vpop.f32.mrf.mxu1 }
 0x584   :  { %v4623_v3 = vpop.eup %4622  ;;  %v6010_v11 = vsel %vm3089_vm1, %v3025_v61, -inf }
 0x585   :  { %6772 = vst [vmem:[#allocation47_spill] sm:$0xff] %v6010_v11  ;;  %v3372_v38 = vmul.f32 1.442695, %v3295_v44  ;;  %v3027_v19 = vpop.f32.mrf.mxu1  ;;  %3492 = vadd.xlane.f32.xlu1 %v4623_v3  ;;  %3250 = vmax.xlane.f32.xlu0 %v6010_v11 }
 0x586   :  { %v3028_v31 = vadd.f32 %v3027_v19, %v5758_v30  ;;  %v6014_v60 = vpop.xlane.xlu0 %3182 }
 0x587   :  { %4630 = vpow2.f32 %v3372_v38  ;;  %v3296_v6 = vsub.f32 %v5692_v27, %v6014_v60  ;;  %v3029_v63 = vpop.f32.mrf.mxu1 }
 0x588   :  { %v4625_v62 = vpop.eup %4624  ;;  %v6020_v29 = vsel %vm3089_vm1, %v3028_v31, -inf }
 0x589   :  { %6773 = vst [vmem:[#allocation48_spill] sm:$0xff] %v6020_v29  ;;  %v3374_v61 = vmul.f32 1.442695, %v3296_v6  ;;  %v3032_v44 = vpop.f32.mrf.mxu1  ;;  %3252 = vmax.xlane.f32.xlu1 %v6020_v29  ;;  %3494 = vadd.xlane.f32.xlu0 %v4625_v62 }
 0x58a   :  { %v3033_v3 = vadd.f32 %v3032_v44, %v5766_v5  ;;  %v6024_v30 = vpop.xlane.xlu1 %3184 }
 0x58b   :  { %4632 = vpow2.f32 %v3374_v61  ;;  %v3297_v38 = vsub.f32 %v5700_v0, %v6024_v30  ;;  %v3034_v19 = vpop.f32.mrf.mxu1 }
 0x58c   :  { %v4627_v63 = vpop.eup %4626  ;;  %v6030_v27 = vsel %vm3089_vm1, %v3033_v3, -inf }
 0x58d   :  { %v3376_v31 = vmul.f32 1.442695, %v3297_v38  ;;  %v3035_v6 = vpop.f32.mrf.mxu1  ;;  %3496 = vadd.xlane.f32.xlu1 %v4627_v63  ;;  %3254 = vmax.xlane.f32.xlu0 %v6030_v27 }
 0x58e   :  { %v3036_v62 = vadd.f32 %v3035_v6, %v5774_v13  ;;  %v6034_v5 = vpop.xlane.xlu0 %3186 }
 0x58f   :  { %4634 = vpow2.f32 %v3376_v31  ;;  %v3298_v61 = vsub.f32 %v5708_v2, %v6034_v5  ;;  %v3037_v44 = vpop.f32.mrf.mxu1 }
 0x590   :  { %v4629_v19 = vpop.eup %4628  ;;  %v6040_v0 = vsel %vm3089_vm1, %v3036_v62, -inf }
 0x591   :  { %v3378_v3 = vmul.f32 1.442695, %v3298_v61  ;;  %v3040_v38 = vpop.f32.mrf.mxu1  ;;  %3256 = vmax.xlane.f32.xlu1 %v6040_v0  ;;  %3498 = vadd.xlane.f32.xlu0 %v4629_v19 }
 0x592   :  { %v3041_v63 = vadd.f32 %v3040_v38, %v5782_v10  ;;  %v6044_v13 = vpop.xlane.xlu1 %3188 }
 0x593   :  { %4636 = vpow2.f32 %v3378_v3  ;;  %v3299_v31 = vsub.f32 %v5716_v43, %v6044_v13  ;;  %v3042_v6 = vpop.f32.mrf.mxu1 }
 0x594   :  { %v4631_v44 = vpop.eup %4630  ;;  %v6050_v2 = vsel %vm3089_vm1, %v3041_v63, -inf }
 0x595   :  { %v3380_v62 = vmul.f32 1.442695, %v3299_v31  ;;  %v3043_v61 = vpop.f32.mrf.mxu1  ;;  %3500 = vadd.xlane.f32.xlu1 %v4631_v44  ;;  %3258 = vmax.xlane.f32.xlu0 %v6050_v2 }
 0x596   :  { %v3044_v19 = vadd.f32 %v3043_v61, %v5790_v55  ;;  %v6054_v10 = vpop.xlane.xlu0 %3190 }
 0x597   :  { %4638 = vpow2.f32 %v3380_v62  ;;  %v3300_v3 = vsub.f32 %v5724_v47, %v6054_v10  ;;  %v3045_v38 = vpop.f32.mrf.mxu1 }
 0x598   :  { %v4633_v6 = vpop.eup %4632  ;;  %v6060_v43 = vsel %vm3089_vm1, %v3044_v19, -inf }
 0x599   :  { %v3382_v63 = vmul.f32 1.442695, %v3300_v3  ;;  %v3048_v31 = vpop.f32.mrf.mxu1  ;;  %3260 = vmax.xlane.f32.xlu1 %v6060_v43  ;;  %3502 = vadd.xlane.f32.xlu0 %v4633_v6 }
 0x59a   :  { %v3049_v44 = vadd.f32 %v3048_v31, %v5798_v45  ;;  %v6064_v55 = vpop.xlane.xlu1 %3192 }
 0x59b   :  { %4640 = vpow2.f32 %v3382_v63  ;;  %v3301_v62 = vsub.f32 %v5732_v49, %v6064_v55  ;;  %v3050_v61 = vpop.f32.mrf.mxu1 }
 0x59c   :  { %v4635_v38 = vpop.eup %4634  ;;  %v6070_v47 = vsel %vm3089_vm1, %v3049_v44, -inf }
 0x59d   :  { %v3384_v19 = vmul.f32 1.442695, %v3301_v62  ;;  %v3051_v3 = vpop.f32.mrf.mxu1  ;;  %3504 = vadd.xlane.f32.xlu1 %v4635_v38  ;;  %3262 = vmax.xlane.f32.xlu0 %v6070_v47 }
 0x59e   :  { %v3052_v6 = vadd.f32 %v3051_v3, %v5806_v46  ;;  %v6074_v45 = vpop.xlane.xlu0 %3194 }
 0x59f   :  { %4642 = vpow2.f32 %v3384_v19  ;;  %v3302_v63 = vsub.f32 %v5740_v18, %v6074_v45  ;;  %v3053_v31 = vpop.f32.mrf.mxu1 }
 0x5a0   :  { %v4637_v61 = vpop.eup %4636  ;;  %v6080_v49 = vsel %vm3089_vm1, %v3052_v6, -inf }
 0x5a1   :  { %v3386_v44 = vmul.f32 1.442695, %v3302_v63  ;;  %v3056_v62 = vpop.f32.mrf.mxu1  ;;  %3264 = vmax.xlane.f32.xlu1 %v6080_v49  ;;  %3506 = vadd.xlane.f32.xlu0 %v4637_v61 }
 0x5a2   :  { %v3057_v38 = vadd.f32 %v3056_v62, %v5814_v51  ;;  %v6084_v46 = vpop.xlane.xlu1 %3196 }
 0x5a3   :  { %4644 = vpow2.f32 %v3386_v44  ;;  %v3303_v19 = vsub.f32 %v5748_v42, %v6084_v46  ;;  %v3058_v3 = vpop.f32.mrf.mxu1 }
 0x5a4   :  { %v4639_v31 = vpop.eup %4638  ;;  %v6090_v18 = vsel %vm3089_vm1, %v3057_v38, -inf }
 0x5a5   :  { %v3388_v6 = vmul.f32 1.442695, %v3303_v19  ;;  %v3059_v63 = vpop.f32.mrf.mxu1  ;;  %3508 = vadd.xlane.f32.xlu1 %v4639_v31  ;;  %3266 = vmax.xlane.f32.xlu0 %v6090_v18 }
 0x5a6   :  { %v3060_v61 = vadd.f32 %v3059_v63, %v5822_v37  ;;  %v6094_v51 = vpop.xlane.xlu0 %3198 }
 0x5a7   :  { %6774 = vst [vmem:[#allocation49_spill] sm:$0xff] %v6094_v51  ;;  %4646 = vpow2.f32 %v3388_v6  ;;  %v3304_v44 = vsub.f32 %v5756_v41, %v6094_v51  ;;  %v3061_v62 = vpop.f32.mrf.mxu1 }
 0x5a8   :  { %v4641_v3 = vpop.eup %4640  ;;  %v6100_v42 = vsel %vm3089_vm1, %v3060_v61, -inf }
 0x5a9   :  { %v3390_v38 = vmul.f32 1.442695, %v3304_v44  ;;  %v3064_v19 = vpop.f32.mrf.mxu1  ;;  %3268 = vmax.xlane.f32.xlu1 %v6100_v42  ;;  %3510 = vadd.xlane.f32.xlu0 %v4641_v3 }
 0x5aa   :  { %v3065_v31 = vadd.f32 %v3064_v19, %v5830_v40  ;;  %v6104_v37 = vpop.xlane.xlu1 %3200 }
 0x5ab   :  { %6775 = vst [vmem:[#allocation50_spill] sm:$0xff] %v6104_v37  ;;  %4648 = vpow2.f32 %v3390_v38  ;;  %v3305_v6 = vsub.f32 %v5764_v20, %v6104_v37  ;;  %v3066_v63 = vpop.f32.mrf.mxu1 }
 0x5ac   :  { %v4643_v62 = vpop.eup %4642  ;;  %v6110_v41 = vsel %vm3089_vm1, %v3065_v31, -inf }
 0x5ad   :  { %v3392_v61 = vmul.f32 1.442695, %v3305_v6  ;;  %v3067_v44 = vpop.f32.mrf.mxu1  ;;  %3512 = vadd.xlane.f32.xlu1 %v4643_v62  ;;  %3270 = vmax.xlane.f32.xlu0 %v6110_v41 }
 0x5ae   :  { %v3068_v3 = vadd.f32 %v3067_v44, %v5838_v14  ;;  %v6114_v40 = vpop.xlane.xlu0 %3202 }
 0x5af   :  { %6776 = vst [vmem:[#allocation51_spill] sm:$0xff] %v6114_v40  ;;  %4650 = vpow2.f32 %v3392_v61  ;;  %v3306_v38 = vsub.f32 %v5772_v56, %v6114_v40  ;;  %v3069_v19 = vpop.f32.mrf.mxu1  ;;  %v6778_v61 = vld [vmem:[#allocation22_spill] sm:$0xff] }
 0x5b0   :  { %v4645_v63 = vpop.eup %4644  ;;  %v6120_v20 = vsel %vm3089_vm1, %v3068_v3, -inf }
 0x5b1   :  { %v3394_v31 = vmul.f32 1.442695, %v3306_v38  ;;  %v3072_v6 = vpop.f32.mrf.mxu1  ;;  %3272 = vmax.xlane.f32.xlu1 %v6120_v20  ;;  %3514 = vadd.xlane.f32.xlu0 %v4645_v63 }
 0x5b2   :  { %v3073_v62 = vadd.f32 %v3072_v6, %v5846_v48  ;;  %v6124_v14 = vpop.xlane.xlu1 %3204 }
 0x5b3   :  { %6777 = vst [vmem:[#allocation52_spill] sm:$0xff] %v6124_v14  ;;  %4652 = vpow2.f32 %v3394_v31  ;;  %v3307_v44 = vsub.f32 %v6778_v61, %v6124_v14  ;;  %v3074_v56 = vpop.f32.mrf.mxu1  ;;  %v6780_v31 = vld [vmem:[#allocation23_spill] sm:$0xff] }
 0x5b4   :  { %v4647_v19 = vpop.eup %4646  ;;  %v6130_v40 = vsel %vm3089_vm1, %v3073_v62, -inf }
 0x5b5   :  { %v3396_v3 = vmul.f32 1.442695, %v3307_v44  ;;  %v3075_v38 = vpop.f32.mrf.mxu1  ;;  %3516 = vadd.xlane.f32.xlu1 %v4647_v19  ;;  %3274 = vmax.xlane.f32.xlu0 %v6130_v40 }
 0x5b6   :  { %v3076_v63 = vadd.f32 %v3075_v38, %v5854_v33  ;;  %v6134_v48 = vpop.xlane.xlu0 %3206 }
 0x5b7   :  { %6779 = vst [vmem:[#allocation53_spill] sm:$0xff] %v6134_v48  ;;  %4654 = vpow2.f32 %v3396_v3  ;;  %v3308_v6 = vsub.f32 %v6780_v31, %v6134_v48  ;;  %v3077_v61 = vpop.f32.mrf.mxu1  ;;  %v6782_v3 = vld [vmem:[#allocation24_spill] sm:$0xff] }
 0x5b8   :  { %v4649_v56 = vpop.eup %4648  ;;  %v6140_v14 = vsel %vm3089_vm1, %v3076_v63, -inf }
 0x5b9   :  { %v3398_v62 = vmul.f32 1.442695, %v3308_v6  ;;  %v3080_v44 = vpop.f32.mrf.mxu1  ;;  %3276 = vmax.xlane.f32.xlu1 %v6140_v14  ;;  %3518 = vadd.xlane.f32.xlu0 %v4649_v56  ;;  %v6783_v56 = vld [vmem:[#allocation34_spill] sm:$0xff] }
 0x5ba   :  { %v3081_v19 = vadd.f32 %v3080_v44, %v5862_v24  ;;  %v6144_v33 = vpop.xlane.xlu1 %3208 }
 0x5bb   :  { %6781 = vst [vmem:[#allocation54_spill] sm:$0xff] %v6144_v33  ;;  %4656 = vpow2.f32 %v3398_v62  ;;  %v3309_v38 = vsub.f32 %v6782_v3, %v6144_v33  ;;  %v3082_v31 = vpop.f32.mrf.mxu1  ;;  %v6785_v62 = vld [vmem:[#allocation25_spill] sm:$0xff] }
 0x5bc   :  { %v4651_v61 = vpop.eup %4650  ;;  %v6150_v48 = vsel %vm3089_vm1, %v3081_v19, -inf }
 0x5bd   :  { %v3400_v63 = vmul.f32 1.442695, %v3309_v38  ;;  %v3083_v6 = vpop.f32.mrf.mxu1  ;;  %3520 = vadd.xlane.f32.xlu1 %v4651_v61  ;;  %3278 = vmax.xlane.f32.xlu0 %v6150_v48  ;;  %v6787_v61 = vld [vmem:[#allocation26_spill] sm:$0xff] }
 0x5be   :  { %v3084_v37 = vadd.f32 %v3083_v6, %v6783_v56  ;;  %v6154_v24 = vpop.xlane.xlu0 %3210 }
 0x5bf   :  { %6784 = vst [vmem:[#allocation34_spill] sm:$0xff] %v6154_v24  ;;  %4658 = vpow2.f32 %v3400_v63  ;;  %v3310_v44 = vsub.f32 %v6785_v62, %v6154_v24  ;;  %v3085_v3 = vpop.f32.mrf.mxu1 }
 0x5c0   :  { %v4653_v31 = vpop.eup %4652  ;;  %v6160_v33 = vsel %vm3089_vm1, %v3084_v37, -inf }
 0x5c1   :  { %v3402_v19 = vmul.f32 1.442695, %v3310_v44  ;;  %3280 = vmax.xlane.f32.xlu1 %v6160_v33  ;;  %3522 = vadd.xlane.f32.xlu0 %v4653_v31  ;;  %v6791_v31 = vld [vmem:[#allocation28_spill] sm:$0xff] }
 0x5c2   :  { %v6163_v38 = vpop.xlane.xlu1 %3212 }
 0x5c3   :  { %6786 = vst [vmem:[#allocation55_spill] sm:$0xff] %v6163_v38  ;;  %4660 = vpow2.f32 %v3402_v19  ;;  %v3311_v6 = vsub.f32 %v6787_v61, %v6163_v38 }
 0x5c4   :  { %v4655_v63 = vpop.eup %4654 }
 0x5c5   :  { %v3404_v56 = vmul.f32 1.442695, %v3311_v6  ;;  %3524 = vadd.xlane.f32.xlu1 %v4655_v63  ;;  %v6793_v63 = vld [vmem:[#allocation29_spill] sm:$0xff] }
 0x5c6   :  { %v6167_v62 = vpop.xlane.xlu0 %3214 }
 0x5c7   :  { %6788 = vst [vmem:[#allocation56_spill] sm:$0xff] %v6167_v62  ;;  %4662 = vpow2.f32 %v3404_v56  ;;  %v3312_v37 = vsub.f32 %v6789_v25, %v6167_v62 }
 0x5c8   :  { %v4657_v3 = vpop.eup %4656 }
 0x5c9   :  { %v3406_v44 = vmul.f32 1.442695, %v3312_v37  ;;  %3526 = vadd.xlane.f32.xlu0 %v4657_v3  ;;  %v6795_v3 = vld [vmem:[#allocation30_spill] sm:$0xff] }
 0x5ca   :  { %v6171_v24 = vpop.xlane.xlu1 %3216 }
 0x5cb   :  { %6790 = vst [vmem:[#allocation57_spill] sm:$0xff] %v6171_v24  ;;  %4664 = vpow2.f32 %v3406_v44  ;;  %v3313_v19 = vsub.f32 %v6791_v31, %v6171_v24 }
 0x5cc   :  { %v4659_v51 = vpop.eup %4658 }
 0x5cd   :  { %v3408_v61 = vmul.f32 1.442695, %v3313_v19  ;;  %3528 = vadd.xlane.f32.xlu1 %v4659_v51  ;;  %v6797_v51 = vld [vmem:[#allocation31_spill] sm:$0xff] }
 0x5ce   :  { %v6175_v6 = vpop.xlane.xlu0 %3218 }
 0x5cf   :  { %6792 = vst [vmem:[#allocation58_spill] sm:$0xff] %v6175_v6  ;;  %4666 = vpow2.f32 %v3408_v61  ;;  %v3314_v56 = vsub.f32 %v6793_v63, %v6175_v6 }
 0x5d0   :  { %v4661_v38 = vpop.eup %4660 }
 0x5d1   :  { %v3410_v25 = vmul.f32 1.442695, %v3314_v56  ;;  %3530 = vadd.xlane.f32.xlu0 %v4661_v38  ;;  %v6798_v38 = vld [vmem:[#allocation32_spill] sm:$0xff] }
 0x5d2   :  { %v6179_v37 = vpop.xlane.xlu1 %3220 }
 0x5d3   :  { %6794 = vst [vmem:[#allocation59_spill] sm:$0xff] %v6179_v37  ;;  %4668 = vpow2.f32 %v3410_v25  ;;  %v3315_v44 = vsub.f32 %v6795_v3, %v6179_v37 }
 0x5d4   :  { %v4663_v62 = vpop.eup %4662 }
 0x5d5   :  { %v3412_v31 = vmul.f32 1.442695, %v3315_v44  ;;  %3532 = vadd.xlane.f32.xlu1 %v4663_v62  ;;  %v6799_v62 = vld [vmem:[#allocation33_spill] sm:$0xff] }
 0x5d6   :  { %v6183_v19 = vpop.xlane.xlu0 %3222 }
 0x5d7   :  { %6796 = vst [vmem:[#allocation60_spill] sm:$0xff] %v6183_v19  ;;  %4670 = vpow2.f32 %v3412_v31  ;;  %v3316_v61 = vsub.f32 %v6797_v51, %v6183_v19 }
 0x5d8   :  { %v4665_v24 = vpop.eup %4664 }
 0x5d9   :  { %v3414_v63 = vmul.f32 1.442695, %v3316_v61  ;;  %3534 = vadd.xlane.f32.xlu0 %v4665_v24  ;;  %v6800_v24 = vld [vmem:[#allocation35_spill] sm:$0xff] }
 0x5da   :  { %v6187_v56 = vpop.xlane.xlu1 %3224 }
 0x5db   :  { %4672 = vpow2.f32 %v3414_v63  ;;  %v3317_v25 = vsub.f32 %v6798_v38, %v6187_v56 }
 0x5dc   :  { %v4667_v6 = vpop.eup %4666 }
 0x5dd   :  { %v3416_v3 = vmul.f32 1.442695, %v3317_v25  ;;  %3536 = vadd.xlane.f32.xlu1 %v4667_v6 }
 0x5de   :  { %v6191_v44 = vpop.xlane.xlu0 %3226 }
 0x5df   :  { %4674 = vpow2.f32 %v3416_v3  ;;  %v3318_v31 = vsub.f32 %v6799_v62, %v6191_v44 }
 0x5e0   :  { %v4669_v37 = vpop.eup %4668 }
 0x5e1   :  { %v3418_v51 = vmul.f32 1.442695, %v3318_v31  ;;  %3538 = vadd.xlane.f32.xlu0 %v4669_v37 }
 0x5e2   :  { %v6195_v61 = vpop.xlane.xlu1 %3228 }
 0x5e3   :  { %4676 = vpow2.f32 %v3418_v51  ;;  %v3319_v63 = vsub.f32 %v6800_v24, %v6195_v61 }
 0x5e4   :  { %v4671_v19 = vpop.eup %4670 }
 0x5e5   :  { %v3420_v38 = vmul.f32 1.442695, %v3319_v63  ;;  %3540 = vadd.xlane.f32.xlu1 %v4671_v19 }
 0x5e6   :  { %v6199_v25 = vpop.xlane.xlu0 %3154 }
 0x5e7   :  { %6801 = vst [vmem:[#allocation61_spill] sm:$0xff] %v6199_v25  ;;  %4678 = vpow2.f32 %v3420_v38  ;;  %v3282_v6 = vsub.f32 %v5883_v34, %v6199_v25 }
 0x5e8   :  { %v4673_v3 = vpop.eup %4672 }
 0x5e9   :  { %v3346_v62 = vmul.f32 1.442695, %v3282_v6  ;;  %3542 = vadd.xlane.f32.xlu0 %v4673_v3 }
 0x5ea   :  { %v6203_v31 = vpop.xlane.xlu1 %3232  ;;  %v6205_v37 = vpop.xlane.xlu0 %3230 }
 0x5eb   :  { %6802 = vst [vmem:[#allocation62_spill] sm:$0xff] %v6203_v31  ;;  %6803 = vst [vmem:[#allocation63_spill] sm:$0xff] %v6205_v37  ;;  %4680 = vpow2.f32 %v3346_v62  ;;  %v3320_v51 = vsub.f32 %v5894_v52, %v6205_v37  ;;  %v3321_v34 = vsub.f32 %v5890_v17, %v6203_v31 }
 0x5ec   :  { %v4675_v24 = vpop.eup %4674 }
 0x5ed   :  { %v3422_v63 = vmul.f32 1.442695, %v3320_v51  ;;  %3544 = vadd.xlane.f32.xlu1 %v4675_v24  ;;  %v3424_v37 = vmul.f32 1.442695, %v3321_v34 }
 0x5ee   :  { %v6209_v19 = vpop.xlane.xlu1 %3158  ;;  %v6211_v38 = vpop.xlane.xlu0 %3156 }
 0x5ef   :  { %v3284_v6 = vsub.f32 %v5902_v22, %v6209_v19  ;;  %v3283_v3 = vsub.f32 %v5906_v21, %v6211_v38  ;;  %4682 = vpow2.f32 %v3422_v63 }
 0x5f0   :  { %v4677_v62 = vpop.eup %4676 }
 0x5f1   :  { %v3350_v25 = vmul.f32 1.442695, %v3284_v6  ;;  %v3348_v52 = vmul.f32 1.442695, %v3283_v3  ;;  %3546 = vadd.xlane.f32.xlu0 %v4677_v62 }
 0x5f2   :  { %v6219_v51 = vpop.xlane.xlu1 %3160  ;;  %v6221_v24 = vpop.xlane.xlu0 %3234 }
 0x5f3   :  { %6804 = vst [vmem:[#allocation64_spill] sm:$0xff] %v6219_v51  ;;  %4684 = vpow2.f32 %v3350_v25  ;;  %v3285_v17 = vsub.f32 %v5918_v26, %v6219_v51  ;;  %v3322_v31 = vsub.f32 %v5922_v58, %v6221_v24 }
 0x5f4   :  { %v4679_v22 = vpop.eup %4678  ;;  %4686 = vpow2.f32 %v3348_v52 }
 0x5f5   :  { %v3426_v21 = vmul.f32 1.442695, %v3322_v31  ;;  %3548 = vadd.xlane.f32.xlu1 %v4679_v22  ;;  %4688 = vpow2.f32 %v3424_v37  ;;  %v3352_v3 = vmul.f32 1.442695, %v3285_v17 }
 0x5f6   :  { %v6227_v63 = vpop.xlane.xlu1 %3236  ;;  %v6229_v6 = vpop.xlane.xlu0 %3162 }
 0x5f7   :  { %6805 = vst [vmem:[#allocation65_spill] sm:$0xff] %v6227_v63  ;;  %v3323_v34 = vsub.f32 %v5934_v8, %v6227_v63  ;;  %v3286_v25 = vsub.f32 %v5938_v9, %v6229_v6  ;;  %4690 = vpow2.f32 %v3426_v21 }
 0x5f8   :  { %v4681_v62 = vpop.eup %4680  ;;  %4692 = vpow2.f32 %v3352_v3 }
 0x5f9   :  { %v3354_v26 = vmul.f32 1.442695, %v3286_v25  ;;  %3474 = vadd.xlane.f32.xlu0 %v4681_v62  ;;  %v3428_v22 = vmul.f32 1.442695, %v3323_v34 }
 0x5fa   :  { %v6235_v51 = vpop.xlane.xlu1 %3164  ;;  %v6237_v52 = vpop.xlane.xlu0 %3238 }
 0x5fb   :  { %6806 = vst [vmem:[#allocation66_spill] sm:$0xff] %v6235_v51  ;;  %v3287_v31 = vsub.f32 %v5950_v59, %v6235_v51  ;;  %v3324_v17 = vsub.f32 %v5954_v23, %v6237_v52  ;;  %4694 = vpow2.f32 %v3354_v26 }
 0x5fc   :  { %v4683_v37 = vpop.eup %4682  ;;  %4696 = vpow2.f32 %v3428_v22 }
 0x5fd   :  { %v3430_v8 = vmul.f32 1.442695, %v3324_v17  ;;  %3550 = vadd.xlane.f32.xlu0 %v4683_v37  ;;  %v3356_v25 = vmul.f32 1.442695, %v3287_v31 }
 0x5fe   :  { %v6243_v63 = vpop.xlane.xlu1 %3240  ;;  %v6245_v21 = vpop.xlane.xlu0 %3242 }
 0x5ff   :  { %6807 = vst [vmem:[#allocation67_spill] sm:$0xff] %v6243_v63  ;;  %v3325_v3 = vsub.f32 %v5965_v1, %v6243_v63  ;;  %v3326_v34 = vsub.f32 %v5969_v53, %v6245_v21  ;;  %4698 = vpow2.f32 %v3430_v8 }
 0x600   :  { %v4685_v62 = vpop.eup %4684  ;;  %4700 = vpow2.f32 %v3356_v25 }
 0x601   :  { %v4687_v59 = vpop.eup %4686  ;;  %v3434_v51 = vmul.f32 1.442695, %v3326_v34  ;;  %3478 = vadd.xlane.f32.xlu0 %v4685_v62  ;;  %v3432_v37 = vmul.f32 1.442695, %v3325_v3 }
 0x602   :  { %3476 = vadd.xlane.f32.xlu1 %v4687_v59  ;;  %v6251_v26 = vpop.xlane.xlu1 %3244  ;;  %v3487_v17 = vpop.xlane.xlu0 %3486 }
 0x603   :  { %v3327_v22 = vsub.f32 %v5980_v50, %v6251_v26  ;;  %v4689_v31 = vpop.eup %4688  ;;  %4702 = vpow2.f32 %v3434_v51 }
 0x604   :  { %v4691_v1 = vpop.eup %4690  ;;  %4704 = vlog2.f32 %v3487_v17 }
 0x605   :  { %v3436_v63 = vmul.f32 1.442695, %v3327_v22  ;;  %3554 = vadd.xlane.f32.xlu0 %v4691_v1  ;;  %4706 = vpow2.f32 %v3432_v37  ;;  %v4693_v34 = vpop.eup %4692 }
 0x606   :  { %3552 = vadd.xlane.f32.xlu1 %v4689_v31  ;;  %v3489_v8 = vpop.xlane.xlu1 %3488  ;;  %v6255_v53 = vpop.xlane.xlu0 %3246 }
 0x607   :  { %v3328_v59 = vsub.f32 %v5990_v28, %v6255_v53  ;;  %4708 = vlog2.f32 %v3489_v8 }
 0x608   :  { %v4695_v25 = vpop.eup %4694  ;;  %4710 = vpow2.f32 %v3436_v63 }
 0x609   :  { %v3438_v3 = vmul.f32 1.442695, %v3328_v59  ;;  %3482 = vadd.xlane.f32.xlu0 %v4695_v25  ;;  %v4697_v17 = vpop.eup %4696 }
 0x60a   :  { %3480 = vadd.xlane.f32.xlu1 %v4693_v34  ;;  %v6259_v51 = vpop.xlane.xlu1 %3248  ;;  %v3491_v62 = vpop.xlane.xlu0 %3490 }
 0x60b   :  { %6808 = vst [vmem:[#allocation68_spill] sm:$0xff] %v6259_v51  ;;  %4712 = vpow2.f32 %v3438_v3  ;;  %v3329_v1 = vsub.f32 %v6000_v12, %v6259_v51 }
 0x60c   :  { %4714 = vlog2.f32 %v3491_v62  ;;  %v4699_v37 = vpop.eup %4698 }
 0x60d   :  { %v3440_v22 = vmul.f32 1.442695, %v3329_v1  ;;  %3558 = vadd.xlane.f32.xlu0 %v4699_v37  ;;  %v4701_v59 = vpop.eup %4700 }
 0x60e   :  { %3556 = vadd.xlane.f32.xlu1 %v4697_v17  ;;  %v3493_v31 = vpop.xlane.xlu1 %3492  ;;  %v6263_v8 = vpop.xlane.xlu0 %3250 }
 0x60f   :  { %6809 = vst [vmem:[#allocation69_spill] sm:$0xff] %v6263_v8  ;;  %4716 = vpow2.f32 %v3440_v22  ;;  %v3330_v63 = vsub.f32 %v6010_v11, %v6263_v8 }
 0x610   :  { %4718 = vlog2.f32 %v3493_v31  ;;  %v4703_v34 = vpop.eup %4702 }
 0x611   :  { %v3442_v25 = vmul.f32 1.442695, %v3330_v63  ;;  %v4705_v3 = vpop.eup %4704  ;;  %3562 = vadd.xlane.f32.xlu0 %v4703_v34 }
 0x612   :  { %3484 = vadd.xlane.f32.xlu1 %v4701_v59  ;;  %v6267_v12 = vpop.xlane.xlu1 %3252  ;;  %v3495_v62 = vpop.xlane.xlu0 %3494  ;;  %v3615_v1 = vmul.f32 0.6931472, %v4705_v3 }
 0x613   :  { %4720 = vpow2.f32 %v3442_v25  ;;  %v3331_v17 = vsub.f32 %v6020_v29, %v6267_v12  ;;  %v4707_v37 = vpop.eup %4706 }
 0x614   :  { %4722 = vlog2.f32 %v3495_v62  ;;  %v4709_v22 = vpop.eup %4708  ;;  %v3736_v11 = vadd.f32 %v3615_v1, %v5911_v36  ;;  %v6810_v1 = vld [vmem:[#allocation5_spill] sm:$0xff] }
 0x615   :  { %v3444_v8 = vmul.f32 1.442695, %v3331_v17  ;;  %v3617_v31 = vmul.f32 0.6931472, %v4709_v22  ;;  %v4711_v59 = vpop.eup %4710 }
 0x616   :  { %3560 = vadd.xlane.f32.xlu1 %v4707_v37  ;;  %v3497_v63 = vpop.xlane.xlu1 %3496  ;;  %v6272_v51 = vpop.xlane.xlu0 %3254  ;;  %v3800_v34 = vsub.f32 %v5628_v7, %v3736_v11 }
 0x617   :  { %4724 = vpow2.f32 %v3444_v8  ;;  %v3332_v25 = vsub.f32 %v6030_v27, %v6272_v51  ;;  %v3737_v29 = vadd.f32 %v3617_v31, %v5927_v35 }
 0x618   :  { %v4713_v3 = vpop.eup %4712  ;;  %4726 = vlog2.f32 %v3497_v63  ;;  %3864 = vst [vmem:[%s6651_s4 + $0x30] sm:$0xff] %v3800_v34 }
 0x619   :  { %v4715_v62 = vpop.eup %4714  ;;  %v3446_v36 = vmul.f32 1.442695, %v3332_v25  ;;  %3566 = vadd.xlane.f32.xlu0 %v4713_v3  ;;  %v3801_v17 = vsub.f32 %v6810_v1, %v3737_v29 }
 0x61a   :  { %v3619_v37 = vmul.f32 0.6931472, %v4715_v62  ;;  %3564 = vadd.xlane.f32.xlu1 %v4711_v59  ;;  %v6282_v7 = vpop.xlane.xlu1 %3256  ;;  %v3499_v11 = vpop.xlane.xlu0 %3498 }
 0x61b   :  { %4728 = vpow2.f32 %v3446_v36  ;;  %v3333_v8 = vsub.f32 %v6040_v0, %v6282_v7  ;;  %3865 = vst [vmem:[%s6651_s4 + $0x38] sm:$0xff] %v3801_v17 }
 0x61c   :  { %v4717_v35 = vpop.eup %4716  ;;  %v3738_v22 = vadd.f32 %v3619_v37, %v5943_v54  ;;  %4730 = vlog2.f32 %v3499_v11 }
 0x61d   :  { %v4719_v31 = vpop.eup %4718  ;;  %v3448_v63 = vmul.f32 1.442695, %v3333_v8 }
 0x61e   :  { %v3802_v29 = vsub.f32 %v5644_v4, %v3738_v22  ;;  %v3621_v59 = vmul.f32 0.6931472, %v4719_v31  ;;  %3568 = vadd.xlane.f32.xlu1 %v4717_v35  ;;  %v3501_v34 = vpop.xlane.xlu1 %3500  ;;  %v6291_v25 = vpop.xlane.xlu0 %3258  ;;  %v6811_v4 = vld [vmem:[#allocation6_spill] sm:$0xff] }
 0x61f   :  { %4732 = vpow2.f32 %v3448_v63  ;;  %v3334_v3 = vsub.f32 %v6050_v2, %v6291_v25 }
 0x620   :  { %v4721_v62 = vpop.eup %4720  ;;  %3866 = vst [vmem:[%s6651_s4 + $0x40] sm:$0xff] %v3802_v29  ;;  %v3739_v54 = vadd.f32 %v3621_v59, %v5959_v57  ;;  %4734 = vlog2.f32 %v3501_v34  ;;  %v6812_v29 = vld [vmem:[#allocation7_spill] sm:$0xff] }
 0x621   :  { %v4723_v36 = vpop.eup %4722  ;;  %v3450_v1 = vmul.f32 1.442695, %v3334_v3  ;;  %3570 = vadd.xlane.f32.xlu0 %v4721_v62 }
 0x622   :  { %v3803_v17 = vsub.f32 %v6811_v4, %v3739_v54  ;;  %v3623_v37 = vmul.f32 0.6931472, %v4723_v36  ;;  %v6300_v11 = vpop.xlane.xlu1 %3260  ;;  %v3503_v8 = vpop.xlane.xlu0 %3502 }
 0x623   :  { %4736 = vpow2.f32 %v3450_v1  ;;  %v3335_v35 = vsub.f32 %v6060_v43, %v6300_v11 }
 0x624   :  { %v4725_v22 = vpop.eup %4724  ;;  %3867 = vst [vmem:[%s6651_s4 + $0x48] sm:$0xff] %v3803_v17  ;;  %v3740_v57 = vadd.f32 %v3623_v37, %v5974_v16  ;;  %4738 = vlog2.f32 %v3503_v8  ;;  %v6813_v17 = vld [vmem:[#allocation8_spill] sm:$0xff] }
 0x625   :  { %v4727_v31 = vpop.eup %4726  ;;  %v3452_v63 = vmul.f32 1.442695, %v3335_v35  ;;  %3572 = vadd.xlane.f32.xlu1 %v4725_v22 }
 0x626   :  { %v3804_v59 = vsub.f32 %v6812_v29, %v3740_v57  ;;  %v3625_v34 = vmul.f32 0.6931472, %v4727_v31  ;;  %v3505_v3 = vpop.xlane.xlu1 %3504  ;;  %v6309_v62 = vpop.xlane.xlu0 %3262 }
 0x627   :  { %4740 = vpow2.f32 %v3452_v63  ;;  %v3336_v54 = vsub.f32 %v6070_v47, %v6309_v62 }
 0x628   :  { %v4729_v36 = vpop.eup %4728  ;;  %3868 = vst [vmem:[%s6651_s4 + $0x50] sm:$0xff] %v3804_v59  ;;  %v3741_v16 = vadd.f32 %v3625_v34, %v5984_v39  ;;  %4742 = vlog2.f32 %v3505_v3  ;;  %v6814_v59 = vld [vmem:[#allocation9_spill] sm:$0xff] }
 0x629   :  { %v4731_v1 = vpop.eup %4730  ;;  %v3454_v4 = vmul.f32 1.442695, %v3336_v54  ;;  %3574 = vadd.xlane.f32.xlu0 %v4729_v36 }
 0x62a   :  { %v3805_v37 = vsub.f32 %v6813_v17, %v3741_v16  ;;  %v3627_v8 = vmul.f32 0.6931472, %v4731_v1  ;;  %v6318_v35 = vpop.xlane.xlu1 %3264  ;;  %v3507_v22 = vpop.xlane.xlu0 %3506 }
 0x62b   :  { %4744 = vpow2.f32 %v3454_v4  ;;  %v3337_v57 = vsub.f32 %v6080_v49, %v6318_v35 }
 0x62c   :  { %v4733_v31 = vpop.eup %4732  ;;  %3869 = vst [vmem:[%s6651_s4 + $0x58] sm:$0xff] %v3805_v37  ;;  %v3742_v39 = vadd.f32 %v3627_v8, %v5994_v15  ;;  %4746 = vlog2.f32 %v3507_v22  ;;  %v6815_v37 = vld [vmem:[#allocation10_spill] sm:$0xff] }
 0x62d   :  { %v4735_v63 = vpop.eup %4734  ;;  %v3456_v29 = vmul.f32 1.442695, %v3337_v57  ;;  %3576 = vadd.xlane.f32.xlu1 %v4733_v31 }
 0x62e   :  { %v3806_v34 = vsub.f32 %v6814_v59, %v3742_v39  ;;  %v3629_v3 = vmul.f32 0.6931472, %v4735_v63  ;;  %v3509_v54 = vpop.xlane.xlu1 %3508  ;;  %v6327_v36 = vpop.xlane.xlu0 %3266 }
 0x62f   :  { %4748 = vpow2.f32 %v3456_v29  ;;  %v3338_v16 = vsub.f32 %v6090_v18, %v6327_v36 }
 0x630   :  { %v4737_v1 = vpop.eup %4736  ;;  %3870 = vst [vmem:[%s6651_s4 + $0x60] sm:$0xff] %v3806_v34  ;;  %v3743_v15 = vadd.f32 %v3629_v3, %v6004_v32  ;;  %4750 = vlog2.f32 %v3509_v54  ;;  %v6816_v34 = vld [vmem:[#allocation11_spill] sm:$0xff] }
 0x631   :  { %v4739_v4 = vpop.eup %4738  ;;  %v3458_v17 = vmul.f32 1.442695, %v3338_v16  ;;  %3578 = vadd.xlane.f32.xlu0 %v4737_v1 }
 0x632   :  { %v3807_v8 = vsub.f32 %v6815_v37, %v3743_v15  ;;  %v3631_v22 = vmul.f32 0.6931472, %v4739_v4  ;;  %v6336_v57 = vpop.xlane.xlu1 %3268  ;;  %v3511_v31 = vpop.xlane.xlu0 %3510 }
 0x633   :  { %4752 = vpow2.f32 %v3458_v17  ;;  %v3339_v39 = vsub.f32 %v6100_v42, %v6336_v57 }
 0x634   :  { %v4741_v63 = vpop.eup %4740  ;;  %3871 = vst [vmem:[%s6651_s4 + $0x68] sm:$0xff] %v3807_v8  ;;  %v3744_v32 = vadd.f32 %v3631_v22, %v6014_v60  ;;  %4754 = vlog2.f32 %v3511_v31  ;;  %v6817_v8 = vld [vmem:[#allocation12_spill] sm:$0xff] }
 0x635   :  { %v4743_v29 = vpop.eup %4742  ;;  %v3460_v59 = vmul.f32 1.442695, %v3339_v39  ;;  %3580 = vadd.xlane.f32.xlu1 %v4741_v63 }
 0x636   :  { %v3808_v3 = vsub.f32 %v6816_v34, %v3744_v32  ;;  %v3633_v54 = vmul.f32 0.6931472, %v4743_v29  ;;  %v3513_v16 = vpop.xlane.xlu1 %3512  ;;  %v6345_v1 = vpop.xlane.xlu0 %3270 }
 0x637   :  { %4756 = vpow2.f32 %v3460_v59  ;;  %v3340_v15 = vsub.f32 %v6110_v41, %v6345_v1 }
 0x638   :  { %v4745_v4 = vpop.eup %4744  ;;  %3872 = vst [vmem:[%s6651_s4 + $0x70] sm:$0xff] %v3808_v3  ;;  %v3745_v60 = vadd.f32 %v3633_v54, %v6024_v30  ;;  %4758 = vlog2.f32 %v3513_v16  ;;  %v6818_v3 = vld [vmem:[#allocation13_spill] sm:$0xff] }
 0x639   :  { %v4747_v17 = vpop.eup %4746  ;;  %v3462_v37 = vmul.f32 1.442695, %v3340_v15  ;;  %3582 = vadd.xlane.f32.xlu0 %v4745_v4 }
 0x63a   :  { %v3809_v22 = vsub.f32 %v6817_v8, %v3745_v60  ;;  %v3635_v31 = vmul.f32 0.6931472, %v4747_v17  ;;  %v6354_v39 = vpop.xlane.xlu1 %3272  ;;  %v3515_v63 = vpop.xlane.xlu0 %3514 }
 0x63b   :  { %4760 = vpow2.f32 %v3462_v37  ;;  %v3341_v32 = vsub.f32 %v6120_v20, %v6354_v39 }
 0x63c   :  { %v4749_v29 = vpop.eup %4748  ;;  %3873 = vst [vmem:[%s6651_s4 + $0x78] sm:$0xff] %v3809_v22  ;;  %v3746_v30 = vadd.f32 %v3635_v31, %v6034_v5  ;;  %4762 = vlog2.f32 %v3515_v63  ;;  %v6819_v22 = vld [vmem:[#allocation14_spill] sm:$0xff] }
 0x63d   :  { %v4751_v59 = vpop.eup %4750  ;;  %v3464_v34 = vmul.f32 1.442695, %v3341_v32  ;;  %3584 = vadd.xlane.f32.xlu1 %v4749_v29 }
 0x63e   :  { %v3810_v54 = vsub.f32 %v6818_v3, %v3746_v30  ;;  %v3637_v16 = vmul.f32 0.6931472, %v4751_v59  ;;  %v3517_v15 = vpop.xlane.xlu1 %3516  ;;  %v6363_v4 = vpop.xlane.xlu0 %3274 }
 0x63f   :  { %4764 = vpow2.f32 %v3464_v34  ;;  %v3342_v60 = vsub.f32 %v6130_v40, %v6363_v4 }
 0x640   :  { %v4753_v17 = vpop.eup %4752  ;;  %3874 = vst [vmem:[%s6651_s4 + $0x80] sm:$0xff] %v3810_v54  ;;  %v3747_v5 = vadd.f32 %v3637_v16, %v6044_v13  ;;  %4766 = vlog2.f32 %v3517_v15  ;;  %v6820_v54 = vld [vmem:[#allocation15_spill] sm:$0xff] }
 0x641   :  { %v4755_v37 = vpop.eup %4754  ;;  %v3466_v8 = vmul.f32 1.442695, %v3342_v60  ;;  %3586 = vadd.xlane.f32.xlu0 %v4753_v17 }
 0x642   :  { %v3811_v31 = vsub.f32 %v6819_v22, %v3747_v5  ;;  %v3639_v63 = vmul.f32 0.6931472, %v4755_v37  ;;  %v6372_v32 = vpop.xlane.xlu1 %3276  ;;  %v3519_v29 = vpop.xlane.xlu0 %3518 }
 0x643   :  { %4768 = vpow2.f32 %v3466_v8  ;;  %v3343_v30 = vsub.f32 %v6140_v14, %v6372_v32 }
 0x644   :  { %v4757_v59 = vpop.eup %4756  ;;  %3875 = vst [vmem:[%s6651_s4 + $0x88] sm:$0xff] %v3811_v31  ;;  %v3748_v13 = vadd.f32 %v3639_v63, %v6054_v10  ;;  %4770 = vlog2.f32 %v3519_v29  ;;  %v6821_v31 = vld [vmem:[#allocation16_spill] sm:$0xff] }
 0x645   :  { %v4759_v34 = vpop.eup %4758  ;;  %v3468_v3 = vmul.f32 1.442695, %v3343_v30  ;;  %3588 = vadd.xlane.f32.xlu1 %v4757_v59 }
 0x646   :  { %v3812_v16 = vsub.f32 %v6820_v54, %v3748_v13  ;;  %v3641_v15 = vmul.f32 0.6931472, %v4759_v34  ;;  %v3521_v60 = vpop.xlane.xlu1 %3520  ;;  %v6381_v17 = vpop.xlane.xlu0 %3278 }
 0x647   :  { %4772 = vpow2.f32 %v3468_v3  ;;  %v3344_v5 = vsub.f32 %v6150_v48, %v6381_v17 }
 0x648   :  { %v4761_v37 = vpop.eup %4760  ;;  %3876 = vst [vmem:[%s6651_s4 + $0x90] sm:$0xff] %v3812_v16  ;;  %v3749_v10 = vadd.f32 %v3641_v15, %v6064_v55  ;;  %4774 = vlog2.f32 %v3521_v60  ;;  %v6822_v16 = vld [vmem:[#allocation17_spill] sm:$0xff] }
 0x649   :  { %v4763_v8 = vpop.eup %4762  ;;  %v3470_v22 = vmul.f32 1.442695, %v3344_v5  ;;  %3590 = vadd.xlane.f32.xlu0 %v4761_v37 }
 0x64a   :  { %v3813_v63 = vsub.f32 %v6821_v31, %v3749_v10  ;;  %v3643_v29 = vmul.f32 0.6931472, %v4763_v8  ;;  %v6390_v30 = vpop.xlane.xlu1 %3280  ;;  %v3523_v59 = vpop.xlane.xlu0 %3522 }
 0x64b   :  { %4776 = vpow2.f32 %v3470_v22  ;;  %v3345_v13 = vsub.f32 %v6160_v33, %v6390_v30 }
 0x64c   :  { %v4765_v34 = vpop.eup %4764  ;;  %3877 = vst [vmem:[%s6651_s4 + $0x98] sm:$0xff] %v3813_v63  ;;  %v3750_v55 = vadd.f32 %v3643_v29, %v6074_v45  ;;  %4778 = vlog2.f32 %v3523_v59  ;;  %v6823_v45 = vld [vmem:[#allocation18_spill] sm:$0xff]  ;;  %v6824_v59 = vld [vmem:[#allocation49_spill] sm:$0xff] }
 0x64d   :  { %v4767_v3 = vpop.eup %4766  ;;  %v3472_v54 = vmul.f32 1.442695, %v3345_v13  ;;  %3592 = vadd.xlane.f32.xlu1 %v4765_v34 }
 0x64e   :  { %v3814_v15 = vsub.f32 %v6822_v16, %v3750_v55  ;;  %v3645_v60 = vmul.f32 0.6931472, %v4767_v3  ;;  %v3525_v5 = vpop.xlane.xlu1 %3524  ;;  %v6825_v55 = vld [vmem:[#allocation19_spill] sm:$0xff] }
 0x64f   :  { %4780 = vpow2.f32 %v3472_v54 }
 0x650   :  { %v4769_v37 = vpop.eup %4768  ;;  %3878 = vst [vmem:[%s6651_s4 + $0xa0] sm:$0xff] %v3814_v15  ;;  %v3751_v10 = vadd.f32 %v3645_v60, %v6084_v46  ;;  %4782 = vlog2.f32 %v3525_v5  ;;  %v6826_v15 = vld [vmem:[#allocation50_spill] sm:$0xff] }
 0x651   :  { %v4771_v8 = vpop.eup %4770  ;;  %3594 = vadd.xlane.f32.xlu0 %v4769_v37  ;;  %v6827_v37 = vld [vmem:[#allocation20_spill] sm:$0xff] }
 0x652   :  { %v3815_v22 = vsub.f32 %v6823_v45, %v3751_v10  ;;  %v3647_v31 = vmul.f32 0.6931472, %v4771_v8  ;;  %v3527_v63 = vpop.xlane.xlu0 %3526 }
 0x653   :  { %4784 = vlog2.f32 %v3527_v63 }
 0x654   :  { %v4773_v29 = vpop.eup %4772  ;;  %3879 = vst [vmem:[%s6651_s4 + $0xa8] sm:$0xff] %v3815_v22  ;;  %v3752_v13 = vadd.f32 %v3647_v31, %v6824_v59  ;;  %v6828_v31 = vld [vmem:[#allocation51_spill] sm:$0xff]  ;;  %v6829_v59 = vld [vmem:[#allocation21_spill] sm:$0xff] }
 0x655   :  { %v4775_v34 = vpop.eup %4774  ;;  %3596 = vadd.xlane.f32.xlu1 %v4773_v29 }
 0x656   :  { %v3816_v3 = vsub.f32 %v6825_v55, %v3752_v13  ;;  %v3649_v46 = vmul.f32 0.6931472, %v4775_v34  ;;  %v3529_v54 = vpop.xlane.xlu1 %3528 }
 0x657   :  { %4786 = vlog2.f32 %v3529_v54 }
 0x658   :  { %v4777_v16 = vpop.eup %4776  ;;  %3880 = vst [vmem:[%s6651_s4 + $0xb0] sm:$0xff] %v3816_v3  ;;  %v3753_v60 = vadd.f32 %v3649_v46, %v6826_v15  ;;  %v6830_v46 = vld [vmem:[#allocation52_spill] sm:$0xff]  ;;  %v6831_v15 = vld [vmem:[#allocation22_spill] sm:$0xff] }
 0x659   :  { %v4779_v5 = vpop.eup %4778  ;;  %3598 = vadd.xlane.f32.xlu0 %v4777_v16 }
 0x65a   :  { %v3817_v10 = vsub.f32 %v6827_v37, %v3753_v60  ;;  %v3651_v8 = vmul.f32 0.6931472, %v4779_v5  ;;  %v3531_v45 = vpop.xlane.xlu0 %3530  ;;  %v6832_v37 = vld [vmem:[#allocation53_spill] sm:$0xff] }
 0x65b   :  { %4788 = vlog2.f32 %v3531_v45  ;;  %v6833_v45 = vld [vmem:[#allocation23_spill] sm:$0xff] }
 0x65c   :  { %v4781_v22 = vpop.eup %4780  ;;  %3881 = vst [vmem:[%s6651_s4 + $0xb8] sm:$0xff] %v3817_v10  ;;  %v3754_v63 = vadd.f32 %v3651_v8, %v6828_v31 }
 0x65d   :  { %v4783_v29 = vpop.eup %4782  ;;  %3600 = vadd.xlane.f32.xlu1 %v4781_v22 }
 0x65e   :  { %v3818_v13 = vsub.f32 %v6829_v59, %v3754_v63  ;;  %v3653_v34 = vmul.f32 0.6931472, %v4783_v29  ;;  %v3533_v55 = vpop.xlane.xlu1 %3532  ;;  %v6834_v29 = vld [vmem:[#allocation54_spill] sm:$0xff] }
 0x65f   :  { %4790 = vlog2.f32 %v3533_v55 }
 0x660   :  { %v4785_v3 = vpop.eup %4784  ;;  %3882 = vst [vmem:[%s6651_s4 + $0xc0] sm:$0xff] %v3818_v13  ;;  %v3755_v54 = vadd.f32 %v3653_v34, %v6830_v46  ;;  %v6835_v34 = vld [vmem:[#allocation24_spill] sm:$0xff] }
 0x661   :  { %v3655_v16 = vmul.f32 0.6931472, %v4785_v3 }
 0x662   :  { %v3819_v60 = vsub.f32 %v6831_v15, %v3755_v54  ;;  %v3535_v5 = vpop.xlane.xlu0 %3534  ;;  %v6836_v54 = vld [vmem:[#allocation34_spill] sm:$0xff] }
 0x663   :  { %v3756_v10 = vadd.f32 %v3655_v16, %v6832_v37  ;;  %4792 = vlog2.f32 %v3535_v5 }
 0x664   :  { %v4787_v8 = vpop.eup %4786  ;;  %3883 = vst [vmem:[%s6651_s4 + $0xc8] sm:$0xff] %v3819_v60  ;;  %v6837_v60 = vld [vmem:[#allocation25_spill] sm:$0xff] }
 0x665   :  { %v3820_v22 = vsub.f32 %v6833_v45, %v3756_v10  ;;  %v3657_v31 = vmul.f32 0.6931472, %v4787_v8  ;;  %v6838_v8 = vld [vmem:[#allocation55_spill] sm:$0xff] }
 0x666   :  { %v3537_v63 = vpop.xlane.xlu1 %3536 }
 0x667   :  { %3884 = vst [vmem:[%s6651_s4 + $0xd0] sm:$0xff] %v3820_v22  ;;  %v3757_v59 = vadd.f32 %v3657_v31, %v6834_v29  ;;  %4794 = vlog2.f32 %v3537_v63  ;;  %v6839_v31 = vld [vmem:[#allocation26_spill] sm:$0xff] }
 0x668   :  { %v4789_v13 = vpop.eup %4788 }
 0x669   :  { %v3821_v55 = vsub.f32 %v6835_v34, %v3757_v59  ;;  %v3659_v3 = vmul.f32 0.6931472, %v4789_v13  ;;  %v6840_v13 = vld [vmem:[#allocation56_spill] sm:$0xff] }
 0x66a   :  { %v3539_v46 = vpop.xlane.xlu0 %3538 }
 0x66b   :  { %3885 = vst [vmem:[%s6651_s4 + $0xd8] sm:$0xff] %v3821_v55  ;;  %v3758_v16 = vadd.f32 %v3659_v3, %v6836_v54  ;;  %4796 = vlog2.f32 %v3539_v46  ;;  %v6841_v3 = vld [vmem:[#allocation27_spill] sm:$0xff] }
 0x66c   :  { %v4791_v15 = vpop.eup %4790 }
 0x66d   :  { %v3822_v5 = vsub.f32 %v6837_v60, %v3758_v16  ;;  %v3661_v37 = vmul.f32 0.6931472, %v4791_v15  ;;  %v6842_v15 = vld [vmem:[#allocation57_spill] sm:$0xff] }
 0x66e   :  { %v3541_v10 = vpop.xlane.xlu1 %3540 }
 0x66f   :  { %3886 = vst [vmem:[%s6651_s4 + $0xe0] sm:$0xff] %v3822_v5  ;;  %v3759_v45 = vadd.f32 %v3661_v37, %v6838_v8  ;;  %4798 = vlog2.f32 %v3541_v10  ;;  %v6843_v37 = vld [vmem:[#allocation28_spill] sm:$0xff] }
 0x670   :  { %v4793_v22 = vpop.eup %4792 }
 0x671   :  { %v3823_v63 = vsub.f32 %v6839_v31, %v3759_v45  ;;  %v3663_v29 = vmul.f32 0.6931472, %v4793_v22  ;;  %v6844_v22 = vld [vmem:[#allocation58_spill] sm:$0xff] }
 0x672   :  { %v3543_v59 = vpop.xlane.xlu0 %3542 }
 0x673   :  { %3887 = vst [vmem:[%s6651_s4 + $0xe8] sm:$0xff] %v3823_v63  ;;  %v3760_v34 = vadd.f32 %v3663_v29, %v6840_v13  ;;  %4800 = vlog2.f32 %v3543_v59  ;;  %v6845_v29 = vld [vmem:[#allocation29_spill] sm:$0xff] }
 0x674   :  { %v4795_v55 = vpop.eup %4794 }
 0x675   :  { %v3824_v46 = vsub.f32 %v6841_v3, %v3760_v34  ;;  %v3665_v54 = vmul.f32 0.6931472, %v4795_v55  ;;  %v6846_v55 = vld [vmem:[#allocation59_spill] sm:$0xff] }
 0x676   :  { %v3545_v16 = vpop.xlane.xlu1 %3544 }
 0x677   :  { %3888 = vst [vmem:[%s6651_s4 + $0xf0] sm:$0xff] %v3824_v46  ;;  %v3761_v60 = vadd.f32 %v3665_v54, %v6842_v15  ;;  %4802 = vlog2.f32 %v3545_v16  ;;  %v6847_v54 = vld [vmem:[#allocation30_spill] sm:$0xff] }
 0x678   :  { %v4797_v5 = vpop.eup %4796 }
 0x679   :  { %v3825_v10 = vsub.f32 %v6843_v37, %v3761_v60  ;;  %v3667_v8 = vmul.f32 0.6931472, %v4797_v5  ;;  %v6848_v5 = vld [vmem:[#allocation60_spill] sm:$0xff] }
 0x67a   :  { %v3547_v45 = vpop.xlane.xlu0 %3546 }
 0x67b   :  { %3889 = vst [vmem:[%s6651_s4 + $0xf8] sm:$0xff] %v3825_v10  ;;  %v3762_v31 = vadd.f32 %v3667_v8, %v6844_v22  ;;  %4804 = vlog2.f32 %v3547_v45  ;;  %v6849_v8 = vld [vmem:[#allocation31_spill] sm:$0xff] }
 0x67c   :  { %v4799_v63 = vpop.eup %4798 }
 0x67d   :  { %v3826_v59 = vsub.f32 %v6845_v29, %v3762_v31  ;;  %v3669_v13 = vmul.f32 0.6931472, %v4799_v63 }
 0x67e   :  { %v3549_v34 = vpop.xlane.xlu1 %3548 }
 0x67f   :  { %3890 = vst [vmem:[%s6651_s4 + $0x100] sm:$0xff] %v3826_v59  ;;  %v3763_v3 = vadd.f32 %v3669_v13, %v6846_v55  ;;  %4806 = vlog2.f32 %v3549_v34  ;;  %v6850_v59 = vld [vmem:[#allocation32_spill] sm:$0xff] }
 0x680   :  { %v4801_v46 = vpop.eup %4800 }
 0x681   :  { %v3827_v16 = vsub.f32 %v6847_v54, %v3763_v3  ;;  %v3671_v15 = vmul.f32 0.6931472, %v4801_v46 }
 0x682   :  { %v3475_v60 = vpop.xlane.xlu0 %3474 }
 0x683   :  { %3891 = vst [vmem:[%s6651_s4 + $0x108] sm:$0xff] %v3827_v16  ;;  %v3764_v37 = vadd.f32 %v3671_v15, %v6848_v5  ;;  %4808 = vlog2.f32 %v3475_v60  ;;  %v6851_v16 = vld [vmem:[#allocation33_spill] sm:$0xff] }
 0x684   :  { %v4803_v10 = vpop.eup %4802 }
 0x685   :  { %v3828_v45 = vsub.f32 %v6849_v8, %v3764_v37  ;;  %v3673_v22 = vmul.f32 0.6931472, %v4803_v10  ;;  %v6852_v8 = vld [vmem:[#allocation35_spill] sm:$0xff] }
 0x686   :  { %v3551_v63 = vpop.xlane.xlu0 %3550 }
 0x687   :  { %3892 = vst [vmem:[%s6651_s4 + $0x110] sm:$0xff] %v3828_v45  ;;  %v3765_v31 = vadd.f32 %v3673_v22, %v6187_v56  ;;  %4810 = vlog2.f32 %v3551_v63  ;;  %v6853_v22 = vld [vmem:[#allocation61_spill] sm:$0xff] }
 0x688   :  { %v4805_v29 = vpop.eup %4804 }
 0x689   :  { %v3829_v13 = vsub.f32 %v6850_v59, %v3765_v31  ;;  %v3675_v34 = vmul.f32 0.6931472, %v4805_v29 }
 0x68a   :  { %v3479_v46 = vpop.xlane.xlu0 %3478 }
 0x68b   :  { %3893 = vst [vmem:[%s6651_s4 + $0x118] sm:$0xff] %v3829_v13  ;;  %v3766_v55 = vadd.f32 %v3675_v34, %v6191_v44  ;;  %v3477_v3 = vpop.xlane.xlu1 %3476  ;;  %v6854_v13 = vld [vmem:[#allocation36_spill] sm:$0xff] }
 0x68c   :  { %v4807_v54 = vpop.eup %4806  ;;  %4812 = vlog2.f32 %v3477_v3 }
 0x68d   :  { %v3830_v15 = vsub.f32 %v6851_v16, %v3766_v55  ;;  %v3677_v60 = vmul.f32 0.6931472, %v4807_v54  ;;  %4814 = vlog2.f32 %v3479_v46  ;;  %v6855_v46 = vld [vmem:[#allocation63_spill] sm:$0xff] }
 0x68e   :  { %v3555_v37 = vpop.xlane.xlu0 %3554 }
 0x68f   :  { %3894 = vst [vmem:[%s6651_s4 + $0x120] sm:$0xff] %v3830_v15  ;;  %v3767_v56 = vadd.f32 %v3677_v60, %v6195_v61  ;;  %v3553_v5 = vpop.xlane.xlu1 %3552  ;;  %v6856_v60 = vld [vmem:[#allocation38_spill] sm:$0xff] }
 0x690   :  { %v4809_v10 = vpop.eup %4808  ;;  %4816 = vlog2.f32 %v3553_v5 }
 0x691   :  { %v3831_v44 = vsub.f32 %v6852_v8, %v3767_v56  ;;  %v3603_v45 = vmul.f32 0.6931472, %v4809_v10  ;;  %4818 = vlog2.f32 %v3555_v37 }
 0x692   :  { %v3483_v29 = vpop.xlane.xlu0 %3482 }
 0x693   :  { %3895 = vst [vmem:[%s6651_s4 + $0x128] sm:$0xff] %v3831_v44  ;;  %v3730_v31 = vadd.f32 %v3603_v45, %v6853_v22  ;;  %v3481_v63 = vpop.xlane.xlu1 %3480 }
 0x694   :  { %4820 = vlog2.f32 %v3481_v63  ;;  %v4811_v59 = vpop.eup %4810  ;;  %v6857_v63 = vld [vmem:[#allocation40_spill] sm:$0xff] }
 0x695   :  { %v3794_v61 = vsub.f32 %v6854_v13, %v3730_v31  ;;  %4822 = vlog2.f32 %v3483_v29  ;;  %v3679_v34 = vmul.f32 0.6931472, %v4811_v59  ;;  %v6858_v13 = vld [vmem:[#allocation39_spill] sm:$0xff] }
 0x696   :  { %v3559_v3 = vpop.xlane.xlu0 %3558 }
 0x697   :  { %3858 = vst [vmem:[%s6651_s4] sm:$0xff] %v3794_v61  ;;  %v3557_v55 = vpop.xlane.xlu1 %3556  ;;  %v3768_v54 = vadd.f32 %v3679_v34, %v6855_v46 }
 0x698   :  { %4824 = vlog2.f32 %v3557_v55 }
 0x699   :  { %v4813_v16 = vpop.eup %4812  ;;  %4826 = vlog2.f32 %v3559_v3  ;;  %v3832_v56 = vsub.f32 %v6856_v60, %v3768_v54  ;;  %v6859_v3 = vld [vmem:[#allocation62_spill] sm:$0xff] }
 0x69a   :  { %v4815_v15 = vpop.eup %4814  ;;  %v3605_v5 = vmul.f32 0.6931472, %v4813_v16  ;;  %v3563_v8 = vpop.xlane.xlu0 %3562  ;;  %v6860_v16 = vld [vmem:[#allocation37_spill] sm:$0xff] }
 0x69b   :  { %v3607_v37 = vmul.f32 0.6931472, %v4815_v15  ;;  %v3485_v10 = vpop.xlane.xlu1 %3484  ;;  %3896 = vst [vmem:[%s6651_s4 + $0x130] sm:$0xff] %v3832_v56 }
 0x69c   :  { %v3731_v44 = vadd.f32 %v3605_v5, %v6211_v38  ;;  %4828 = vlog2.f32 %v3485_v10 }
 0x69d   :  { %v4817_v45 = vpop.eup %4816  ;;  %v3732_v22 = vadd.f32 %v3607_v37, %v6209_v19  ;;  %4830 = vlog2.f32 %v3563_v8  ;;  %v6861_v8 = vld [vmem:[#allocation64_spill] sm:$0xff] }
 0x69e   :  { %v4819_v31 = vpop.eup %4818  ;;  %v3795_v29 = vsub.f32 %v6857_v63, %v3731_v44  ;;  %v3681_v59 = vmul.f32 0.6931472, %v4817_v45 }
 0x69f   :  { %v3796_v61 = vsub.f32 %v6858_v13, %v3732_v22  ;;  %v3683_v34 = vmul.f32 0.6931472, %v4819_v31  ;;  %v3561_v55 = vpop.xlane.xlu1 %3560  ;;  %v6862_v31 = vld [vmem:[#allocation41_spill] sm:$0xff] }
 0x6a0   :  { %3859 = vst [vmem:[%s6651_s4 + $0x8] sm:$0xff] %v3795_v29  ;;  %v3769_v46 = vadd.f32 %v3681_v59, %v6859_v3  ;;  %4832 = vlog2.f32 %v3561_v55 }
 0x6a1   :  { %v4821_v38 = vpop.eup %4820  ;;  %3860 = vst [vmem:[%s6651_s4 + $0x10] sm:$0xff] %v3796_v61  ;;  %v3770_v19 = vadd.f32 %v3683_v34, %v6221_v24  ;;  %v6863_v61 = vld [vmem:[#allocation65_spill] sm:$0xff] }
 0x6a2   :  { %v4823_v54 = vpop.eup %4822  ;;  %v3833_v15 = vsub.f32 %v6860_v16, %v3769_v46  ;;  %v3609_v60 = vmul.f32 0.6931472, %v4821_v38  ;;  %v3567_v56 = vpop.xlane.xlu0 %3566  ;;  %v6864_v46 = vld [vmem:[#allocation42_spill] sm:$0xff] }
 0x6a3   :  { %v3834_v5 = vsub.f32 %v5922_v58, %v3770_v19  ;;  %v3611_v37 = vmul.f32 0.6931472, %v4823_v54  ;;  %v3565_v10 = vpop.xlane.xlu1 %3564  ;;  %4834 = vlog2.f32 %v3567_v56 }
 0x6a4   :  { %3897 = vst [vmem:[%s6651_s4 + $0x138] sm:$0xff] %v3833_v15  ;;  %v3733_v44 = vadd.f32 %v3609_v60, %v6861_v8  ;;  %4836 = vlog2.f32 %v3565_v10  ;;  %v6865_v15 = vld [vmem:[#allocation66_spill] sm:$0xff] }
 0x6a5   :  { %v4825_v45 = vpop.eup %4824  ;;  %3898 = vst [vmem:[%s6651_s4 + $0x140] sm:$0xff] %v3834_v5  ;;  %v3734_v24 = vadd.f32 %v3611_v37, %v6229_v6  ;;  %v6866_v5 = vld [vmem:[#allocation43_spill] sm:$0xff] }
 0x6a6   :  { %v4827_v22 = vpop.eup %4826  ;;  %v3797_v58 = vsub.f32 %v6862_v31, %v3733_v44  ;;  %v3685_v63 = vmul.f32 0.6931472, %v4825_v45 }
 0x6a7   :  { %v3798_v29 = vsub.f32 %v5938_v9, %v3734_v24  ;;  %v3687_v59 = vmul.f32 0.6931472, %v4827_v22  ;;  %v3569_v13 = vpop.xlane.xlu1 %3568  ;;  %v6868_v24 = vld [vmem:[#allocation67_spill] sm:$0xff] }
 0x6a8   :  { %3861 = vst [vmem:[%s6651_s4 + $0x18] sm:$0xff] %v3797_v58  ;;  %v3771_v34 = vadd.f32 %v3685_v63, %v6863_v61  ;;  %4838 = vlog2.f32 %v3569_v13  ;;  %v6869_v58 = vld [vmem:[#allocation44_spill] sm:$0xff] }
 0x6a9   :  { %v4829_v55 = vpop.eup %4828  ;;  %3862 = vst [vmem:[%s6651_s4 + $0x20] sm:$0xff] %v3798_v29  ;;  %v3772_v6 = vadd.f32 %v3687_v59, %v6237_v52 }
 0x6aa   :  { %v4831_v3 = vpop.eup %4830  ;;  %v3835_v38 = vsub.f32 %v6864_v46, %v3771_v34  ;;  %v3613_v9 = vmul.f32 0.6931472, %v4829_v55  ;;  %v3571_v19 = vpop.xlane.xlu0 %3570 }
 0x6ab   :  { %v3836_v54 = vsub.f32 %v5954_v23, %v3772_v6  ;;  %v3691_v16 = vmul.f32 0.6931472, %v4831_v3  ;;  %4840 = vlog2.f32 %v3571_v19  ;;  %v6867_v23 = vld [vmem:[#allocation45_spill] sm:$0xff]  ;;  %v6871_v19 = vld [vmem:[#allocation46_spill] sm:$0xff] }
 0x6ac   :  { %3899 = vst [vmem:[%s6651_s4 + $0x148] sm:$0xff] %v3835_v38  ;;  %v3735_v60 = vadd.f32 %v3613_v9, %v6865_v15  ;;  %v6870_v38 = vld [vmem:[#allocation68_spill] sm:$0xff] }
 0x6ad   :  { %v4833_v56 = vpop.eup %4832  ;;  %3900 = vst [vmem:[%s6651_s4 + $0x150] sm:$0xff] %v3836_v54  ;;  %v3774_v52 = vadd.f32 %v3691_v16, %v6245_v21  ;;  %v6872_v16 = vld [vmem:[#allocation69_spill] sm:$0xff] }
 0x6ae   :  { %v3799_v37 = vsub.f32 %v6866_v5, %v3735_v60  ;;  %v3689_v10 = vmul.f32 0.6931472, %v4833_v56  ;;  %v3573_v8 = vpop.xlane.xlu1 %3572  ;;  %v6873_v60 = vld [vmem:[#allocation47_spill] sm:$0xff] }
 0x6af   :  { %v3838_v44 = vsub.f32 %v6867_v23, %v3774_v52  ;;  %4842 = vlog2.f32 %v3573_v8  ;;  %v6874_v8 = vld [vmem:[#allocation48_spill] sm:$0xff] }
 0x6b0   :  { %v4835_v45 = vpop.eup %4834  ;;  %3863 = vst [vmem:[%s6651_s4 + $0x28] sm:$0xff] %v3799_v37  ;;  %v3773_v22 = vadd.f32 %v3689_v10, %v6868_v24 }
 0x6b1   :  { %v4837_v31 = vpop.eup %4836  ;;  %3902 = vst [vmem:[%s6651_s4 + $0x160] sm:$0xff] %v3838_v44  ;;  %v3695_v21 = vmul.f32 0.6931472, %v4835_v45 }
 0x6b2   :  { %v3837_v63 = vsub.f32 %v6869_v58, %v3773_v22  ;;  %v3693_v29 = vmul.f32 0.6931472, %v4837_v31  ;;  %v3575_v59 = vpop.xlane.xlu0 %3574 }
 0x6b3   :  { %v3776_v13 = vadd.f32 %v3695_v21, %v6255_v53  ;;  %4844 = vlog2.f32 %v3575_v59 }
 0x6b4   :  { %3901 = vst [vmem:[%s6651_s4 + $0x158] sm:$0xff] %v3837_v63  ;;  %v3775_v61 = vadd.f32 %v3693_v29, %v6251_v26 }
 0x6b5   :  { %v4839_v34 = vpop.eup %4838  ;;  %v3840_v55 = vsub.f32 %v5990_v28, %v3776_v13 }
 0x6b6   :  { %v3839_v6 = vsub.f32 %v5980_v50, %v3775_v61  ;;  %v3697_v3 = vmul.f32 0.6931472, %v4839_v34  ;;  %v3577_v46 = vpop.xlane.xlu1 %3576 }
 0x6b7   :  { %3904 = vst [vmem:[%s6651_s4 + $0x170] sm:$0xff] %v3840_v55  ;;  %4846 = vlog2.f32 %v3577_v46 }
 0x6b8   :  { %v4841_v53 = vpop.eup %4840  ;;  %3903 = vst [vmem:[%s6651_s4 + $0x168] sm:$0xff] %v3839_v6  ;;  %v3777_v9 = vadd.f32 %v3697_v3, %v6870_v38 }
 0x6b9   :  { %v3699_v26 = vmul.f32 0.6931472, %v4841_v53 }
 0x6ba   :  { %v3841_v54 = vsub.f32 %v6871_v19, %v3777_v9  ;;  %v3579_v28 = vpop.xlane.xlu0 %3578 }
 0x6bb   :  { %v3778_v50 = vadd.f32 %v3699_v26, %v6872_v16  ;;  %4848 = vlog2.f32 %v3579_v28 }
 0x6bc   :  { %v4843_v15 = vpop.eup %4842  ;;  %3905 = vst [vmem:[%s6651_s4 + $0x178] sm:$0xff] %v3841_v54 }
 0x6bd   :  { %v3842_v56 = vsub.f32 %v6873_v60, %v3778_v50  ;;  %v3701_v52 = vmul.f32 0.6931472, %v4843_v15 }
 0x6be   :  { %v3581_v5 = vpop.xlane.xlu1 %3580 }
 0x6bf   :  { %3906 = vst [vmem:[%s6651_s4 + $0x180] sm:$0xff] %v3842_v56  ;;  %v3779_v37 = vadd.f32 %v3701_v52, %v6267_v12  ;;  %4850 = vlog2.f32 %v3581_v5 }
 0x6c0   :  { %v4845_v10 = vpop.eup %4844 }
 0x6c1   :  { %v3843_v23 = vsub.f32 %v6874_v8, %v3779_v37  ;;  %v3703_v44 = vmul.f32 0.6931472, %v4845_v10 }
 0x6c2   :  { %v3583_v45 = vpop.xlane.xlu0 %3582 }
 0x6c3   :  { %3907 = vst [vmem:[%s6651_s4 + $0x188] sm:$0xff] %v3843_v23  ;;  %v3780_v24 = vadd.f32 %v3703_v44, %v6272_v51  ;;  %4852 = vlog2.f32 %v3583_v45 }
 0x6c4   :  { %v4847_v22 = vpop.eup %4846 }
 0x6c5   :  { %v3844_v31 = vsub.f32 %v6030_v27, %v3780_v24  ;;  %v3705_v21 = vmul.f32 0.6931472, %v4847_v22 }
 0x6c6   :  { %v3585_v58 = vpop.xlane.xlu1 %3584 }
 0x6c7   :  { %3908 = vst [vmem:[%s6651_s4 + $0x190] sm:$0xff] %v3844_v31  ;;  %v3781_v12 = vadd.f32 %v3705_v21, %v6282_v7  ;;  %4854 = vlog2.f32 %v3585_v58 }
 0x6c8   :  { %v4849_v63 = vpop.eup %4848 }
 0x6c9   :  { %v3845_v29 = vsub.f32 %v6040_v0, %v3781_v12  ;;  %v3707_v59 = vmul.f32 0.6931472, %v4849_v63 }
 0x6ca   :  { %v3587_v13 = vpop.xlane.xlu0 %3586 }
 0x6cb   :  { %3909 = vst [vmem:[%s6651_s4 + $0x198] sm:$0xff] %v3845_v29  ;;  %v3782_v27 = vadd.f32 %v3707_v59, %v6291_v25  ;;  %4856 = vlog2.f32 %v3587_v13 }
 0x6cc   :  { %v4851_v51 = vpop.eup %4850 }
 0x6cd   :  { %v3846_v61 = vsub.f32 %v6050_v2, %v3782_v27  ;;  %v3709_v34 = vmul.f32 0.6931472, %v4851_v51 }
 0x6ce   :  { %v3589_v55 = vpop.xlane.xlu1 %3588 }
 0x6cf   :  { %3910 = vst [vmem:[%s6651_s4 + $0x1a0] sm:$0xff] %v3846_v61  ;;  %v3783_v0 = vadd.f32 %v3709_v34, %v6300_v11  ;;  %4858 = vlog2.f32 %v3589_v55 }
 0x6d0   :  { %v4853_v7 = vpop.eup %4852 }
 0x6d1   :  { %v3847_v6 = vsub.f32 %v6060_v43, %v3783_v0  ;;  %v3711_v3 = vmul.f32 0.6931472, %v4853_v7 }
 0x6d2   :  { %v3591_v46 = vpop.xlane.xlu0 %3590 }
 0x6d3   :  { %3911 = vst [vmem:[%s6651_s4 + $0x1a8] sm:$0xff] %v3847_v6  ;;  %v3784_v2 = vadd.f32 %v3711_v3, %v6309_v62  ;;  %4860 = vlog2.f32 %v3591_v46 }
 0x6d4   :  { %v4855_v25 = vpop.eup %4854 }
 0x6d5   :  { %v3848_v53 = vsub.f32 %v6070_v47, %v3784_v2  ;;  %v3713_v38 = vmul.f32 0.6931472, %v4855_v25 }
 0x6d6   :  { %v3593_v9 = vpop.xlane.xlu1 %3592 }
 0x6d7   :  { %3912 = vst [vmem:[%s6651_s4 + $0x1b0] sm:$0xff] %v3848_v53  ;;  %v3785_v43 = vadd.f32 %v3713_v38, %v6318_v35  ;;  %4862 = vlog2.f32 %v3593_v9 }
 0x6d8   :  { %v4857_v11 = vpop.eup %4856 }
 0x6d9   :  { %v3849_v26 = vsub.f32 %v6080_v49, %v3785_v43  ;;  %v3715_v19 = vmul.f32 0.6931472, %v4857_v11 }
 0x6da   :  { %v3595_v54 = vpop.xlane.xlu0 %3594 }
 0x6db   :  { %3913 = vst [vmem:[%s6651_s4 + $0x1b8] sm:$0xff] %v3849_v26  ;;  %v3786_v47 = vadd.f32 %v3715_v19, %v6327_v36  ;;  %4864 = vlog2.f32 %v3595_v54 }
 0x6dc   :  { %v4859_v62 = vpop.eup %4858 }
 0x6dd   :  { %v3850_v28 = vsub.f32 %v6090_v18, %v3786_v47  ;;  %v3717_v16 = vmul.f32 0.6931472, %v4859_v62 }
 0x6de   :  { %v3597_v50 = vpop.xlane.xlu1 %3596 }
 0x6df   :  { %3914 = vst [vmem:[%s6651_s4 + $0x1c0] sm:$0xff] %v3850_v28  ;;  %v3787_v49 = vadd.f32 %v3717_v16, %v6336_v57  ;;  %4866 = vlog2.f32 %v3597_v50 }
 0x6e0   :  { %v4861_v35 = vpop.eup %4860 }
 0x6e1   :  { %v3851_v15 = vsub.f32 %v6100_v42, %v3787_v49  ;;  %v3719_v60 = vmul.f32 0.6931472, %v4861_v35 }
 0x6e2   :  { %v3599_v56 = vpop.xlane.xlu0 %3598 }
 0x6e3   :  { %3915 = vst [vmem:[%s6651_s4 + $0x1c8] sm:$0xff] %v3851_v15  ;;  %v3788_v18 = vadd.f32 %v3719_v60, %v6345_v1  ;;  %4868 = vlog2.f32 %v3599_v56 }
 0x6e4   :  { %v4863_v36 = vpop.eup %4862 }
 0x6e5   :  { %v3852_v52 = vsub.f32 %v6110_v41, %v3788_v18  ;;  %v3721_v5 = vmul.f32 0.6931472, %v4863_v36 }
 0x6e6   :  { %v3601_v37 = vpop.xlane.xlu1 %3600 }
 0x6e7   :  { %3916 = vst [vmem:[%s6651_s4 + $0x1d0] sm:$0xff] %v3852_v52  ;;  %v3789_v42 = vadd.f32 %v3721_v5, %v6354_v39  ;;  %4870 = vlog2.f32 %v3601_v37 }
 0x6e8   :  { %v4865_v57 = vpop.eup %4864 }
 0x6e9   :  { %v3853_v10 = vsub.f32 %v6120_v20, %v3789_v42  ;;  %v3723_v8 = vmul.f32 0.6931472, %v4865_v57 }
 0x6eb   :  { %3917 = vst [vmem:[%s6651_s4 + $0x1d8] sm:$0xff] %v3853_v10  ;;  %v3790_v1 = vadd.f32 %v3723_v8, %v6363_v4 }
 0x6ec   :  { %v4867_v41 = vpop.eup %4866 }
 0x6ed   :  { %v3854_v23 = vsub.f32 %v6130_v40, %v3790_v1  ;;  %v3725_v44 = vmul.f32 0.6931472, %v4867_v41 }
 0x6ef   :  { %3918 = vst [vmem:[%s6651_s4 + $0x1e0] sm:$0xff] %v3854_v23  ;;  %v3791_v39 = vadd.f32 %v3725_v44, %v6372_v32 }
 0x6f0   :  { %v4869_v45 = vpop.eup %4868 }
 0x6f1   :  { %v3855_v20 = vsub.f32 %v6140_v14, %v3791_v39  ;;  %v3727_v24 = vmul.f32 0.6931472, %v4869_v45 }
 0x6f3   :  { %3919 = vst [vmem:[%s6651_s4 + $0x1e8] sm:$0xff] %v3855_v20  ;;  %v3792_v4 = vadd.f32 %v3727_v24, %v6381_v17 }
 0x6f4   :  { %v4871_v22 = vpop.eup %4870 }
 0x6f5   :  { %v3856_v40 = vsub.f32 %v6150_v48, %v3792_v4  ;;  %v3729_v31 = vmul.f32 0.6931472, %v4871_v22 }
 0x6f7   :  { %3920 = vst [vmem:[%s6651_s4 + $0x1f0] sm:$0xff] %v3856_v40  ;;  %v3793_v32 = vadd.f32 %v3729_v31, %v6390_v30 }
 0x6f9   :  { %v3857_v21 = vsub.f32 %v6160_v33, %v3793_v32 }
 0x6fb   :  { %3921 = vst [vmem:[%s6651_s4 + $0x1f8] sm:$0xff] %v3857_v21 }
 0x6fc   :  { %3926 = vsyncpa [#allocation3], 1 }

</bundles_post_ra>
